<compile_context>
chip_gen: v6e
topology: v6e:2x2x1
jax: 0.10.0
libtpu: 0.0.40
codegen_flags: <defaults>
</compile_context>

<pallas_src>
import functools

import jax
import jax.numpy as jnp
from jax import lax
from jax.experimental import pallas as pl
from jax.experimental.pallas import tpu as pltpu

KSIZE = 7
PAD = (KSIZE - 1) // 2  # 3
BN_EPS = 1e-5


def _vmem_limit_bytes():
    """Generation-aware scoped-VMEM limit (~75% of physical, capped at 100 MiB)."""
    cap = None
    try:
        cap = getattr(pltpu.get_tpu_info(), "vmem_capacity_bytes", None)
    except Exception:
        cap = None
    if not cap or cap <= 0:
        cap = 64 * 1024 * 1024  # conservative fallback: assume v7x-sized VMEM
    return int(min((cap * 3) // 4, 100 * 1024 * 1024))


def _pick_phase1_c_chunk(C, H, W, vmem_limit):
    """Largest divisor of C whose (1, CB, H, W) block keeps phase-1 VMEM flat."""
    budget = min(8 * 1024 * 1024, max(vmem_limit // 4, 1 * 1024 * 1024))
    max_cb = max(budget // (H * W * 4), 1)
    if C <= max_cb:
        return C
    best = 1
    d = 1
    while d * d <= C:
        if C % d == 0:
            if d <= max_cb:
                best = max(best, d)
            if C // d <= max_cb:
                best = max(best, C // d)
        d += 1
    return best


def _pick_phase2_c_block(C, HW, vmem_limit):
    """Phase-2 C chunk; accounts for 2x in + 2x out double buffering."""
    blk_budget = max(min((vmem_limit - (2 << 20)) // 4, 16 << 20), 1 << 20)
    row_bytes = HW * 4
    if C * row_bytes <= blk_budget:
        return C
    bc = (blk_budget // row_bytes) // 8 * 8
    return int(max(8, min(bc, C)))


def _pool_conv_kernel(x_ref, w_ref, o_ref, pool_ref, pad_ref, *, c_total):
    """Phase 1: fused channel max+mean pool (carried over C chunks) + 7x7 conv.

    x_ref:    (1, CB, H, W)    VMEM input block (one C chunk, unpadded)
    w_ref:    (2*7*7,)         SMEM flat conv weights (ch 0 = max map, 1 = mean)
    o_ref:    (1, H, W)        VMEM conv-map output (written on the last chunk)
    pool_ref: (2, H, W)        VMEM running [max, sum] accumulator
    pad_ref:  (2, H+6, W+6)    VMEM zero-padded pooled maps scratch
    """
    c_idx = pl.program_id(1)
    last_c = pl.num_programs(1) - 1
    CB, H, W = x_ref.shape[1], x_ref.shape[2], x_ref.shape[3]

    # Fused single pass over this C chunk: running max + running sum (x read
    # once).  Partial unroll keeps LLO scheduling visibility for any CB.
    def body(c, carry):
        mx, sm = carry
        v = x_ref[0, c]
        return jnp.maximum(mx, v), sm + v

    x0 = x_ref[0, 0]
    mx, sm = lax.fori_loop(1, CB, body, (x0, x0),
                           unroll=min(8, max(CB - 1, 1)))

    @pl.when(c_idx == 0)
    def _():
        pool_ref[0] = jnp.full((H, W), -jnp.inf, jnp.float32)
        pool_ref[1] = jnp.zeros((H, W), jnp.float32)

    pool_ref[0] = jnp.maximum(pool_ref[0], mx)
    pool_ref[1] = pool_ref[1] + sm

    @pl.when(c_idx == last_c)
    def _():
        # Zero-pad only the two C-reduced maps.  The ~4 KiB clear happens once
        # per batch element here (not "first grid step only"): with the N axis
        # megacore-parallel each core has its own scratch, and a program_id==0
        # guard would leave the second core's border uninitialized.
        pad_ref[...] = jnp.zeros_like(pad_ref)
        pad_ref[0, PAD:PAD + H, PAD:PAD + W] = pool_ref[0]
        pad_ref[1, PAD:PAD + H, PAD:PAD + W] = pool_ref[1] * (1.0 / c_total)

        # 7x7 conv (2 in-ch -> 1 out-ch).  The lane (kw) shift is hoisted so
        # only 14 lane-shifted ref reads happen; the 98 taps then use cheaper
        # sublane slices of those columns.
        # TODO(synk): tile H inside the kernel (or switch to im2col on the MXU)
        # if H*W grows past ~8-16K f32 to avoid vreg spills in this tap loop.
        acc = jnp.zeros((H, W), jnp.float32)
        for ci in range(2):
            for kw in range(KSIZE):
                col = pad_ref[ci, :, kw:kw + W]            # (H+6, W)
                for kh in range(KSIZE):
                    wv = w_ref[ci * KSIZE * KSIZE + kh * KSIZE + kw]
                    acc = acc + wv * col[kh:kh + H, :]
        o_ref[0] = acc


def _gate_kernel(scale_ref, x_ref, o_ref):
    """Phase 2: pure load-mul-store gating (lane-dense H*W last dim).

    scale_ref: (1, 1, HW)   sigmoid(BN(conv)) gate for this batch element
    x_ref:     (1, BC, HW)  input block
    o_ref:     (1, BC, HW)  output block
    """
    o_ref[...] = x_ref[...] * scale_ref[...]


@jax.jit
def spatial_gate(x, conv_w, gamma, beta):
    """x: (N, C, H, W) f32; conv_w: (1, 2, 7, 7) f32 (OIHW); gamma/beta scalars."""
    N, C, H, W = x.shape
    HW = H * W
    x = x.astype(jnp.float32)
    w_flat = conv_w.reshape(-1).astype(jnp.float32)             # (98,)
    vmem_limit = _vmem_limit_bytes()

    # ---- Phase 1: channel pool + 7x7 conv -> (N, H, W) spatial map ---------
    CB1 = _pick_phase1_c_chunk(C, H, W, vmem_limit)
    n_cchunks = C // CB1
    conv_map = pl.pallas_call(
        functools.partial(_pool_conv_kernel, c_total=C),
        out_shape=jax.ShapeDtypeStruct((N, H, W), jnp.float32),
        grid_spec=pltpu.PrefetchScalarGridSpec(
            num_scalar_prefetch=0,
            grid=(N, n_cchunks),
            in_specs=[
                pl.BlockSpec((1, CB1, H, W), lambda n, c: (n, c, 0, 0)),
                pl.BlockSpec(memory_space=pltpu.MemorySpace.SMEM),
            ],
            out_specs=pl.BlockSpec((1, H, W), lambda n, c: (n, 0, 0)),
            scratch_shapes=[
                pltpu.VMEM((2, H, W), jnp.float32),
                pltpu.VMEM((2, H + 2 * PAD, W + 2 * PAD), jnp.float32),
            ],
        ),
        compiler_params=pltpu.CompilerParams(
            dimension_semantics=("parallel", "arbitrary"),
            vmem_limit_bytes=vmem_limit),
        cost_estimate=pl.CostEstimate(
            flops=int(N * H * W * (2 * C + 4 * KSIZE * KSIZE)),
            transcendentals=0,
            bytes_accessed=int(4 * (N * C * H * W + N * H * W
                                    + 2 * KSIZE * KSIZE))),
    )(x, w_flat)
    # TODO(synk): for N smaller than the TensorCore count (v7x has 2/chip) add
    # an H-tile parallel axis to phase 1 so both cores get balanced work.

    # ---- JAX glue on the tiny (N, H, W) conv map ----------------------------
    # Training-mode BatchNorm batch statistics are a *global* reduction over
    # N*H*W, so they live between the two pallas calls; the BN affine and the
    # sigmoid are folded here once per pixel instead of being repeated per
    # (n, C-chunk) inside the hot phase-2 body.
    mean = jnp.mean(conv_map)
    var = jnp.mean((conv_map - mean) ** 2)            # biased, as BN normalize uses
    a = lax.rsqrt(var + BN_EPS) * jnp.asarray(gamma, jnp.float32)
    b = jnp.asarray(beta, jnp.float32) - mean * a
    scale = jax.nn.sigmoid(conv_map * a + b)          # (N, H, W), tiny
    scale_flat = scale.reshape(N, 1, HW)              # minor-dims merge: bitcast
    # TODO(synk): BatchNorm running-stat (momentum) buffer update is stateful
    # and intentionally not modeled.

    # ---- Phase 2: gated multiply, lane-dense (H*W) layout -------------------
    BC = _pick_phase2_c_block(C, HW, vmem_limit)
    x_flat = x.reshape(N, C, HW)                      # minor-dims merge: bitcast

    out_flat = pl.pallas_call(
        _gate_kernel,
        out_shape=jax.ShapeDtypeStruct((N, C, HW), jnp.float32),
        grid_spec=pltpu.PrefetchScalarGridSpec(
            num_scalar_prefetch=0,
            grid=(N, pl.cdiv(C, BC)),
            in_specs=[
                pl.BlockSpec((1, 1, HW), lambda n, c: (n, 0, 0)),
                pl.BlockSpec((1, BC, HW), lambda n, c: (n, c, 0)),
            ],
            out_specs=pl.BlockSpec((1, BC, HW), lambda n, c: (n, c, 0)),
        ),
        compiler_params=pltpu.CompilerParams(
            dimension_semantics=("parallel", "parallel"),
            vmem_limit_bytes=vmem_limit),
        cost_estimate=pl.CostEstimate(
            flops=int(N * C * HW),
            transcendentals=0,
            bytes_accessed=int(4 * (2 * N * C * HW + N * HW))),
    )(scale_flat, x_flat)
    # NOTE: input_output_aliases={1: 0} is deliberately NOT set: x is a
    # non-donated jit parameter, so XLA would insert a full extra copy of x to
    # honor the alias, costing more than the allocation it saves.

    return out_flat.reshape(N, C, H, W)


def spatial_gate_reference(x, conv_w, gamma, beta):
    """Pure-JAX reference mirroring the PyTorch forward (training-mode BN)."""
    mx = jnp.max(x, axis=1, keepdims=True)
    mn = jnp.mean(x, axis=1, keepdims=True)
    pooled = jnp.concatenate([mx, mn], axis=1)                  # (N, 2, H, W)
    conv = jax.lax.conv_general_dilated(
        pooled, conv_w, window_strides=(1, 1),
        padding=[(PAD, PAD), (PAD, PAD)],
        dimension_numbers=("NCHW", "OIHW", "NCHW"))             # (N, 1, H, W)
    mean = jnp.mean(conv)
    var = jnp.mean((conv - mean) ** 2)
    y = (conv - mean) * jax.lax.rsqrt(var + BN_EPS) * gamma + beta
    return x * jax.nn.sigmoid(y)


if __name__ == "__main__":
    key = jax.random.PRNGKey(0)
    kx, kw = jax.random.split(key)

    N, C, H, W = 2, 4, 16, 16
    x = jax.random.normal(kx, (N, C, H, W), dtype=jnp.float32)

    # Deterministic parameter init (synthetic, in-script):
    #   conv weight: (out=1, in=2, 7, 7), no bias (bias=False in BasicConv)
    #   BatchNorm2d(1): gamma=1, beta=0 (PyTorch defaults)
    fan_in = 2 * KSIZE * KSIZE
    bound = 1.0 / (fan_in ** 0.5)
    conv_w = jax.random.uniform(kw, (1, 2, KSIZE, KSIZE),
                                minval=-bound, maxval=bound, dtype=jnp.float32)
    gamma, beta = 1.0, 0.0

    out = jax.block_until_ready(spatial_gate(x, conv_w, gamma, beta))

    ref = spatial_gate_reference(x, conv_w, gamma, beta)
    assert out.shape == (N, C, H, W)
    err = jnp.max(jnp.abs(out - ref))
    assert jnp.allclose(out, ref, atol=1e-5, rtol=1e-5), f"max abs err {err}"

    print("KERNEL_OK")
</pallas_src>

<mosaic_0001>
module attributes {stable_mosaic.version = 11 : i64} {
  func.func @_pool_conv_kernel(%arg0: i32, %arg1: i32, %arg2: memref<1x4x16x16xf32, #tpu.memory_space<vmem>>, %arg3: memref<98xf32, #tpu.memory_space<smem>>, %arg4: memref<1x16x16xf32, #tpu.memory_space<vmem>>, %arg5: memref<2x16x16xf32, #tpu.memory_space<vmem>>, %arg6: memref<2x22x22xf32, #tpu.memory_space<vmem>>) attributes {dimension_semantics = [#tpu.dimension_semantics<parallel>, #tpu.dimension_semantics<arbitrary>], iteration_bounds = array<i64: 2, 1>, scalar_prefetch = 0 : i64, scratch_operands = 2 : i64, tpu.core_type = #tpu.core_type<tc>, window_params = [{transform_indices = @transform_0, window_bounds = array<i64: 1, 4, 16, 16>}, {transform_indices = @transform_1, window_bounds = array<i64: 98>}, {transform_indices = @transform_2, window_bounds = array<i64: 1, 16, 16>}]} {
    %c0 = arith.constant 0 : index
    %c0_0 = arith.constant 0 : index
    %c0_1 = arith.constant 0 : index
    %c0_2 = arith.constant 0 : index
    %0 = vector.load %arg2[%c0, %c0_0, %c0_1, %c0_2] : memref<1x4x16x16xf32, #tpu.memory_space<vmem>>, vector<1x1x16x16xf32>
    %1 = vector.shape_cast %0 : vector<1x1x16x16xf32> to vector<16x16xf32>
    %c1_i32 = arith.constant 1 : i32
    %c0_3 = arith.constant 0 : index
    %2 = arith.index_cast %c1_i32 : i32 to index
    %c0_4 = arith.constant 0 : index
    %c0_5 = arith.constant 0 : index
    %3 = vector.load %arg2[%c0_3, %2, %c0_4, %c0_5] : memref<1x4x16x16xf32, #tpu.memory_space<vmem>>, vector<1x1x16x16xf32>
    %4 = vector.shape_cast %3 : vector<1x1x16x16xf32> to vector<16x16xf32>
    %5 = arith.maximumf %1, %4 : vector<16x16xf32>
    %6 = arith.addf %1, %4 : vector<16x16xf32>
    %c2_i32 = arith.constant 2 : i32
    %c0_6 = arith.constant 0 : index
    %7 = arith.index_cast %c2_i32 : i32 to index
    %c0_7 = arith.constant 0 : index
    %c0_8 = arith.constant 0 : index
    %8 = vector.load %arg2[%c0_6, %7, %c0_7, %c0_8] : memref<1x4x16x16xf32, #tpu.memory_space<vmem>>, vector<1x1x16x16xf32>
    %9 = vector.shape_cast %8 : vector<1x1x16x16xf32> to vector<16x16xf32>
    %10 = arith.maximumf %5, %9 : vector<16x16xf32>
    %11 = arith.addf %6, %9 : vector<16x16xf32>
    %c3_i32 = arith.constant 3 : i32
    %c0_9 = arith.constant 0 : index
    %12 = arith.index_cast %c3_i32 : i32 to index
    %c0_10 = arith.constant 0 : index
    %c0_11 = arith.constant 0 : index
    %13 = vector.load %arg2[%c0_9, %12, %c0_10, %c0_11] : memref<1x4x16x16xf32, #tpu.memory_space<vmem>>, vector<1x1x16x16xf32>
    %14 = vector.shape_cast %13 : vector<1x1x16x16xf32> to vector<16x16xf32>
    %15 = arith.maximumf %10, %14 : vector<16x16xf32>
    %16 = arith.addf %11, %14 : vector<16x16xf32>
    %c3_i32_12 = arith.constant 3 : i32
    %c0_i32 = arith.constant 0 : i32
    %17 = arith.cmpi eq, %arg1, %c0_i32 : i32
    %18 = arith.extui %17 : i1 to i32
    %c0_i32_13 = arith.constant 0 : i32
    %19 = arith.cmpi ne, %18, %c0_i32_13 : i32
    scf.if %19 {
      %cst = arith.constant 0xFF800000 : f32
      %35 = vector.broadcast %cst : f32 to vector<16x16xf32>
      %c0_27 = arith.constant 0 : index
      %c0_28 = arith.constant 0 : index
      %c0_29 = arith.constant 0 : index
      %36 = vector.load %arg5[%c0_27, %c0_28, %c0_29] : memref<2x16x16xf32, #tpu.memory_space<vmem>>, vector<1x16x16xf32>
      %37 = vector.shape_cast %36 : vector<1x16x16xf32> to vector<16x16xf32>
      %38 = vector.shape_cast %35 : vector<16x16xf32> to vector<1x16x16xf32>
      tpu.vector_store %arg5[%c0_27, %c0_28, %c0_29], %38 {strides = array<i32>} : memref<2x16x16xf32, #tpu.memory_space<vmem>>, vector<1x16x16xf32>,
      %cst_30 = arith.constant 0.000000e+00 : f32
      %39 = vector.broadcast %cst_30 : f32 to vector<16x16xf32>
      %c1_31 = arith.constant 1 : index
      %c0_32 = arith.constant 0 : index
      %c0_33 = arith.constant 0 : index
      %40 = vector.load %arg5[%c1_31, %c0_32, %c0_33] : memref<2x16x16xf32, #tpu.memory_space<vmem>>, vector<1x16x16xf32>
      %41 = vector.shape_cast %40 : vector<1x16x16xf32> to vector<16x16xf32>
      %42 = vector.shape_cast %39 : vector<16x16xf32> to vector<1x16x16xf32>
      tpu.vector_store %arg5[%c1_31, %c0_32, %c0_33], %42 {strides = array<i32>} : memref<2x16x16xf32, #tpu.memory_space<vmem>>, vector<1x16x16xf32>,
    } else {
    }
    %c0_14 = arith.constant 0 : index
    %c0_15 = arith.constant 0 : index
    %c0_16 = arith.constant 0 : index
    %20 = vector.load %arg5[%c0_14, %c0_15, %c0_16] : memref<2x16x16xf32, #tpu.memory_space<vmem>>, vector<1x16x16xf32>
    %21 = vector.shape_cast %20 : vector<1x16x16xf32> to vector<16x16xf32>
    %22 = arith.maximumf %21, %15 : vector<16x16xf32>
    %c0_17 = arith.constant 0 : index
    %c0_18 = arith.constant 0 : index
    %c0_19 = arith.constant 0 : index
    %23 = vector.load %arg5[%c0_17, %c0_18, %c0_19] : memref<2x16x16xf32, #tpu.memory_space<vmem>>, vector<1x16x16xf32>
    %24 = vector.shape_cast %23 : vector<1x16x16xf32> to vector<16x16xf32>
    %25 = vector.shape_cast %22 : vector<16x16xf32> to vector<1x16x16xf32>
    tpu.vector_store %arg5[%c0_17, %c0_18, %c0_19], %25 {strides = array<i32>} : memref<2x16x16xf32, #tpu.memory_space<vmem>>, vector<1x16x16xf32>,
    %c1 = arith.constant 1 : index
    %c0_20 = arith.constant 0 : index
    %c0_21 = arith.constant 0 : index
    %26 = vector.load %arg5[%c1, %c0_20, %c0_21] : memref<2x16x16xf32, #tpu.memory_space<vmem>>, vector<1x16x16xf32>
    %27 = vector.shape_cast %26 : vector<1x16x16xf32> to vector<16x16xf32>
    %28 = arith.addf %27, %16 : vector<16x16xf32>
    %c1_22 = arith.constant 1 : index
    %c0_23 = arith.constant 0 : index
    %c0_24 = arith.constant 0 : index
    %29 = vector.load %arg5[%c1_22, %c0_23, %c0_24] : memref<2x16x16xf32, #tpu.memory_space<vmem>>, vector<1x16x16xf32>
    %30 = vector.shape_cast %29 : vector<1x16x16xf32> to vector<16x16xf32>
    %31 = vector.shape_cast %28 : vector<16x16xf32> to vector<1x16x16xf32>
    tpu.vector_store %arg5[%c1_22, %c0_23, %c0_24], %31 {strides = array<i32>} : memref<2x16x16xf32, #tpu.memory_space<vmem>>, vector<1x16x16xf32>,
    %c0_i32_25 = arith.constant 0 : i32
    %32 = arith.cmpi eq, %arg1, %c0_i32_25 : i32
    %33 = arith.extui %32 : i1 to i32
    %c0_i32_26 = arith.constant 0 : i32
    %34 = arith.cmpi ne, %33, %c0_i32_26 : i32
    scf.if %34 {
      %cst = arith.constant 0.000000e+00 : f32
      %35 = vector.broadcast %cst : f32 to vector<2x22x22xf32>
      %c0_27 = arith.constant 0 : index
      %c0_28 = arith.constant 0 : index
      %c0_29 = arith.constant 0 : index
      %36 = vector.load %arg6[%c0_27, %c0_28, %c0_29] : memref<2x22x22xf32, #tpu.memory_space<vmem>>, vector<2x22x22xf32>
      tpu.vector_store %arg6[%c0_27, %c0_28, %c0_29], %35 {strides = array<i32>} : memref<2x22x22xf32, #tpu.memory_space<vmem>>, vector<2x22x22xf32>,
      %c0_30 = arith.constant 0 : index
      %c0_31 = arith.constant 0 : index
      %c0_32 = arith.constant 0 : index
      %37 = vector.load %arg5[%c0_30, %c0_31, %c0_32] : memref<2x16x16xf32, #tpu.memory_space<vmem>>, vector<1x16x16xf32>
      %38 = vector.shape_cast %37 : vector<1x16x16xf32> to vector<16x16xf32>
      %c0_33 = arith.constant 0 : index
      %c3 = arith.constant 3 : index
      %c3_34 = arith.constant 3 : index
      %39 = vector.load %arg6[%c0_33, %c3, %c3_34] : memref<2x22x22xf32, #tpu.memory_space<vmem>>, vector<1x16x16xf32>
      %40 = vector.shape_cast %39 : vector<1x16x16xf32> to vector<16x16xf32>
      %41 = vector.shape_cast %38 : vector<16x16xf32> to vector<1x16x16xf32>
      tpu.vector_store %arg6[%c0_33, %c3, %c3_34], %41 {strides = array<i32>} : memref<2x22x22xf32, #tpu.memory_space<vmem>>, vector<1x16x16xf32>,
      %c1_35 = arith.constant 1 : index
      %c0_36 = arith.constant 0 : index
      %c0_37 = arith.constant 0 : index
      %42 = vector.load %arg5[%c1_35, %c0_36, %c0_37] : memref<2x16x16xf32, #tpu.memory_space<vmem>>, vector<1x16x16xf32>
      %43 = vector.shape_cast %42 : vector<1x16x16xf32> to vector<16x16xf32>
      %cst_38 = arith.constant 2.500000e-01 : f32
      %44 = vector.broadcast %cst_38 : f32 to vector<16x16xf32>
      %45 = arith.mulf %43, %44 : vector<16x16xf32>
      %c1_39 = arith.constant 1 : index
      %c3_40 = arith.constant 3 : index
      %c3_41 = arith.constant 3 : index
      %46 = vector.load %arg6[%c1_39, %c3_40, %c3_41] : memref<2x22x22xf32, #tpu.memory_space<vmem>>, vector<1x16x16xf32>
      %47 = vector.shape_cast %46 : vector<1x16x16xf32> to vector<16x16xf32>
      %48 = vector.shape_cast %45 : vector<16x16xf32> to vector<1x16x16xf32>
      tpu.vector_store %arg6[%c1_39, %c3_40, %c3_41], %48 {strides = array<i32>} : memref<2x22x22xf32, #tpu.memory_space<vmem>>, vector<1x16x16xf32>,
      %cst_42 = arith.constant 0.000000e+00 : f32
      %49 = vector.broadcast %cst_42 : f32 to vector<16x16xf32>
      %c0_43 = arith.constant 0 : index
      %c0_44 = arith.constant 0 : index
      %c0_45 = arith.constant 0 : index
      %50 = vector.load %arg6[%c0_43, %c0_44, %c0_45] : memref<2x22x22xf32, #tpu.memory_space<vmem>>, vector<1x22x16xf32>
      %51 = vector.shape_cast %50 : vector<1x22x16xf32> to vector<22x16xf32>
      %c0_46 = arith.constant 0 : index
      %52 = memref.load %arg3[%c0_46] : memref<98xf32, #tpu.memory_space<smem>>
      %53 = vector.extract_strided_slice %51 {offsets = [0, 0], sizes = [16, 16], strides = [1, 1]} : vector<22x16xf32> to vector<16x16xf32>
      %54 = vector.broadcast %52 : f32 to vector<16x16xf32>
      %55 = arith.mulf %54, %53 : vector<16x16xf32>
      %56 = arith.addf %49, %55 : vector<16x16xf32>
      %c7 = arith.constant 7 : index
      %57 = memref.load %arg3[%c7] : memref<98xf32, #tpu.memory_space<smem>>
      %58 = vector.extract_strided_slice %51 {offsets = [1, 0], sizes = [16, 16], strides = [1, 1]} : vector<22x16xf32> to vector<16x16xf32>
      %59 = vector.broadcast %57 : f32 to vector<16x16xf32>
      %60 = arith.mulf %59, %58 : vector<16x16xf32>
      %61 = arith.addf %56, %60 : vector<16x16xf32>
      %c14 = arith.constant 14 : index
      %62 = memref.load %arg3[%c14] : memref<98xf32, #tpu.memory_space<smem>>
      %63 = vector.extract_strided_slice %51 {offsets = [2, 0], sizes = [16, 16], strides = [1, 1]} : vector<22x16xf32> to vector<16x16xf32>
      %64 = vector.broadcast %62 : f32 to vector<16x16xf32>
      %65 = arith.mulf %64, %63 : vector<16x16xf32>
      %66 = arith.addf %61, %65 : vector<16x16xf32>
      %c21 = arith.constant 21 : index
      %67 = memref.load %arg3[%c21] : memref<98xf32, #tpu.memory_space<smem>>
      %68 = vector.extract_strided_slice %51 {offsets = [3, 0], sizes = [16, 16], strides = [1, 1]} : vector<22x16xf32> to vector<16x16xf32>
      %69 = vector.broadcast %67 : f32 to vector<16x16xf32>
      %70 = arith.mulf %69, %68 : vector<16x16xf32>
      %71 = arith.addf %66, %70 : vector<16x16xf32>
      %c28 = arith.constant 28 : index
      %72 = memref.load %arg3[%c28] : memref<98xf32, #tpu.memory_space<smem>>
      %73 = vector.extract_strided_slice %51 {offsets = [4, 0], sizes = [16, 16], strides = [1, 1]} : vector<22x16xf32> to vector<16x16xf32>
      %74 = vector.broadcast %72 : f32 to vector<16x16xf32>
      %75 = arith.mulf %74, %73 : vector<16x16xf32>
      %76 = arith.addf %71, %75 : vector<16x16xf32>
      %c35 = arith.constant 35 : index
      %77 = memref.load %arg3[%c35] : memref<98xf32, #tpu.memory_space<smem>>
      %78 = vector.extract_strided_slice %51 {offsets = [5, 0], sizes = [16, 16], strides = [1, 1]} : vector<22x16xf32> to vector<16x16xf32>
      %79 = vector.broadcast %77 : f32 to vector<16x16xf32>
      %80 = arith.mulf %79, %78 : vector<16x16xf32>
      %81 = arith.addf %76, %80 : vector<16x16xf32>
      %c42 = arith.constant 42 : index
      %82 = memref.load %arg3[%c42] : memref<98xf32, #tpu.memory_space<smem>>
      %83 = vector.extract_strided_slice %51 {offsets = [6, 0], sizes = [16, 16], strides = [1, 1]} : vector<22x16xf32> to vector<16x16xf32>
      %84 = vector.broadcast %82 : f32 to vector<16x16xf32>
      %85 = arith.mulf %84, %83 : vector<16x16xf32>
      %86 = arith.addf %81, %85 : vector<16x16xf32>
      %c0_47 = arith.constant 0 : index
      %c0_48 = arith.constant 0 : index
      %c1_49 = arith.constant 1 : index
      %87 = vector.load %arg6[%c0_47, %c0_48, %c1_49] : memref<2x22x22xf32, #tpu.memory_space<vmem>>, vector<1x22x16xf32>
      %88 = vector.shape_cast %87 : vector<1x22x16xf32> to vector<22x16xf32>
      %c1_50 = arith.constant 1 : index
      %89 = memref.load %arg3[%c1_50] : memref<98xf32, #tpu.memory_space<smem>>
      %90 = vector.extract_strided_slice %88 {offsets = [0, 0], sizes = [16, 16], strides = [1, 1]} : vector<22x16xf32> to vector<16x16xf32>
      %91 = vector.broadcast %89 : f32 to vector<16x16xf32>
      %92 = arith.mulf %91, %90 : vector<16x16xf32>
      %93 = arith.addf %86, %92 : vector<16x16xf32>
      %c8 = arith.constant 8 : index
      %94 = memref.load %arg3[%c8] : memref<98xf32, #tpu.memory_space<smem>>
      %95 = vector.extract_strided_slice %88 {offsets = [1, 0], sizes = [16, 16], strides = [1, 1]} : vector<22x16xf32> to vector<16x16xf32>
      %96 = vector.broadcast %94 : f32 to vector<16x16xf32>
      %97 = arith.mulf %96, %95 : vector<16x16xf32>
      %98 = arith.addf %93, %97 : vector<16x16xf32>
      %c15 = arith.constant 15 : index
      %99 = memref.load %arg3[%c15] : memref<98xf32, #tpu.memory_space<smem>>
      %100 = vector.extract_strided_slice %88 {offsets = [2, 0], sizes = [16, 16], strides = [1, 1]} : vector<22x16xf32> to vector<16x16xf32>
      %101 = vector.broadcast %99 : f32 to vector<16x16xf32>
      %102 = arith.mulf %101, %100 : vector<16x16xf32>
      %103 = arith.addf %98, %102 : vector<16x16xf32>
      %c22 = arith.constant 22 : index
      %104 = memref.load %arg3[%c22] : memref<98xf32, #tpu.memory_space<smem>>
      %105 = vector.extract_strided_slice %88 {offsets = [3, 0], sizes = [16, 16], strides = [1, 1]} : vector<22x16xf32> to vector<16x16xf32>
      %106 = vector.broadcast %104 : f32 to vector<16x16xf32>
      %107 = arith.mulf %106, %105 : vector<16x16xf32>
      %108 = arith.addf %103, %107 : vector<16x16xf32>
      %c29 = arith.constant 29 : index
      %109 = memref.load %arg3[%c29] : memref<98xf32, #tpu.memory_space<smem>>
      %110 = vector.extract_strided_slice %88 {offsets = [4, 0], sizes = [16, 16], strides = [1, 1]} : vector<22x16xf32> to vector<16x16xf32>
      %111 = vector.broadcast %109 : f32 to vector<16x16xf32>
      %112 = arith.mulf %111, %110 : vector<16x16xf32>
      %113 = arith.addf %108, %112 : vector<16x16xf32>
      %c36 = arith.constant 36 : index
      %114 = memref.load %arg3[%c36] : memref<98xf32, #tpu.memory_space<smem>>
      %115 = vector.extract_strided_slice %88 {offsets = [5, 0], sizes = [16, 16], strides = [1, 1]} : vector<22x16xf32> to vector<16x16xf32>
      %116 = vector.broadcast %114 : f32 to vector<16x16xf32>
      %117 = arith.mulf %116, %115 : vector<16x16xf32>
      %118 = arith.addf %113, %117 : vector<16x16xf32>
      %c43 = arith.constant 43 : index
      %119 = memref.load %arg3[%c43] : memref<98xf32, #tpu.memory_space<smem>>
      %120 = vector.extract_strided_slice %88 {offsets = [6, 0], sizes = [16, 16], strides = [1, 1]} : vector<22x16xf32> to vector<16x16xf32>
      %121 = vector.broadcast %119 : f32 to vector<16x16xf32>
      %122 = arith.mulf %121, %120 : vector<16x16xf32>
      %123 = arith.addf %118, %122 : vector<16x16xf32>
      %c0_51 = arith.constant 0 : index
      %c0_52 = arith.constant 0 : index
      %c2 = arith.constant 2 : index
      %124 = vector.load %arg6[%c0_51, %c0_52, %c2] : memref<2x22x22xf32, #tpu.memory_space<vmem>>, vector<1x22x16xf32>
      %125 = vector.shape_cast %124 : vector<1x22x16xf32> to vector<22x16xf32>
      %c2_53 = arith.constant 2 : index
      %126 = memref.load %arg3[%c2_53] : memref<98xf32, #tpu.memory_space<smem>>
      %127 = vector.extract_strided_slice %125 {offsets = [0, 0], sizes = [16, 16], strides = [1, 1]} : vector<22x16xf32> to vector<16x16xf32>
      %128 = vector.broadcast %126 : f32 to vector<16x16xf32>
      %129 = arith.mulf %128, %127 : vector<16x16xf32>
      %130 = arith.addf %123, %129 : vector<16x16xf32>
      %c9 = arith.constant 9 : index
      %131 = memref.load %arg3[%c9] : memref<98xf32, #tpu.memory_space<smem>>
      %132 = vector.extract_strided_slice %125 {offsets = [1, 0], sizes = [16, 16], strides = [1, 1]} : vector<22x16xf32> to vector<16x16xf32>
      %133 = vector.broadcast %131 : f32 to vector<16x16xf32>
      %134 = arith.mulf %133, %132 : vector<16x16xf32>
      %135 = arith.addf %130, %134 : vector<16x16xf32>
      %c16 = arith.constant 16 : index
      %136 = memref.load %arg3[%c16] : memref<98xf32, #tpu.memory_space<smem>>
      %137 = vector.extract_strided_slice %125 {offsets = [2, 0], sizes = [16, 16], strides = [1, 1]} : vector<22x16xf32> to vector<16x16xf32>
      %138 = vector.broadcast %136 : f32 to vector<16x16xf32>
      %139 = arith.mulf %138, %137 : vector<16x16xf32>
      %140 = arith.addf %135, %139 : vector<16x16xf32>
      %c23 = arith.constant 23 : index
      %141 = memref.load %arg3[%c23] : memref<98xf32, #tpu.memory_space<smem>>
      %142 = vector.extract_strided_slice %125 {offsets = [3, 0], sizes = [16, 16], strides = [1, 1]} : vector<22x16xf32> to vector<16x16xf32>
      %143 = vector.broadcast %141 : f32 to vector<16x16xf32>
      %144 = arith.mulf %143, %142 : vector<16x16xf32>
      %145 = arith.addf %140, %144 : vector<16x16xf32>
      %c30 = arith.constant 30 : index
      %146 = memref.load %arg3[%c30] : memref<98xf32, #tpu.memory_space<smem>>
      %147 = vector.extract_strided_slice %125 {offsets = [4, 0], sizes = [16, 16], strides = [1, 1]} : vector<22x16xf32> to vector<16x16xf32>
      %148 = vector.broadcast %146 : f32 to vector<16x16xf32>
      %149 = arith.mulf %148, %147 : vector<16x16xf32>
      %150 = arith.addf %145, %149 : vector<16x16xf32>
      %c37 = arith.constant 37 : index
      %151 = memref.load %arg3[%c37] : memref<98xf32, #tpu.memory_space<smem>>
      %152 = vector.extract_strided_slice %125 {offsets = [5, 0], sizes = [16, 16], strides = [1, 1]} : vector<22x16xf32> to vector<16x16xf32>
      %153 = vector.broadcast %151 : f32 to vector<16x16xf32>
      %154 = arith.mulf %153, %152 : vector<16x16xf32>
      %155 = arith.addf %150, %154 : vector<16x16xf32>
      %c44 = arith.constant 44 : index
      %156 = memref.load %arg3[%c44] : memref<98xf32, #tpu.memory_space<smem>>
      %157 = vector.extract_strided_slice %125 {offsets = [6, 0], sizes = [16, 16], strides = [1, 1]} : vector<22x16xf32> to vector<16x16xf32>
      %158 = vector.broadcast %156 : f32 to vector<16x16xf32>
      %159 = arith.mulf %158, %157 : vector<16x16xf32>
      %160 = arith.addf %155, %159 : vector<16x16xf32>
      %c0_54 = arith.constant 0 : index
      %c0_55 = arith.constant 0 : index
      %c3_56 = arith.constant 3 : index
      %161 = vector.load %arg6[%c0_54, %c0_55, %c3_56] : memref<2x22x22xf32, #tpu.memory_space<vmem>>, vector<1x22x16xf32>
      %162 = vector.shape_cast %161 : vector<1x22x16xf32> to vector<22x16xf32>
      %c3_57 = arith.constant 3 : index
      %163 = memref.load %arg3[%c3_57] : memref<98xf32, #tpu.memory_space<smem>>
      %164 = vector.extract_strided_slice %162 {offsets = [0, 0], sizes = [16, 16], strides = [1, 1]} : vector<22x16xf32> to vector<16x16xf32>
      %165 = vector.broadcast %163 : f32 to vector<16x16xf32>
      %166 = arith.mulf %165, %164 : vector<16x16xf32>
      %167 = arith.addf %160, %166 : vector<16x16xf32>
      %c10 = arith.constant 10 : index
      %168 = memref.load %arg3[%c10] : memref<98xf32, #tpu.memory_space<smem>>
      %169 = vector.extract_strided_slice %162 {offsets = [1, 0], sizes = [16, 16], strides = [1, 1]} : vector<22x16xf32> to vector<16x16xf32>
      %170 = vector.broadcast %168 : f32 to vector<16x16xf32>
      %171 = arith.mulf %170, %169 : vector<16x16xf32>
      %172 = arith.addf %167, %171 : vector<16x16xf32>
      %c17 = arith.constant 17 : index
      %173 = memref.load %arg3[%c17] : memref<98xf32, #tpu.memory_space<smem>>
      %174 = vector.extract_strided_slice %162 {offsets = [2, 0], sizes = [16, 16], strides = [1, 1]} : vector<22x16xf32> to vector<16x16xf32>
      %175 = vector.broadcast %173 : f32 to vector<16x16xf32>
      %176 = arith.mulf %175, %174 : vector<16x16xf32>
      %177 = arith.addf %172, %176 : vector<16x16xf32>
      %c24 = arith.constant 24 : index
      %178 = memref.load %arg3[%c24] : memref<98xf32, #tpu.memory_space<smem>>
      %179 = vector.extract_strided_slice %162 {offsets = [3, 0], sizes = [16, 16], strides = [1, 1]} : vector<22x16xf32> to vector<16x16xf32>
      %180 = vector.broadcast %178 : f32 to vector<16x16xf32>
      %181 = arith.mulf %180, %179 : vector<16x16xf32>
      %182 = arith.addf %177, %181 : vector<16x16xf32>
      %c31 = arith.constant 31 : index
      %183 = memref.load %arg3[%c31] : memref<98xf32, #tpu.memory_space<smem>>
      %184 = vector.extract_strided_slice %162 {offsets = [4, 0], sizes = [16, 16], strides = [1, 1]} : vector<22x16xf32> to vector<16x16xf32>
      %185 = vector.broadcast %183 : f32 to vector<16x16xf32>
      %186 = arith.mulf %185, %184 : vector<16x16xf32>
      %187 = arith.addf %182, %186 : vector<16x16xf32>
      %c38 = arith.constant 38 : index
      %188 = memref.load %arg3[%c38] : memref<98xf32, #tpu.memory_space<smem>>
      %189 = vector.extract_strided_slice %162 {offsets = [5, 0], sizes = [16, 16], strides = [1, 1]} : vector<22x16xf32> to vector<16x16xf32>
      %190 = vector.broadcast %188 : f32 to vector<16x16xf32>
      %191 = arith.mulf %190, %189 : vector<16x16xf32>
      %192 = arith.addf %187, %191 : vector<16x16xf32>
      %c45 = arith.constant 45 : index
      %193 = memref.load %arg3[%c45] : memref<98xf32, #tpu.memory_space<smem>>
      %194 = vector.extract_strided_slice %162 {offsets = [6, 0], sizes = [16, 16], strides = [1, 1]} : vector<22x16xf32> to vector<16x16xf32>
      %195 = vector.broadcast %193 : f32 to vector<16x16xf32>
      %196 = arith.mulf %195, %194 : vector<16x16xf32>
      %197 = arith.addf %192, %196 : vector<16x16xf32>
      %c0_58 = arith.constant 0 : index
      %c0_59 = arith.constant 0 : index
      %c4 = arith.constant 4 : index
      %198 = vector.load %arg6[%c0_58, %c0_59, %c4] : memref<2x22x22xf32, #tpu.memory_space<vmem>>, vector<1x22x16xf32>
      %199 = vector.shape_cast %198 : vector<1x22x16xf32> to vector<22x16xf32>
      %c4_60 = arith.constant 4 : index
      %200 = memref.load %arg3[%c4_60] : memref<98xf32, #tpu.memory_space<smem>>
      %201 = vector.extract_strided_slice %199 {offsets = [0, 0], sizes = [16, 16], strides = [1, 1]} : vector<22x16xf32> to vector<16x16xf32>
      %202 = vector.broadcast %200 : f32 to vector<16x16xf32>
      %203 = arith.mulf %202, %201 : vector<16x16xf32>
      %204 = arith.addf %197, %203 : vector<16x16xf32>
      %c11 = arith.constant 11 : index
      %205 = memref.load %arg3[%c11] : memref<98xf32, #tpu.memory_space<smem>>
      %206 = vector.extract_strided_slice %199 {offsets = [1, 0], sizes = [16, 16], strides = [1, 1]} : vector<22x16xf32> to vector<16x16xf32>
      %207 = vector.broadcast %205 : f32 to vector<16x16xf32>
      %208 = arith.mulf %207, %206 : vector<16x16xf32>
      %209 = arith.addf %204, %208 : vector<16x16xf32>
      %c18 = arith.constant 18 : index
      %210 = memref.load %arg3[%c18] : memref<98xf32, #tpu.memory_space<smem>>
      %211 = vector.extract_strided_slice %199 {offsets = [2, 0], sizes = [16, 16], strides = [1, 1]} : vector<22x16xf32> to vector<16x16xf32>
      %212 = vector.broadcast %210 : f32 to vector<16x16xf32>
      %213 = arith.mulf %212, %211 : vector<16x16xf32>
      %214 = arith.addf %209, %213 : vector<16x16xf32>
      %c25 = arith.constant 25 : index
      %215 = memref.load %arg3[%c25] : memref<98xf32, #tpu.memory_space<smem>>
      %216 = vector.extract_strided_slice %199 {offsets = [3, 0], sizes = [16, 16], strides = [1, 1]} : vector<22x16xf32> to vector<16x16xf32>
      %217 = vector.broadcast %215 : f32 to vector<16x16xf32>
      %218 = arith.mulf %217, %216 : vector<16x16xf32>
      %219 = arith.addf %214, %218 : vector<16x16xf32>
      %c32 = arith.constant 32 : index
      %220 = memref.load %arg3[%c32] : memref<98xf32, #tpu.memory_space<smem>>
      %221 = vector.extract_strided_slice %199 {offsets = [4, 0], sizes = [16, 16], strides = [1, 1]} : vector<22x16xf32> to vector<16x16xf32>
      %222 = vector.broadcast %220 : f32 to vector<16x16xf32>
      %223 = arith.mulf %222, %221 : vector<16x16xf32>
      %224 = arith.addf %219, %223 : vector<16x16xf32>
      %c39 = arith.constant 39 : index
      %225 = memref.load %arg3[%c39] : memref<98xf32, #tpu.memory_space<smem>>
      %226 = vector.extract_strided_slice %199 {offsets = [5, 0], sizes = [16, 16], strides = [1, 1]} : vector<22x16xf32> to vector<16x16xf32>
      %227 = vector.broadcast %225 : f32 to vector<16x16xf32>
      %228 = arith.mulf %227, %226 : vector<16x16xf32>
      %229 = arith.addf %224, %228 : vector<16x16xf32>
      %c46 = arith.constant 46 : index
      %230 = memref.load %arg3[%c46] : memref<98xf32, #tpu.memory_space<smem>>
      %231 = vector.extract_strided_slice %199 {offsets = [6, 0], sizes = [16, 16], strides = [1, 1]} : vector<22x16xf32> to vector<16x16xf32>
      %232 = vector.broadcast %230 : f32 to vector<16x16xf32>
      %233 = arith.mulf %232, %231 : vector<16x16xf32>
      %234 = arith.addf %229, %233 : vector<16x16xf32>
      %c0_61 = arith.constant 0 : index
      %c0_62 = arith.constant 0 : index
      %c5 = arith.constant 5 : index
      %235 = vector.load %arg6[%c0_61, %c0_62, %c5] : memref<2x22x22xf32, #tpu.memory_space<vmem>>, vector<1x22x16xf32>
      %236 = vector.shape_cast %235 : vector<1x22x16xf32> to vector<22x16xf32>
      %c5_63 = arith.constant 5 : index
      %237 = memref.load %arg3[%c5_63] : memref<98xf32, #tpu.memory_space<smem>>
      %238 = vector.extract_strided_slice %236 {offsets = [0, 0], sizes = [16, 16], strides = [1, 1]} : vector<22x16xf32> to vector<16x16xf32>
      %239 = vector.broadcast %237 : f32 to vector<16x16xf32>
      %240 = arith.mulf %239, %238 : vector<16x16xf32>
      %241 = arith.addf %234, %240 : vector<16x16xf32>
      %c12 = arith.constant 12 : index
      %242 = memref.load %arg3[%c12] : memref<98xf32, #tpu.memory_space<smem>>
      %243 = vector.extract_strided_slice %236 {offsets = [1, 0], sizes = [16, 16], strides = [1, 1]} : vector<22x16xf32> to vector<16x16xf32>
      %244 = vector.broadcast %242 : f32 to vector<16x16xf32>
      %245 = arith.mulf %244, %243 : vector<16x16xf32>
      %246 = arith.addf %241, %245 : vector<16x16xf32>
      %c19 = arith.constant 19 : index
      %247 = memref.load %arg3[%c19] : memref<98xf32, #tpu.memory_space<smem>>
      %248 = vector.extract_strided_slice %236 {offsets = [2, 0], sizes = [16, 16], strides = [1, 1]} : vector<22x16xf32> to vector<16x16xf32>
      %249 = vector.broadcast %247 : f32 to vector<16x16xf32>
      %250 = arith.mulf %249, %248 : vector<16x16xf32>
      %251 = arith.addf %246, %250 : vector<16x16xf32>
      %c26 = arith.constant 26 : index
      %252 = memref.load %arg3[%c26] : memref<98xf32, #tpu.memory_space<smem>>
      %253 = vector.extract_strided_slice %236 {offsets = [3, 0], sizes = [16, 16], strides = [1, 1]} : vector<22x16xf32> to vector<16x16xf32>
      %254 = vector.broadcast %252 : f32 to vector<16x16xf32>
      %255 = arith.mulf %254, %253 : vector<16x16xf32>
      %256 = arith.addf %251, %255 : vector<16x16xf32>
      %c33 = arith.constant 33 : index
      %257 = memref.load %arg3[%c33] : memref<98xf32, #tpu.memory_space<smem>>
      %258 = vector.extract_strided_slice %236 {offsets = [4, 0], sizes = [16, 16], strides = [1, 1]} : vector<22x16xf32> to vector<16x16xf32>
      %259 = vector.broadcast %257 : f32 to vector<16x16xf32>
      %260 = arith.mulf %259, %258 : vector<16x16xf32>
      %261 = arith.addf %256, %260 : vector<16x16xf32>
      %c40 = arith.constant 40 : index
      %262 = memref.load %arg3[%c40] : memref<98xf32, #tpu.memory_space<smem>>
      %263 = vector.extract_strided_slice %236 {offsets = [5, 0], sizes = [16, 16], strides = [1, 1]} : vector<22x16xf32> to vector<16x16xf32>
      %264 = vector.broadcast %262 : f32 to vector<16x16xf32>
      %265 = arith.mulf %264, %263 : vector<16x16xf32>
      %266 = arith.addf %261, %265 : vector<16x16xf32>
      %c47 = arith.constant 47 : index
      %267 = memref.load %arg3[%c47] : memref<98xf32, #tpu.memory_space<smem>>
      %268 = vector.extract_strided_slice %236 {offsets = [6, 0], sizes = [16, 16], strides = [1, 1]} : vector<22x16xf32> to vector<16x16xf32>
      %269 = vector.broadcast %267 : f32 to vector<16x16xf32>
      %270 = arith.mulf %269, %268 : vector<16x16xf32>
      %271 = arith.addf %266, %270 : vector<16x16xf32>
      %c0_64 = arith.constant 0 : index
      %c0_65 = arith.constant 0 : index
      %c6 = arith.constant 6 : index
      %272 = vector.load %arg6[%c0_64, %c0_65, %c6] : memref<2x22x22xf32, #tpu.memory_space<vmem>>, vector<1x22x16xf32>
      %273 = vector.shape_cast %272 : vector<1x22x16xf32> to vector<22x16xf32>
      %c6_66 = arith.constant 6 : index
      %274 = memref.load %arg3[%c6_66] : memref<98xf32, #tpu.memory_space<smem>>
      %275 = vector.extract_strided_slice %273 {offsets = [0, 0], sizes = [16, 16], strides = [1, 1]} : vector<22x16xf32> to vector<16x16xf32>
      %276 = vector.broadcast %274 : f32 to vector<16x16xf32>
      %277 = arith.mulf %276, %275 : vector<16x16xf32>
      %278 = arith.addf %271, %277 : vector<16x16xf32>
      %c13 = arith.constant 13 : index
      %279 = memref.load %arg3[%c13] : memref<98xf32, #tpu.memory_space<smem>>
      %280 = vector.extract_strided_slice %273 {offsets = [1, 0], sizes = [16, 16], strides = [1, 1]} : vector<22x16xf32> to vector<16x16xf32>
      %281 = vector.broadcast %279 : f32 to vector<16x16xf32>
      %282 = arith.mulf %281, %280 : vector<16x16xf32>
      %283 = arith.addf %278, %282 : vector<16x16xf32>
      %c20 = arith.constant 20 : index
      %284 = memref.load %arg3[%c20] : memref<98xf32, #tpu.memory_space<smem>>
      %285 = vector.extract_strided_slice %273 {offsets = [2, 0], sizes = [16, 16], strides = [1, 1]} : vector<22x16xf32> to vector<16x16xf32>
      %286 = vector.broadcast %284 : f32 to vector<16x16xf32>
      %287 = arith.mulf %286, %285 : vector<16x16xf32>
      %288 = arith.addf %283, %287 : vector<16x16xf32>
      %c27 = arith.constant 27 : index
      %289 = memref.load %arg3[%c27] : memref<98xf32, #tpu.memory_space<smem>>
      %290 = vector.extract_strided_slice %273 {offsets = [3, 0], sizes = [16, 16], strides = [1, 1]} : vector<22x16xf32> to vector<16x16xf32>
      %291 = vector.broadcast %289 : f32 to vector<16x16xf32>
      %292 = arith.mulf %291, %290 : vector<16x16xf32>
      %293 = arith.addf %288, %292 : vector<16x16xf32>
      %c34 = arith.constant 34 : index
      %294 = memref.load %arg3[%c34] : memref<98xf32, #tpu.memory_space<smem>>
      %295 = vector.extract_strided_slice %273 {offsets = [4, 0], sizes = [16, 16], strides = [1, 1]} : vector<22x16xf32> to vector<16x16xf32>
      %296 = vector.broadcast %294 : f32 to vector<16x16xf32>
      %297 = arith.mulf %296, %295 : vector<16x16xf32>
      %298 = arith.addf %293, %297 : vector<16x16xf32>
      %c41 = arith.constant 41 : index
      %299 = memref.load %arg3[%c41] : memref<98xf32, #tpu.memory_space<smem>>
      %300 = vector.extract_strided_slice %273 {offsets = [5, 0], sizes = [16, 16], strides = [1, 1]} : vector<22x16xf32> to vector<16x16xf32>
      %301 = vector.broadcast %299 : f32 to vector<16x16xf32>
      %302 = arith.mulf %301, %300 : vector<16x16xf32>
      %303 = arith.addf %298, %302 : vector<16x16xf32>
      %c48 = arith.constant 48 : index
      %304 = memref.load %arg3[%c48] : memref<98xf32, #tpu.memory_space<smem>>
      %305 = vector.extract_strided_slice %273 {offsets = [6, 0], sizes = [16, 16], strides = [1, 1]} : vector<22x16xf32> to vector<16x16xf32>
      %306 = vector.broadcast %304 : f32 to vector<16x16xf32>
      %307 = arith.mulf %306, %305 : vector<16x16xf32>
      %308 = arith.addf %303, %307 : vector<16x16xf32>
      %c1_67 = arith.constant 1 : index
      %c0_68 = arith.constant 0 : index
      %c0_69 = arith.constant 0 : index
      %309 = vector.load %arg6[%c1_67, %c0_68, %c0_69] : memref<2x22x22xf32, #tpu.memory_space<vmem>>, vector<1x22x16xf32>
      %310 = vector.shape_cast %309 : vector<1x22x16xf32> to vector<22x16xf32>
      %c49 = arith.constant 49 : index
      %311 = memref.load %arg3[%c49] : memref<98xf32, #tpu.memory_space<smem>>
      %312 = vector.extract_strided_slice %310 {offsets = [0, 0], sizes = [16, 16], strides = [1, 1]} : vector<22x16xf32> to vector<16x16xf32>
      %313 = vector.broadcast %311 : f32 to vector<16x16xf32>
      %314 = arith.mulf %313, %312 : vector<16x16xf32>
      %315 = arith.addf %308, %314 : vector<16x16xf32>
      %c56 = arith.constant 56 : index
      %316 = memref.load %arg3[%c56] : memref<98xf32, #tpu.memory_space<smem>>
      %317 = vector.extract_strided_slice %310 {offsets = [1, 0], sizes = [16, 16], strides = [1, 1]} : vector<22x16xf32> to vector<16x16xf32>
      %318 = vector.broadcast %316 : f32 to vector<16x16xf32>
      %319 = arith.mulf %318, %317 : vector<16x16xf32>
      %320 = arith.addf %315, %319 : vector<16x16xf32>
      %c63 = arith.constant 63 : index
      %321 = memref.load %arg3[%c63] : memref<98xf32, #tpu.memory_space<smem>>
      %322 = vector.extract_strided_slice %310 {offsets = [2, 0], sizes = [16, 16], strides = [1, 1]} : vector<22x16xf32> to vector<16x16xf32>
      %323 = vector.broadcast %321 : f32 to vector<16x16xf32>
      %324 = arith.mulf %323, %322 : vector<16x16xf32>
      %325 = arith.addf %320, %324 : vector<16x16xf32>
      %c70 = arith.constant 70 : index
      %326 = memref.load %arg3[%c70] : memref<98xf32, #tpu.memory_space<smem>>
      %327 = vector.extract_strided_slice %310 {offsets = [3, 0], sizes = [16, 16], strides = [1, 1]} : vector<22x16xf32> to vector<16x16xf32>
      %328 = vector.broadcast %326 : f32 to vector<16x16xf32>
      %329 = arith.mulf %328, %327 : vector<16x16xf32>
      %330 = arith.addf %325, %329 : vector<16x16xf32>
      %c77 = arith.constant 77 : index
      %331 = memref.load %arg3[%c77] : memref<98xf32, #tpu.memory_space<smem>>
      %332 = vector.extract_strided_slice %310 {offsets = [4, 0], sizes = [16, 16], strides = [1, 1]} : vector<22x16xf32> to vector<16x16xf32>
      %333 = vector.broadcast %331 : f32 to vector<16x16xf32>
      %334 = arith.mulf %333, %332 : vector<16x16xf32>
      %335 = arith.addf %330, %334 : vector<16x16xf32>
      %c84 = arith.constant 84 : index
      %336 = memref.load %arg3[%c84] : memref<98xf32, #tpu.memory_space<smem>>
      %337 = vector.extract_strided_slice %310 {offsets = [5, 0], sizes = [16, 16], strides = [1, 1]} : vector<22x16xf32> to vector<16x16xf32>
      %338 = vector.broadcast %336 : f32 to vector<16x16xf32>
      %339 = arith.mulf %338, %337 : vector<16x16xf32>
      %340 = arith.addf %335, %339 : vector<16x16xf32>
      %c91 = arith.constant 91 : index
      %341 = memref.load %arg3[%c91] : memref<98xf32, #tpu.memory_space<smem>>
      %342 = vector.extract_strided_slice %310 {offsets = [6, 0], sizes = [16, 16], strides = [1, 1]} : vector<22x16xf32> to vector<16x16xf32>
      %343 = vector.broadcast %341 : f32 to vector<16x16xf32>
      %344 = arith.mulf %343, %342 : vector<16x16xf32>
      %345 = arith.addf %340, %344 : vector<16x16xf32>
      %c1_70 = arith.constant 1 : index
      %c0_71 = arith.constant 0 : index
      %c1_72 = arith.constant 1 : index
      %346 = vector.load %arg6[%c1_70, %c0_71, %c1_72] : memref<2x22x22xf32, #tpu.memory_space<vmem>>, vector<1x22x16xf32>
      %347 = vector.shape_cast %346 : vector<1x22x16xf32> to vector<22x16xf32>
      %c50 = arith.constant 50 : index
      %348 = memref.load %arg3[%c50] : memref<98xf32, #tpu.memory_space<smem>>
      %349 = vector.extract_strided_slice %347 {offsets = [0, 0], sizes = [16, 16], strides = [1, 1]} : vector<22x16xf32> to vector<16x16xf32>
      %350 = vector.broadcast %348 : f32 to vector<16x16xf32>
      %351 = arith.mulf %350, %349 : vector<16x16xf32>
      %352 = arith.addf %345, %351 : vector<16x16xf32>
      %c57 = arith.constant 57 : index
      %353 = memref.load %arg3[%c57] : memref<98xf32, #tpu.memory_space<smem>>
      %354 = vector.extract_strided_slice %347 {offsets = [1, 0], sizes = [16, 16], strides = [1, 1]} : vector<22x16xf32> to vector<16x16xf32>
      %355 = vector.broadcast %353 : f32 to vector<16x16xf32>
      %356 = arith.mulf %355, %354 : vector<16x16xf32>
      %357 = arith.addf %352, %356 : vector<16x16xf32>
      %c64 = arith.constant 64 : index
      %358 = memref.load %arg3[%c64] : memref<98xf32, #tpu.memory_space<smem>>
      %359 = vector.extract_strided_slice %347 {offsets = [2, 0], sizes = [16, 16], strides = [1, 1]} : vector<22x16xf32> to vector<16x16xf32>
      %360 = vector.broadcast %358 : f32 to vector<16x16xf32>
      %361 = arith.mulf %360, %359 : vector<16x16xf32>
      %362 = arith.addf %357, %361 : vector<16x16xf32>
      %c71 = arith.constant 71 : index
      %363 = memref.load %arg3[%c71] : memref<98xf32, #tpu.memory_space<smem>>
      %364 = vector.extract_strided_slice %347 {offsets = [3, 0], sizes = [16, 16], strides = [1, 1]} : vector<22x16xf32> to vector<16x16xf32>
      %365 = vector.broadcast %363 : f32 to vector<16x16xf32>
      %366 = arith.mulf %365, %364 : vector<16x16xf32>
      %367 = arith.addf %362, %366 : vector<16x16xf32>
      %c78 = arith.constant 78 : index
      %368 = memref.load %arg3[%c78] : memref<98xf32, #tpu.memory_space<smem>>
      %369 = vector.extract_strided_slice %347 {offsets = [4, 0], sizes = [16, 16], strides = [1, 1]} : vector<22x16xf32> to vector<16x16xf32>
      %370 = vector.broadcast %368 : f32 to vector<16x16xf32>
      %371 = arith.mulf %370, %369 : vector<16x16xf32>
      %372 = arith.addf %367, %371 : vector<16x16xf32>
      %c85 = arith.constant 85 : index
      %373 = memref.load %arg3[%c85] : memref<98xf32, #tpu.memory_space<smem>>
      %374 = vector.extract_strided_slice %347 {offsets = [5, 0], sizes = [16, 16], strides = [1, 1]} : vector<22x16xf32> to vector<16x16xf32>
      %375 = vector.broadcast %373 : f32 to vector<16x16xf32>
      %376 = arith.mulf %375, %374 : vector<16x16xf32>
      %377 = arith.addf %372, %376 : vector<16x16xf32>
      %c92 = arith.constant 92 : index
      %378 = memref.load %arg3[%c92] : memref<98xf32, #tpu.memory_space<smem>>
      %379 = vector.extract_strided_slice %347 {offsets = [6, 0], sizes = [16, 16], strides = [1, 1]} : vector<22x16xf32> to vector<16x16xf32>
      %380 = vector.broadcast %378 : f32 to vector<16x16xf32>
      %381 = arith.mulf %380, %379 : vector<16x16xf32>
      %382 = arith.addf %377, %381 : vector<16x16xf32>
      %c1_73 = arith.constant 1 : index
      %c0_74 = arith.constant 0 : index
      %c2_75 = arith.constant 2 : index
      %383 = vector.load %arg6[%c1_73, %c0_74, %c2_75] : memref<2x22x22xf32, #tpu.memory_space<vmem>>, vector<1x22x16xf32>
      %384 = vector.shape_cast %383 : vector<1x22x16xf32> to vector<22x16xf32>
      %c51 = arith.constant 51 : index
      %385 = memref.load %arg3[%c51] : memref<98xf32, #tpu.memory_space<smem>>
      %386 = vector.extract_strided_slice %384 {offsets = [0, 0], sizes = [16, 16], strides = [1, 1]} : vector<22x16xf32> to vector<16x16xf32>
      %387 = vector.broadcast %385 : f32 to vector<16x16xf32>
      %388 = arith.mulf %387, %386 : vector<16x16xf32>
      %389 = arith.addf %382, %388 : vector<16x16xf32>
      %c58 = arith.constant 58 : index
      %390 = memref.load %arg3[%c58] : memref<98xf32, #tpu.memory_space<smem>>
      %391 = vector.extract_strided_slice %384 {offsets = [1, 0], sizes = [16, 16], strides = [1, 1]} : vector<22x16xf32> to vector<16x16xf32>
      %392 = vector.broadcast %390 : f32 to vector<16x16xf32>
      %393 = arith.mulf %392, %391 : vector<16x16xf32>
      %394 = arith.addf %389, %393 : vector<16x16xf32>
      %c65 = arith.constant 65 : index
      %395 = memref.load %arg3[%c65] : memref<98xf32, #tpu.memory_space<smem>>
      %396 = vector.extract_strided_slice %384 {offsets = [2, 0], sizes = [16, 16], strides = [1, 1]} : vector<22x16xf32> to vector<16x16xf32>
      %397 = vector.broadcast %395 : f32 to vector<16x16xf32>
      %398 = arith.mulf %397, %396 : vector<16x16xf32>
      %399 = arith.addf %394, %398 : vector<16x16xf32>
      %c72 = arith.constant 72 : index
      %400 = memref.load %arg3[%c72] : memref<98xf32, #tpu.memory_space<smem>>
      %401 = vector.extract_strided_slice %384 {offsets = [3, 0], sizes = [16, 16], strides = [1, 1]} : vector<22x16xf32> to vector<16x16xf32>
      %402 = vector.broadcast %400 : f32 to vector<16x16xf32>
      %403 = arith.mulf %402, %401 : vector<16x16xf32>
      %404 = arith.addf %399, %403 : vector<16x16xf32>
      %c79 = arith.constant 79 : index
      %405 = memref.load %arg3[%c79] : memref<98xf32, #tpu.memory_space<smem>>
      %406 = vector.extract_strided_slice %384 {offsets = [4, 0], sizes = [16, 16], strides = [1, 1]} : vector<22x16xf32> to vector<16x16xf32>
      %407 = vector.broadcast %405 : f32 to vector<16x16xf32>
      %408 = arith.mulf %407, %406 : vector<16x16xf32>
      %409 = arith.addf %404, %408 : vector<16x16xf32>
      %c86 = arith.constant 86 : index
      %410 = memref.load %arg3[%c86] : memref<98xf32, #tpu.memory_space<smem>>
      %411 = vector.extract_strided_slice %384 {offsets = [5, 0], sizes = [16, 16], strides = [1, 1]} : vector<22x16xf32> to vector<16x16xf32>
      %412 = vector.broadcast %410 : f32 to vector<16x16xf32>
      %413 = arith.mulf %412, %411 : vector<16x16xf32>
      %414 = arith.addf %409, %413 : vector<16x16xf32>
      %c93 = arith.constant 93 : index
      %415 = memref.load %arg3[%c93] : memref<98xf32, #tpu.memory_space<smem>>
      %416 = vector.extract_strided_slice %384 {offsets = [6, 0], sizes = [16, 16], strides = [1, 1]} : vector<22x16xf32> to vector<16x16xf32>
      %417 = vector.broadcast %415 : f32 to vector<16x16xf32>
      %418 = arith.mulf %417, %416 : vector<16x16xf32>
      %419 = arith.addf %414, %418 : vector<16x16xf32>
      %c1_76 = arith.constant 1 : index
      %c0_77 = arith.constant 0 : index
      %c3_78 = arith.constant 3 : index
      %420 = vector.load %arg6[%c1_76, %c0_77, %c3_78] : memref<2x22x22xf32, #tpu.memory_space<vmem>>, vector<1x22x16xf32>
      %421 = vector.shape_cast %420 : vector<1x22x16xf32> to vector<22x16xf32>
      %c52 = arith.constant 52 : index
      %422 = memref.load %arg3[%c52] : memref<98xf32, #tpu.memory_space<smem>>
      %423 = vector.extract_strided_slice %421 {offsets = [0, 0], sizes = [16, 16], strides = [1, 1]} : vector<22x16xf32> to vector<16x16xf32>
      %424 = vector.broadcast %422 : f32 to vector<16x16xf32>
      %425 = arith.mulf %424, %423 : vector<16x16xf32>
      %426 = arith.addf %419, %425 : vector<16x16xf32>
      %c59 = arith.constant 59 : index
      %427 = memref.load %arg3[%c59] : memref<98xf32, #tpu.memory_space<smem>>
      %428 = vector.extract_strided_slice %421 {offsets = [1, 0], sizes = [16, 16], strides = [1, 1]} : vector<22x16xf32> to vector<16x16xf32>
      %429 = vector.broadcast %427 : f32 to vector<16x16xf32>
      %430 = arith.mulf %429, %428 : vector<16x16xf32>
      %431 = arith.addf %426, %430 : vector<16x16xf32>
      %c66 = arith.constant 66 : index
      %432 = memref.load %arg3[%c66] : memref<98xf32, #tpu.memory_space<smem>>
      %433 = vector.extract_strided_slice %421 {offsets = [2, 0], sizes = [16, 16], strides = [1, 1]} : vector<22x16xf32> to vector<16x16xf32>
      %434 = vector.broadcast %432 : f32 to vector<16x16xf32>
      %435 = arith.mulf %434, %433 : vector<16x16xf32>
      %436 = arith.addf %431, %435 : vector<16x16xf32>
      %c73 = arith.constant 73 : index
      %437 = memref.load %arg3[%c73] : memref<98xf32, #tpu.memory_space<smem>>
      %438 = vector.extract_strided_slice %421 {offsets = [3, 0], sizes = [16, 16], strides = [1, 1]} : vector<22x16xf32> to vector<16x16xf32>
      %439 = vector.broadcast %437 : f32 to vector<16x16xf32>
      %440 = arith.mulf %439, %438 : vector<16x16xf32>
      %441 = arith.addf %436, %440 : vector<16x16xf32>
      %c80 = arith.constant 80 : index
      %442 = memref.load %arg3[%c80] : memref<98xf32, #tpu.memory_space<smem>>
      %443 = vector.extract_strided_slice %421 {offsets = [4, 0], sizes = [16, 16], strides = [1, 1]} : vector<22x16xf32> to vector<16x16xf32>
      %444 = vector.broadcast %442 : f32 to vector<16x16xf32>
      %445 = arith.mulf %444, %443 : vector<16x16xf32>
      %446 = arith.addf %441, %445 : vector<16x16xf32>
      %c87 = arith.constant 87 : index
      %447 = memref.load %arg3[%c87] : memref<98xf32, #tpu.memory_space<smem>>
      %448 = vector.extract_strided_slice %421 {offsets = [5, 0], sizes = [16, 16], strides = [1, 1]} : vector<22x16xf32> to vector<16x16xf32>
      %449 = vector.broadcast %447 : f32 to vector<16x16xf32>
      %450 = arith.mulf %449, %448 : vector<16x16xf32>
      %451 = arith.addf %446, %450 : vector<16x16xf32>
      %c94 = arith.constant 94 : index
      %452 = memref.load %arg3[%c94] : memref<98xf32, #tpu.memory_space<smem>>
      %453 = vector.extract_strided_slice %421 {offsets = [6, 0], sizes = [16, 16], strides = [1, 1]} : vector<22x16xf32> to vector<16x16xf32>
      %454 = vector.broadcast %452 : f32 to vector<16x16xf32>
      %455 = arith.mulf %454, %453 : vector<16x16xf32>
      %456 = arith.addf %451, %455 : vector<16x16xf32>
      %c1_79 = arith.constant 1 : index
      %c0_80 = arith.constant 0 : index
      %c4_81 = arith.constant 4 : index
      %457 = vector.load %arg6[%c1_79, %c0_80, %c4_81] : memref<2x22x22xf32, #tpu.memory_space<vmem>>, vector<1x22x16xf32>
      %458 = vector.shape_cast %457 : vector<1x22x16xf32> to vector<22x16xf32>
      %c53 = arith.constant 53 : index
      %459 = memref.load %arg3[%c53] : memref<98xf32, #tpu.memory_space<smem>>
      %460 = vector.extract_strided_slice %458 {offsets = [0, 0], sizes = [16, 16], strides = [1, 1]} : vector<22x16xf32> to vector<16x16xf32>
      %461 = vector.broadcast %459 : f32 to vector<16x16xf32>
      %462 = arith.mulf %461, %460 : vector<16x16xf32>
      %463 = arith.addf %456, %462 : vector<16x16xf32>
      %c60 = arith.constant 60 : index
      %464 = memref.load %arg3[%c60] : memref<98xf32, #tpu.memory_space<smem>>
      %465 = vector.extract_strided_slice %458 {offsets = [1, 0], sizes = [16, 16], strides = [1, 1]} : vector<22x16xf32> to vector<16x16xf32>
      %466 = vector.broadcast %464 : f32 to vector<16x16xf32>
      %467 = arith.mulf %466, %465 : vector<16x16xf32>
      %468 = arith.addf %463, %467 : vector<16x16xf32>
      %c67 = arith.constant 67 : index
      %469 = memref.load %arg3[%c67] : memref<98xf32, #tpu.memory_space<smem>>
      %470 = vector.extract_strided_slice %458 {offsets = [2, 0], sizes = [16, 16], strides = [1, 1]} : vector<22x16xf32> to vector<16x16xf32>
      %471 = vector.broadcast %469 : f32 to vector<16x16xf32>
      %472 = arith.mulf %471, %470 : vector<16x16xf32>
      %473 = arith.addf %468, %472 : vector<16x16xf32>
      %c74 = arith.constant 74 : index
      %474 = memref.load %arg3[%c74] : memref<98xf32, #tpu.memory_space<smem>>
      %475 = vector.extract_strided_slice %458 {offsets = [3, 0], sizes = [16, 16], strides = [1, 1]} : vector<22x16xf32> to vector<16x16xf32>
      %476 = vector.broadcast %474 : f32 to vector<16x16xf32>
      %477 = arith.mulf %476, %475 : vector<16x16xf32>
      %478 = arith.addf %473, %477 : vector<16x16xf32>
      %c81 = arith.constant 81 : index
      %479 = memref.load %arg3[%c81] : memref<98xf32, #tpu.memory_space<smem>>
      %480 = vector.extract_strided_slice %458 {offsets = [4, 0], sizes = [16, 16], strides = [1, 1]} : vector<22x16xf32> to vector<16x16xf32>
      %481 = vector.broadcast %479 : f32 to vector<16x16xf32>
      %482 = arith.mulf %481, %480 : vector<16x16xf32>
      %483 = arith.addf %478, %482 : vector<16x16xf32>
      %c88 = arith.constant 88 : index
      %484 = memref.load %arg3[%c88] : memref<98xf32, #tpu.memory_space<smem>>
      %485 = vector.extract_strided_slice %458 {offsets = [5, 0], sizes = [16, 16], strides = [1, 1]} : vector<22x16xf32> to vector<16x16xf32>
      %486 = vector.broadcast %484 : f32 to vector<16x16xf32>
      %487 = arith.mulf %486, %485 : vector<16x16xf32>
      %488 = arith.addf %483, %487 : vector<16x16xf32>
      %c95 = arith.constant 95 : index
      %489 = memref.load %arg3[%c95] : memref<98xf32, #tpu.memory_space<smem>>
      %490 = vector.extract_strided_slice %458 {offsets = [6, 0], sizes = [16, 16], strides = [1, 1]} : vector<22x16xf32> to vector<16x16xf32>
      %491 = vector.broadcast %489 : f32 to vector<16x16xf32>
      %492 = arith.mulf %491, %490 : vector<16x16xf32>
      %493 = arith.addf %488, %492 : vector<16x16xf32>
      %c1_82 = arith.constant 1 : index
      %c0_83 = arith.constant 0 : index
      %c5_84 = arith.constant 5 : index
      %494 = vector.load %arg6[%c1_82, %c0_83, %c5_84] : memref<2x22x22xf32, #tpu.memory_space<vmem>>, vector<1x22x16xf32>
      %495 = vector.shape_cast %494 : vector<1x22x16xf32> to vector<22x16xf32>
      %c54 = arith.constant 54 : index
      %496 = memref.load %arg3[%c54] : memref<98xf32, #tpu.memory_space<smem>>
      %497 = vector.extract_strided_slice %495 {offsets = [0, 0], sizes = [16, 16], strides = [1, 1]} : vector<22x16xf32> to vector<16x16xf32>
      %498 = vector.broadcast %496 : f32 to vector<16x16xf32>
      %499 = arith.mulf %498, %497 : vector<16x16xf32>
      %500 = arith.addf %493, %499 : vector<16x16xf32>
      %c61 = arith.constant 61 : index
      %501 = memref.load %arg3[%c61] : memref<98xf32, #tpu.memory_space<smem>>
      %502 = vector.extract_strided_slice %495 {offsets = [1, 0], sizes = [16, 16], strides = [1, 1]} : vector<22x16xf32> to vector<16x16xf32>
      %503 = vector.broadcast %501 : f32 to vector<16x16xf32>
      %504 = arith.mulf %503, %502 : vector<16x16xf32>
      %505 = arith.addf %500, %504 : vector<16x16xf32>
      %c68 = arith.constant 68 : index
      %506 = memref.load %arg3[%c68] : memref<98xf32, #tpu.memory_space<smem>>
      %507 = vector.extract_strided_slice %495 {offsets = [2, 0], sizes = [16, 16], strides = [1, 1]} : vector<22x16xf32> to vector<16x16xf32>
      %508 = vector.broadcast %506 : f32 to vector<16x16xf32>
      %509 = arith.mulf %508, %507 : vector<16x16xf32>
      %510 = arith.addf %505, %509 : vector<16x16xf32>
      %c75 = arith.constant 75 : index
      %511 = memref.load %arg3[%c75] : memref<98xf32, #tpu.memory_space<smem>>
      %512 = vector.extract_strided_slice %495 {offsets = [3, 0], sizes = [16, 16], strides = [1, 1]} : vector<22x16xf32> to vector<16x16xf32>
      %513 = vector.broadcast %511 : f32 to vector<16x16xf32>
      %514 = arith.mulf %513, %512 : vector<16x16xf32>
      %515 = arith.addf %510, %514 : vector<16x16xf32>
      %c82 = arith.constant 82 : index
      %516 = memref.load %arg3[%c82] : memref<98xf32, #tpu.memory_space<smem>>
      %517 = vector.extract_strided_slice %495 {offsets = [4, 0], sizes = [16, 16], strides = [1, 1]} : vector<22x16xf32> to vector<16x16xf32>
      %518 = vector.broadcast %516 : f32 to vector<16x16xf32>
      %519 = arith.mulf %518, %517 : vector<16x16xf32>
      %520 = arith.addf %515, %519 : vector<16x16xf32>
      %c89 = arith.constant 89 : index
      %521 = memref.load %arg3[%c89] : memref<98xf32, #tpu.memory_space<smem>>
      %522 = vector.extract_strided_slice %495 {offsets = [5, 0], sizes = [16, 16], strides = [1, 1]} : vector<22x16xf32> to vector<16x16xf32>
      %523 = vector.broadcast %521 : f32 to vector<16x16xf32>
      %524 = arith.mulf %523, %522 : vector<16x16xf32>
      %525 = arith.addf %520, %524 : vector<16x16xf32>
      %c96 = arith.constant 96 : index
      %526 = memref.load %arg3[%c96] : memref<98xf32, #tpu.memory_space<smem>>
      %527 = vector.extract_strided_slice %495 {offsets = [6, 0], sizes = [16, 16], strides = [1, 1]} : vector<22x16xf32> to vector<16x16xf32>
      %528 = vector.broadcast %526 : f32 to vector<16x16xf32>
      %529 = arith.mulf %528, %527 : vector<16x16xf32>
      %530 = arith.addf %525, %529 : vector<16x16xf32>
      %c1_85 = arith.constant 1 : index
      %c0_86 = arith.constant 0 : index
      %c6_87 = arith.constant 6 : index
      %531 = vector.load %arg6[%c1_85, %c0_86, %c6_87] : memref<2x22x22xf32, #tpu.memory_space<vmem>>, vector<1x22x16xf32>
      %532 = vector.shape_cast %531 : vector<1x22x16xf32> to vector<22x16xf32>
      %c55 = arith.constant 55 : index
      %533 = memref.load %arg3[%c55] : memref<98xf32, #tpu.memory_space<smem>>
      %534 = vector.extract_strided_slice %532 {offsets = [0, 0], sizes = [16, 16], strides = [1, 1]} : vector<22x16xf32> to vector<16x16xf32>
      %535 = vector.broadcast %533 : f32 to vector<16x16xf32>
      %536 = arith.mulf %535, %534 : vector<16x16xf32>
      %537 = arith.addf %530, %536 : vector<16x16xf32>
      %c62 = arith.constant 62 : index
      %538 = memref.load %arg3[%c62] : memref<98xf32, #tpu.memory_space<smem>>
      %539 = vector.extract_strided_slice %532 {offsets = [1, 0], sizes = [16, 16], strides = [1, 1]} : vector<22x16xf32> to vector<16x16xf32>
      %540 = vector.broadcast %538 : f32 to vector<16x16xf32>
      %541 = arith.mulf %540, %539 : vector<16x16xf32>
      %542 = arith.addf %537, %541 : vector<16x16xf32>
      %c69 = arith.constant 69 : index
      %543 = memref.load %arg3[%c69] : memref<98xf32, #tpu.memory_space<smem>>
      %544 = vector.extract_strided_slice %532 {offsets = [2, 0], sizes = [16, 16], strides = [1, 1]} : vector<22x16xf32> to vector<16x16xf32>
      %545 = vector.broadcast %543 : f32 to vector<16x16xf32>
      %546 = arith.mulf %545, %544 : vector<16x16xf32>
      %547 = arith.addf %542, %546 : vector<16x16xf32>
      %c76 = arith.constant 76 : index
      %548 = memref.load %arg3[%c76] : memref<98xf32, #tpu.memory_space<smem>>
      %549 = vector.extract_strided_slice %532 {offsets = [3, 0], sizes = [16, 16], strides = [1, 1]} : vector<22x16xf32> to vector<16x16xf32>
      %550 = vector.broadcast %548 : f32 to vector<16x16xf32>
      %551 = arith.mulf %550, %549 : vector<16x16xf32>
      %552 = arith.addf %547, %551 : vector<16x16xf32>
      %c83 = arith.constant 83 : index
      %553 = memref.load %arg3[%c83] : memref<98xf32, #tpu.memory_space<smem>>
      %554 = vector.extract_strided_slice %532 {offsets = [4, 0], sizes = [16, 16], strides = [1, 1]} : vector<22x16xf32> to vector<16x16xf32>
      %555 = vector.broadcast %553 : f32 to vector<16x16xf32>
      %556 = arith.mulf %555, %554 : vector<16x16xf32>
      %557 = arith.addf %552, %556 : vector<16x16xf32>
      %c90 = arith.constant 90 : index
      %558 = memref.load %arg3[%c90] : memref<98xf32, #tpu.memory_space<smem>>
      %559 = vector.extract_strided_slice %532 {offsets = [5, 0], sizes = [16, 16], strides = [1, 1]} : vector<22x16xf32> to vector<16x16xf32>
      %560 = vector.broadcast %558 : f32 to vector<16x16xf32>
      %561 = arith.mulf %560, %559 : vector<16x16xf32>
      %562 = arith.addf %557, %561 : vector<16x16xf32>
      %c97 = arith.constant 97 : index
      %563 = memref.load %arg3[%c97] : memref<98xf32, #tpu.memory_space<smem>>
      %564 = vector.extract_strided_slice %532 {offsets = [6, 0], sizes = [16, 16], strides = [1, 1]} : vector<22x16xf32> to vector<16x16xf32>
      %565 = vector.broadcast %563 : f32 to vector<16x16xf32>
      %566 = arith.mulf %565, %564 : vector<16x16xf32>
      %567 = arith.addf %562, %566 : vector<16x16xf32>
      %c0_88 = arith.constant 0 : index
      %c0_89 = arith.constant 0 : index
      %c0_90 = arith.constant 0 : index
      %568 = vector.load %arg4[%c0_88, %c0_89, %c0_90] : memref<1x16x16xf32, #tpu.memory_space<vmem>>, vector<1x16x16xf32>
      %569 = vector.shape_cast %568 : vector<1x16x16xf32> to vector<16x16xf32>
      %570 = vector.shape_cast %567 : vector<16x16xf32> to vector<1x16x16xf32>
      tpu.vector_store %arg4[%c0_88, %c0_89, %c0_90], %570 {strides = array<i32>} : memref<1x16x16xf32, #tpu.memory_space<vmem>>, vector<1x16x16xf32>,
    } else {
    }
    return
  }
  func.func @transform_0(%arg0: i32, %arg1: i32) -> (i32, i32, i32, i32) {
    %c0_i32 = arith.constant 0 : i32
    %c0_i32_0 = arith.constant 0 : i32
    %c0_i32_1 = arith.constant 0 : i32
    return %arg0, %arg1, %c0_i32, %c0_i32_0 : i32, i32, i32, i32
  }
  func.func @transform_1(%arg0: i32, %arg1: i32) -> i32 {
    %c0_i32 = arith.constant 0 : i32
    %c0_i32_0 = arith.constant 0 : i32
    return %c0_i32 : i32
  }
  func.func @transform_2(%arg0: i32, %arg1: i32) -> (i32, i32, i32) {
    %c0_i32 = arith.constant 0 : i32
    %c0_i32_0 = arith.constant 0 : i32
    %c0_i32_1 = arith.constant 0 : i32
    return %arg0, %c0_i32, %c0_i32_0 : i32, i32, i32
  }
}

module attributes {stable_mosaic.version = 11 : i64} {
  func.func @_gate_kernel(%arg0: i32, %arg1: i32, %arg2: memref<1x1x256xf32, #tpu.memory_space<vmem>>, %arg3: memref<1x4x256xf32, #tpu.memory_space<vmem>>, %arg4: memref<1x4x256xf32, #tpu.memory_space<vmem>>) attributes {dimension_semantics = [#tpu.dimension_semantics<parallel>, #tpu.dimension_semantics<parallel>], iteration_bounds = array<i64: 2, 1>, scalar_prefetch = 0 : i64, scratch_operands = 0 : i64, tpu.core_type = #tpu.core_type<tc>, window_params = [{transform_indices = @transform_0, window_bounds = array<i64: 1, 1, 256>}, {transform_indices = @transform_1, window_bounds = array<i64: 1, 4, 256>}, {transform_indices = @transform_2, window_bounds = array<i64: 1, 4, 256>}]} {
    %c0 = arith.constant 0 : index
    %c0_0 = arith.constant 0 : index
    %c0_1 = arith.constant 0 : index
    %0 = vector.load %arg3[%c0, %c0_0, %c0_1] : memref<1x4x256xf32, #tpu.memory_space<vmem>>, vector<1x4x256xf32>
    %c0_2 = arith.constant 0 : index
    %c0_3 = arith.constant 0 : index
    %c0_4 = arith.constant 0 : index
    %1 = vector.load %arg2[%c0_2, %c0_3, %c0_4] : memref<1x1x256xf32, #tpu.memory_space<vmem>>, vector<1x1x256xf32>
    %2 = vector.broadcast %1 : vector<1x1x256xf32> to vector<1x4x256xf32>
    %3 = arith.mulf %0, %2 : vector<1x4x256xf32>
    %c0_5 = arith.constant 0 : index
    %c0_6 = arith.constant 0 : index
    %c0_7 = arith.constant 0 : index
    %4 = vector.load %arg4[%c0_5, %c0_6, %c0_7] : memref<1x4x256xf32, #tpu.memory_space<vmem>>, vector<1x4x256xf32>
    tpu.vector_store %arg4[%c0_5, %c0_6, %c0_7], %3 {strides = array<i32>} : memref<1x4x256xf32, #tpu.memory_space<vmem>>, vector<1x4x256xf32>,
    return
  }
  func.func @transform_0(%arg0: i32, %arg1: i32) -> (i32, i32, i32) {
    %c0_i32 = arith.constant 0 : i32
    %c0_i32_0 = arith.constant 0 : i32
    %c0_i32_1 = arith.constant 0 : i32
    return %arg0, %c0_i32, %c0_i32_0 : i32, i32, i32
  }
  func.func @transform_1(%arg0: i32, %arg1: i32) -> (i32, i32, i32) {
    %c0_i32 = arith.constant 0 : i32
    %c0_i32_0 = arith.constant 0 : i32
    return %arg0, %arg1, %c0_i32 : i32, i32, i32
  }
  func.func @transform_2(%arg0: i32, %arg1: i32) -> (i32, i32, i32) {
    %c0_i32 = arith.constant 0 : i32
    %c0_i32_0 = arith.constant 0 : i32
    return %arg0, %arg1, %c0_i32 : i32, i32, i32
  }
}

</mosaic_0001>

<bundles_post_ra>
// kernel: spatial_gate.3
= control target key start
LH: loop header
LB: loop body
LE: loop exit
PB: predicated region body
PF: predicated region fallthrough
CT: control target
= control target key end

     0   :  { %s393_s9 = smov 0   ;;  %s395_s10 = smov 0   ;;  %s426_s0 = inlined_call_operand.vmem [shape: f32[2,1,256], index: 0, kind: input, shape index: {}]   ;;  %s427_s1 = inlined_call_operand.vmem [shape: f32[2,4,256], index: 1, kind: input, shape index: {}]   ;;  %s428_s2 = inlined_call_operand.vmem [shape: f32[2,4,256], index: 2, kind: output, shape index: {}]  }
   0x1   :  { %s397_s11 = smov 0  }
   0x2 LB: > { %s24_s12 = sadd.s32 1, %s372_s10  ;;  %p320_p0 = scmp.ge.s32.totalorder %s376_s11, 1  ;;  %s376_s11 = sphi %s397_s11, %s12_s11   ;;  %s372_s10 = sphi %s395_s10, %s430_s10   ;;  %s368_s9 = sphi %s393_s9, %s429_s9  }
   0x3   : > { %p26_p1 = scmp.ge.s32.totalorder %s24_s12, 2  ;;  %p141_p2 = scmp.lt.s32.totalorder %s376_s11, 3 }
   0x5   : > { %s432_s12 = smov (%p26_p1, %s24_s12), 0  ;;  %p142_p3 = pnand %p320_p0, %p141_p2 }
   0x6   : > { %p175_p4 = scmp.lt.s32.totalorder (!%p142_p3), %s368_s9, 1 }
   0x7   : > { %145 = sbr.rel (%p142_p3) target bundleno = 25 (0x19), region = 28 }
   0xc   : > { %v200_v0 = vlaneseq  ;;  %s434_s9 = smov (!%p175_p4, %s368_s9), 1 }
   0xd   : > { %s321_s13 = sshll.u32 %s434_s9, 1  ;;  %s328_s14 = sshll.u32 %s434_s9, 3 }
   0xe   : > { %v201_v1 = vshrl.u32 %v200_v0, 7  ;;  %s178_s17 = scalar_lea.vmem %s426_s0, %s321_s13  ;;  %s187_s20 = scalar_lea.vmem %s427_s1, %s328_s14 }
   0xf   : > { %v198_v4 = vld [vmem:[%s178_s17] sm:$0x3]  ;;  %s196_s23 = scalar_lea.vmem %s428_s2, %s328_s14 }
  0x10   : > { %v202_v2 = vsub.s32 0, %v201_v1  ;;  %v206_v3 = vsub.s32 1, %v201_v1  ;;  %v197_v7 = vld [vmem:[%s187_s20] sm:$0xff] }
  0x12   : > { %v203_v5 = vrot.slane %v198_v4, %v202_v2  ;;  %v207_v6 = vrot.slane %v198_v4, %v206_v3 }
  0x14   : > { %v208_v8 = vcombine.low %v203_v5, %v207_v6 }
  0x16   : > { %v210_v9 = vmul.f32 %v208_v8, %v197_v7 }
  0x18   : > { %211 = vst [vmem:[%s196_s23] sm:$0xff] %v210_v9 }
  0x19 PF: > { %s12_s11 = sadd.s32 1, %s376_s11   ;;  %s429_s9 = smov %s372_s10 }
  0x1a   : > { %p9_p5 = scmp.ge.s32.totalorder %s12_s11, 4   ;;  %s430_s10 = smov %s432_s12 }
  0x1c   :  { %11 = sbr.rel (!%p9_p5) target bundleno = 2 (0x2), region = 61 }

// kernel: spatial_gate.2
= control target key start
LH: loop header
LB: loop body
LE: loop exit
PB: predicated region body
PF: predicated region fallthrough
CT: control target
= control target key end

     0   :  { %7 = vsyncpa [#allocation5], 0  ;;  %s2506_s9 = smov 0   ;;  %s2508_s10 = smov 0   ;;  %s3749_s0 = inlined_call_operand.vmem [shape: f32[2,4,16,16], index: 0, kind: input, shape index: {}]   ;;  %s3750_s1 = inlined_call_operand.vmem [shape: f32[98], index: 1, kind: input, shape index: {}]   ;;  %s3751_s2 = inlined_call_operand.vmem [shape: f32[2,16,16], index: 2, kind: output, shape index: {}]  }
   0x1   :  { %s2510_s11 = smov 0  }
   0x2 LB: > { %s2270_s12 = sadd.s32 4294967295, %s2479_s11   ;;  %s25_s13 = sadd.s32 1, %s2475_s10  ;;  %s2479_s11 = sphi %s2510_s11, %s13_s11   ;;  %s2475_s10 = sphi %s2508_s10, %s3755_s10   ;;  %s2471_s9 = sphi %s2506_s9, %s3754_s9  }
   0x3   : > { %p27_p0 = scmp.ge.s32.totalorder %s25_s13, 2  ;;  %p2272_p1 = scmp.ge.s32.totalorder %s2479_s11, 1 }
   0x4   : > { %p105_p2 = scmp.lt.s32.totalorder %s2479_s11, 3  ;;  %p2531_p4 = scmp.eq.s32.totalorder %s2270_s12, 0 }
   0x5   : > { %s3757_s13 = smov (%p27_p0, %s25_s13), 0  ;;  %s118_s18 = sshll.u32 %s3750_s1, 4  ;;  %s119_s18 = int_to_ptr.vmem [resolvable:$true] %s118_s18 }
   0x6   : > { %p2527_p3 = pnand %p2272_p1, %p105_p2  ;;  %s2438_s19 = scalar_lea.vmem %s119_s18, 16 }
   0x7   : > { %p2439_p7 = scmp.ne.s32.totalorder %s119_s18, %s2438_s19  ;;  %p2446_p11 = scmp.lt.s32.totalorder %s119_s18, %s119_s18 }
   0x8   : > { %p2392_p5 = pneg %p2527_p3  ;;  %p2447_p12 = scmp.lt.s32.totalorder %s2438_s19, %s2438_s19 }
   0xa   : > { %p2393_p6 = pnand %p2531_p4, %p2392_p5  ;;  %p2448_p13 = por %p2447_p12, %p2446_p11 }
   0xc   : > { %p2440_p8 = pneg %p2393_p6 }
   0xe   : > { %p2441_p9 = pnand %p2440_p8, %p2439_p7 }
  0x10   : > { %p2442_p10 = pneg %p2441_p9 }
  0x12   : > { %p2449_p0 = pnand %p2448_p13, %p2442_p10 }
  0x14   : > { %2452 = shalt.err (!%p2449_p0)
}
  0x15   : > { %s2481_s20 = smov [#allocation4]   ;;  %145 = sbr.rel (%p2527_p3) target bundleno = 630 (0x276), region = 28 }
  0x16   : > { %2395 = dma.vmem_to_smem (!%p2393_p6), %s119_s18, 16, %s2481_s20, [#allocation5]  }
  0x1a   : > { %2466 = dma.done.wait (%p2531_p4), [#allocation5], 16  }
  0x1b   : > { %2468 = vsyncadd (%p2531_p4), [#allocation5], 4294967280 }
  0x1c   : > { %151 = sfence }
  0x1d   : > { %p174_p1 = scmp.lt.s32.totalorder %s2471_s9, 1  ;;  %vm216_vm0 = vcmask 130048   ;;  %vm239_vm1 = vcmask 179200   ;;  %v2482_v0 = vmov -inf   ;;  %v2483_v1 = vmov 0.0   ;;  %s2484_s25 = smov 3  }
  0x1e   : > { %217 = vst.msk [vmem:[#allocation2] sm:$0xff] %vm216_vm0, %v2482_v0  ;;  %218 = vst.msk [vmem:[#allocation2 + $0x8] sm:$0xff] %vm216_vm0, %v2482_v0  ;;  %vm242_vm2 = vcmask 177152   ;;  %vm257_vm3 = vcmask 154648   ;;  %s2293_s26 = sld [smem:[#allocation4 + $0x1]]  ;;  %s2485_s30 = smov 127  }
  0x1f   : > { %221 = vst.msk [vmem:[#allocation2 + $0x18] sm:$0xff] %vm216_vm0, %v2483_v1  ;;  %220 = vst.msk [vmem:[#allocation2 + $0x10] sm:$0xff] %vm216_vm0, %v2483_v1  ;;  %s3759_s9 = smov (!%p174_p1, %s2471_s9), 1  ;;  %s2300_s27 = sld [smem:[#allocation4 + $0x2]]  ;;  %vm292_vm4 = vcmask 1046528   ;;  %vm310_vm5 = vcmask 1045504  }
  0x20   : > { %240 = vst.msk [vmem:[#allocation3] sm:$0xff] %vm239_vm1, %v2483_v1  ;;  %241 = vst.msk [vmem:[#allocation3 + $0x8] sm:$0xff] %vm239_vm1, %v2483_v1  ;;  %s2386_s21 = sshll.u32 %s3759_s9, 6  ;;  %s2307_s28 = sld [smem:[#allocation4 + $0x3]]  ;;  %vm328_vm6 = vcmask 1044480   ;;  %vm346_vm7 = vcmask 1043456  }
  0x21   : > { %244 = vst.msk [vmem:[#allocation3 + $0x18] sm:$0xff] %vm239_vm1, %v2483_v1  ;;  %245 = vst.msk [vmem:[#allocation3 + $0x20] sm:$0xff] %vm239_vm1, %v2483_v1  ;;  %s182_s24 = scalar_lea.vmem %s3749_s0, %s2386_s21  ;;  %s2314_s29 = sld [smem:[#allocation4 + $0x4]]  ;;  %vm364_vm8 = vcmask 1042432   ;;  %vm382_vm9 = vcmask 1041408  }
  0x22   : > { %v189_v2 = vld [vmem:[%s182_s24] sm:$0xff]  ;;  %v2281_v3 = vld [vmem:[%s182_s24 + $0x10] sm:$0xff]  ;;  %v190_v6 = vld [vmem:[%s182_s24 + $0x8] sm:$0xff]  ;;  %243 = vst.msk [vmem:[#allocation3 + $0x10] sm:$0x3f] %vm242_vm2, %v2483_v1  ;;  %s2572_s3 = sld [smem:[#allocation4 + $0x5]] }
  0x23   : > { %v2283_v4 = vld [vmem:[%s182_s24 + $0x20] sm:$0xff]  ;;  %v194_v5 = vmax.f32 %v189_v2, %v2281_v3  ;;  %v2282_v7 = vld [vmem:[%s182_s24 + $0x18] sm:$0xff]  ;;  %v196_v8 = vadd.f32 %v2281_v3, %v189_v2  ;;  %v2285_v9 = vld [vmem:[%s182_s24 + $0x30] sm:$0xff]  ;;  %246 = vst.msk [vmem:[#allocation3 + $0x28] sm:$0x3f] %vm242_vm2, %v2483_v1  ;;  %s2486_s4 = smov 126  }
  0x24   : > { %v195_v10 = vmax.f32 %v190_v6, %v2282_v7  ;;  %v197_v11 = vadd.f32 %v2282_v7, %v190_v6  ;;  %v2284_v12 = vld [vmem:[%s182_s24 + $0x28] sm:$0xff]  ;;  %v2286_v14 = vld [vmem:[%s182_s24 + $0x38] sm:$0xff]  ;;  %v393_v39 = vstv %s2293_s26  ;;  %s2294_s5 = sld [smem:[#allocation4 + $0x8]]  ;;  %s2487_s7 = smov 125  }
  0x25   : > { %v201_v13 = vmax.f32 %v194_v5, %v2283_v4  ;;  %v203_v15 = vadd.f32 %v2283_v4, %v196_v8  ;;  %v222_v16 = vld [vmem:[#allocation2] sm:$0xff]  ;;  %v223_v21 = vld [vmem:[#allocation2 + $0x8] sm:$0xff]  ;;  %v533_v43 = vstv %s2300_s27  ;;  %s2578_s6 = sld [smem:[#allocation4 + $0x6]]  ;;  %s2488_s12 = smov 124  }
  0x26   : > { %v202_v17 = vmax.f32 %v195_v10, %v2284_v12  ;;  %v204_v18 = vadd.f32 %v2284_v12, %v197_v11  ;;  %v230_v19 = vld [vmem:[#allocation2 + $0x10] sm:$0xff]  ;;  %v231_v23 = vld [vmem:[#allocation2 + $0x18] sm:$0xff]  ;;  %v673_v47 = vstv %s2307_s28  ;;  %s2295_s8 = sld [smem:[#allocation4 + $0xf]]  ;;  %s2489_s15 = smov 123  }
  0x27   : > { %v208_v20 = vmax.f32 %v201_v13, %v2285_v9  ;;  %v210_v22 = vadd.f32 %v2285_v9, %v203_v15  ;;  %v813_v50 = vstv %s2314_s29  ;;  %s2296_s14 = sld [smem:[#allocation4 + $0x16]]  ;;  %s2490_s17 = smov 122  }
  0x28   : > { %v209_v24 = vmax.f32 %v202_v17, %v2286_v14  ;;  %v211_v25 = vadd.f32 %v2286_v14, %v204_v18  ;;  %v953_v53 = vstv %s2572_s3  ;;  %s2297_s16 = sld [smem:[#allocation4 + $0x1d]] }
  0x29   : > { %v224_v26 = vmax.f32 %v222_v16, %v208_v20  ;;  %v232_v27 = vadd.f32 %v230_v19, %v210_v22  ;;  %s2298_s18 = sld [smem:[#allocation4 + $0x24]] }
  0x2a   : > { %v225_v28 = vmax.f32 %v223_v21, %v209_v24  ;;  %v233_v29 = vadd.f32 %v231_v23, %v211_v25  ;;  %v407_v56 = vstv %s2294_s5  ;;  %s2299_s19 = sld [smem:[#allocation4 + $0x2b]] }
  0x2b   : > { %227 = vst.msk [vmem:[#allocation2] sm:$0xff] %vm216_vm0, %v224_v26  ;;  %234 = vst.msk [vmem:[#allocation2 + $0x10] sm:$0xff] %vm216_vm0, %v232_v27  ;;  %v1093_v57 = vstv %s2578_s6  ;;  %s2301_s20 = sld [smem:[#allocation4 + $0x9]] }
  0x2c   : > { %228 = vst.msk [vmem:[#allocation2 + $0x8] sm:$0xff] %vm216_vm0, %v225_v28  ;;  %235 = vst.msk [vmem:[#allocation2 + $0x18] sm:$0xff] %vm216_vm0, %v233_v29  ;;  %v428_v63 = vstv %s2295_s8  ;;  %s2302_s21 = sld [smem:[#allocation4 + $0x10]] }
  0x2d   : > { %v449_v5 = vstv %s2296_s14  ;;  %s2303_s22 = sld [smem:[#allocation4 + $0x17]] }
  0x2e   : > { %v470_v14 = vstv %s2297_s16  ;;  %s2304_s23 = sld [smem:[#allocation4 + $0x1e]] }
  0x2f   : > { %v491_v23 = vstv %s2298_s18  ;;  %s2305_s24 = sld [smem:[#allocation4 + $0x25]] }
  0x30   : > { %s2308_s26 = sld [smem:[#allocation4 + $0xa]] }
  0x31   : > { %s2309_s27 = sld [smem:[#allocation4 + $0x11]] }
  0x32   : > { %v247_v30 = vld [vmem:[#allocation2] sm:$0xff]  ;;  %v260_v31 = vld [vmem:[#allocation2 + $0x10] sm:$0xff]  ;;  %s2310_s28 = sld [smem:[#allocation4 + $0x18]] }
  0x33   : > { %251 = vrot.lane.b32.xlu0 %v247_v30, %s2484_s25  ;;  %v262_v32 = vmul.f32 0.25, %v260_v31  ;;  %v261_v33 = vld [vmem:[#allocation2 + $0x18] sm:$0xff]  ;;  %v248_v34 = vld [vmem:[#allocation2 + $0x8] sm:$0xff]  ;;  %s2311_s29 = sld [smem:[#allocation4 + $0x1f]] }
  0x34   : > { %v263_v35 = vmul.f32 0.25, %v261_v33  ;;  %s2312_s3 = sld [smem:[#allocation4 + $0x26]] }
  0x35   : > { %266 = vrot.lane.b32.xlu1 %v262_v32, %s2484_s25  ;;  %s2313_s5 = sld [smem:[#allocation4 + $0x2d]] }
  0x36   : > { %s2315_s6 = sld [smem:[#allocation4 + $0xb]] }
  0x37   : > { %253 = vrot.lane.b32.xlu0 %v248_v34, %s2484_s25  ;;  %v512_v34 = vstv %s2299_s19  ;;  %s2316_s8 = sld [smem:[#allocation4 + $0x12]] }
  0x38   : > { %s2317_s14 = sld [smem:[#allocation4 + $0x19]] }
  0x39   : > { %268 = vrot.lane.b32.xlu1 %v263_v35, %s2484_s25  ;;  %s2306_s25 = sld [smem:[#allocation4 + $0x2c]] }
  0x3a   : > { %s2318_s16 = sld [smem:[#allocation4 + $0x20]] }
  0x3b   : > { %s2319_s18 = sld [smem:[#allocation4 + $0x27]] }
  0x3c   : > { %s2320_s19 = sld [smem:[#allocation4 + $0x2e]] }
  0xa5   : > { %v252_v36 = vpop.permute.xlu0 %251 }
  0xa6   : > { %258 = vst.msk [vmem:[#allocation3 + $0x3] sm:$0xff] %vm257_vm3, %v252_v36 }
  0xa7   : > { %v267_v37 = vpop.permute.xlu1 %266 }
  0xa8   : > { %273 = vst.msk [vmem:[#allocation3 + $0x1b] sm:$0xff] %vm257_vm3, %v267_v37 }
  0xa9   : > { %v254_v38 = vpop.permute.xlu0 %253 }
  0xaa   : > { %259 = vst.msk [vmem:[#allocation3 + $0xb] sm:$0xff] %vm257_vm3, %v254_v38 }
  0xab   : > { %v269_v40 = vpop.permute.xlu1 %268 }
  0xac   : > { %274 = vst.msk [vmem:[#allocation3 + $0x23] sm:$0xff] %vm257_vm3, %v269_v40 }
  0xad   : > { %v2564_v41 = vld [vmem:[#allocation3] sm:$0xff] }
  0xae   : > { %v394_v42 = vmul.f32 %v393_v39, %v2564_v41  ;;  %v534_v45 = vmul.f32 %v533_v43, %v2564_v41  ;;  %v674_v48 = vmul.f32 %v673_v47, %v2564_v41  ;;  %v814_v51 = vmul.f32 %v813_v50, %v2564_v41 }
  0xaf   : > { %v954_v54 = vmul.f32 %v953_v53, %v2564_v41  ;;  %v408_v60 = vmul.f32 %v407_v56, %v2564_v41  ;;  %v1094_v61 = vmul.f32 %v1093_v57, %v2564_v41  ;;  %v429_v4 = vmul.f32 %v428_v63, %v2564_v41 }
  0xb0   : > { %398 = vrot.lane.b32.xlu0 %v394_v42, %s2485_s30  ;;  %v450_v13 = vmul.f32 %v449_v5, %v2564_v41  ;;  %v471_v21 = vmul.f32 %v470_v14, %v2564_v41  ;;  %v492_v31 = vmul.f32 %v491_v23, %v2564_v41  ;;  %v513_v40 = vmul.f32 %v512_v34, %v2564_v41 }
  0xb1   : > { %v2568_v44 = vld [vmem:[#allocation3 + $0x8] sm:$0xff]  ;;  %v2591_v59 = vld [vmem:[#allocation3 + $0x10] sm:$0x3f]  ;;  %v414_v3 = vrot.slane %v408_v60, 1  ;;  %v435_v12 = vrot.slane %v429_v4, 2  ;;  %v547_v42 = vstv %s2301_s20  ;;  %s2322_s20 = sld [smem:[#allocation4 + $0xc]] }
  0xb2   : > { %v395_v46 = vmul.f32 %v393_v39, %v2568_v44  ;;  %v535_v49 = vmul.f32 %v533_v43, %v2568_v44  ;;  %v675_v52 = vmul.f32 %v673_v47, %v2568_v44  ;;  %v815_v55 = vmul.f32 %v813_v50, %v2568_v44 }
  0xb3   : > { %v409_v58 = vmul.f32 %v407_v56, %v2568_v44  ;;  %v955_v62 = vmul.f32 %v953_v53, %v2568_v44  ;;  %v430_v1 = vmul.f32 %v428_v63, %v2568_v44  ;;  %v410_v2 = vmul.f32 %v407_v56, %v2591_v59 }
  0xb4   : > { %538 = vrot.lane.b32.xlu0 %v534_v45, %s2486_s4  ;;  %400 = vrot.lane.b32.xlu1 %v395_v46, %s2485_s30  ;;  %v1095_v6 = vmul.f32 %v1093_v57, %v2568_v44  ;;  %v451_v7 = vmul.f32 %v449_v5, %v2568_v44  ;;  %v431_v11 = vmul.f32 %v428_v63, %v2591_v59  ;;  %v456_v22 = vrot.slane %v450_v13, 3 }
  0xb5   : > { %v415_v0 = vrot.slane %v409_v58, 1  ;;  %v436_v9 = vrot.slane %v430_v1, 2  ;;  %v417_v10 = vrot.slane %v410_v2, 1  ;;  %v472_v16 = vmul.f32 %v470_v14, %v2568_v44 }
  0xb6   : > { %v457_v15 = vrot.slane %v451_v7, 3  ;;  %v438_v19 = vrot.slane %v431_v11, 2  ;;  %v452_v20 = vmul.f32 %v449_v5, %v2591_v59  ;;  %v493_v25 = vmul.f32 %v491_v23, %v2568_v44 }
  0xb7   : > { %v416_v8 = vsel %vm292_vm4, %v414_v3, %v415_v0  ;;  %v437_v17 = vsel %vm310_vm5, %v435_v12, %v436_v9  ;;  %v418_v18 = vsel %vm292_vm4, %v415_v0, %v417_v10  ;;  %v478_v24 = vrot.slane %v472_v16, 4 }
  0xb8   : > { %678 = vrot.lane.b32.xlu0 %v674_v48, %s2487_s7  ;;  %540 = vrot.lane.b32.xlu1 %v535_v49, %s2486_s4  ;;  %v458_v26 = vsel %vm328_vm6, %v456_v22, %v457_v15  ;;  %v439_v27 = vsel %vm310_vm5, %v436_v9, %v438_v19  ;;  %v459_v28 = vrot.slane %v452_v20, 3  ;;  %v473_v29 = vmul.f32 %v470_v14, %v2591_v59 }
  0xb9   : > { %v477_v30 = vrot.slane %v471_v21, 4  ;;  %v499_v33 = vrot.slane %v493_v25, 5  ;;  %v514_v37 = vmul.f32 %v512_v34, %v2568_v44  ;;  %v494_v38 = vmul.f32 %v491_v23, %v2591_v59 }
  0xba   : > { %v460_v35 = vsel %vm328_vm6, %v457_v15, %v459_v28  ;;  %v480_v36 = vrot.slane %v473_v29, 4  ;;  %v498_v39 = vrot.slane %v492_v31, 5  ;;  %v549_v45 = vmul.f32 %v547_v42, %v2568_v44 }
  0xbb   : > { %v479_v32 = vsel %vm346_vm7, %v477_v30, %v478_v24  ;;  %v520_v47 = vrot.slane %v514_v37, 6  ;;  %v501_v48 = vrot.slane %v494_v38, 5  ;;  %v515_v49 = vmul.f32 %v512_v34, %v2591_v59 }
  0xbc   : > { %818 = vrot.lane.b32.xlu0 %v814_v51, %s2488_s12  ;;  %680 = vrot.lane.b32.xlu1 %v675_v52, %s2487_s7  ;;  %v500_v43 = vsel %vm364_vm8, %v498_v39, %v499_v33  ;;  %v481_v46 = vsel %vm346_vm7, %v478_v24, %v480_v36  ;;  %v519_v50 = vrot.slane %v513_v40, 6  ;;  %v548_v51 = vmul.f32 %v547_v42, %v2564_v41 }
  0xbd   : > { %v568_v52 = vstv %s2302_s21  ;;  %v555_v53 = vrot.slane %v549_v45, 1  ;;  %v502_v56 = vsel %vm364_vm8, %v499_v33, %v501_v48  ;;  %v522_v57 = vrot.slane %v515_v49, 6  ;;  %s2323_s21 = sld [smem:[#allocation4 + $0x13]] }
  0xbe   : > { %v550_v58 = vmul.f32 %v547_v42, %v2591_v59  ;;  %v569_v60 = vmul.f32 %v568_v52, %v2564_v41  ;;  %v571_v4 = vmul.f32 %v568_v52, %v2591_v59  ;;  %v610_v9 = vstv %s2304_s23  ;;  %s2768_s23 = sld [smem:[#allocation4 + $0x21]] }
  0xbf   : > { %v523_v2 = vsel %vm382_vm9, %v520_v47, %v522_v57  ;;  %v612_v12 = vmul.f32 %v610_v9, %v2568_v44  ;;  %v611_v15 = vmul.f32 %v610_v9, %v2564_v41  ;;  %v631_v16 = vstv %s2305_s24  ;;  %s2775_s24 = sld [smem:[#allocation4 + $0x28]] }
  0xc0   : > { %958 = vrot.lane.b32.xlu0 %v954_v54, %s2489_s15  ;;  %820 = vrot.lane.b32.xlu1 %v815_v55, %s2488_s12  ;;  %v570_v54 = vmul.f32 %v568_v52, %v2568_v44  ;;  %v521_v55 = vsel %vm382_vm9, %v519_v50, %v520_v47  ;;  %v557_v3 = vrot.slane %v550_v58, 1  ;;  %v575_v5 = vrot.slane %v569_v60, 2 }
  0xc1   : > { %v578_v11 = vrot.slane %v571_v4, 2  ;;  %v618_v20 = vrot.slane %v612_v12, 4  ;;  %v613_v22 = vmul.f32 %v610_v9, %v2591_v59  ;;  %v632_v23 = vmul.f32 %v631_v16, %v2564_v41 }
  0xc2   : > { %v576_v63 = vrot.slane %v570_v54, 2  ;;  %v558_v10 = vsel %vm292_vm4, %v555_v53, %v557_v3  ;;  %v617_v24 = vrot.slane %v611_v15, 4  ;;  %v652_v25 = vstv %s2306_s25  ;;  %s2782_s25 = sld [smem:[#allocation4]] }
  0xc3   : > { %v620_v30 = vrot.slane %v613_v22, 4  ;;  %v634_v31 = vmul.f32 %v631_v16, %v2591_v59  ;;  %v653_v33 = vmul.f32 %v652_v25, %v2564_v41  ;;  %v687_v36 = vstv %s2308_s26  ;;  %s2787_s26 = sld [smem:[#allocation4 + $0x7]] }
  0xc4   : > { %1098 = vrot.lane.b32.xlu0 %v1094_v61, %s2490_s17  ;;  %960 = vrot.lane.b32.xlu1 %v955_v62, %s2489_s15  ;;  %v554_v61 = vrot.slane %v548_v51, 1  ;;  %v589_v62 = vstv %s2303_s22  ;;  %v577_v7 = vsel %vm310_vm5, %v575_v5, %v576_v63  ;;  %v579_v19 = vsel %vm310_vm5, %v576_v63, %v578_v11  ;;  %s2324_s22 = sld [smem:[#allocation4 + $0x1a]] }
  0xc5   : > { %v591_v0 = vmul.f32 %v589_v62, %v2568_v44  ;;  %v592_v13 = vmul.f32 %v589_v62, %v2591_v59  ;;  %v619_v28 = vsel %vm346_vm7, %v617_v24, %v618_v20  ;;  %v621_v37 = vsel %vm346_vm7, %v618_v20, %v620_v30 }
  0xc6   : > { %v556_v1 = vsel %vm292_vm4, %v554_v61, %v555_v53  ;;  %v641_v38 = vrot.slane %v634_v31, 5  ;;  %v689_v39 = vmul.f32 %v687_v36, %v2568_v44  ;;  %v655_v40 = vmul.f32 %v652_v25, %v2591_v59 }
  0xc7   : > { %v599_v21 = vrot.slane %v592_v13, 3  ;;  %v659_v42 = vrot.slane %v653_v33, 6  ;;  %v708_v45 = vstv %s2309_s27  ;;  %v690_v51 = vmul.f32 %v687_v36, %v2591_v59  ;;  %s2792_s27 = sld [smem:[#allocation4 + $0x2f]] }
  0xc8   : > { %419 = vrot.lane.b32.xlu0 %v416_v8, %s2485_s30  ;;  %1100 = vrot.lane.b32.xlu1 %v1095_v6, %s2490_s17  ;;  %v590_v6 = vmul.f32 %v589_v62, %v2564_v41  ;;  %v597_v8 = vrot.slane %v591_v0, 3  ;;  %v710_v47 = vmul.f32 %v708_v45, %v2568_v44  ;;  %v695_v49 = vrot.slane %v689_v39, 1 }
  0xc9   : > { %v662_v50 = vrot.slane %v655_v40, 6  ;;  %v709_v52 = vmul.f32 %v708_v45, %v2564_v41  ;;  %v729_v54 = vstv %s2310_s28  ;;  %v697_v60 = vrot.slane %v690_v51, 1  ;;  %s2794_s28 = sld [smem:[#allocation4 + $0xe]] }
  0xca   : > { %v596_v14 = vrot.slane %v590_v6, 3  ;;  %v600_v29 = vsel %vm328_vm6, %v597_v8, %v599_v21  ;;  %v711_v61 = vmul.f32 %v708_v45, %v2591_v59  ;;  %v730_v63 = vmul.f32 %v729_v54, %v2564_v41 }
  0xcb   : > { %v715_v62 = vrot.slane %v709_v52, 2  ;;  %v698_v3 = vsel %vm292_vm4, %v695_v49, %v697_v60  ;;  %v732_v6 = vmul.f32 %v729_v54, %v2591_v59  ;;  %v771_v9 = vstv %s2312_s3  ;;  %s2807_s3 = sld [smem:[#allocation4 + $0x1c]] }
  0xcc   : > { %440 = vrot.lane.b32.xlu0 %v437_v17, %s2485_s30  ;;  %421 = vrot.lane.b32.xlu1 %v418_v18, %s2485_s30  ;;  %v598_v17 = vsel %vm328_vm6, %v596_v14, %v597_v8  ;;  %v633_v18 = vmul.f32 %v631_v16, %v2568_v44  ;;  %v718_v4 = vrot.slane %v711_v61, 2  ;;  %v773_v11 = vmul.f32 %v771_v9, %v2568_v44 }
  0xcd   : > { %v739_v14 = vrot.slane %v732_v6, 3  ;;  %v772_v16 = vmul.f32 %v771_v9, %v2564_v41  ;;  %v774_v24 = vmul.f32 %v771_v9, %v2591_v59 }
  0xcf   : > { %v781_v31 = vrot.slane %v774_v24, 5 }
  0xd0   : > { %461 = vrot.lane.b32.xlu0 %v458_v26, %s2485_s30  ;;  %442 = vrot.lane.b32.xlu1 %v439_v27, %s2485_s30  ;;  %v639_v26 = vrot.slane %v633_v18, 5  ;;  %v654_v27 = vmul.f32 %v652_v25, %v2568_v44  ;;  %v792_v18 = vstv %s2313_s5  ;;  %v778_v25 = vrot.slane %v772_v16, 5  ;;  %s2811_s5 = sld [smem:[#allocation4 + $0x23]] }
  0xd1   : > { %v794_v20 = vmul.f32 %v792_v18, %v2568_v44  ;;  %v795_v33 = vmul.f32 %v792_v18, %v2591_v59 }
  0xd2   : > { %v642_v48 = vsel %vm364_vm8, %v639_v26, %v641_v38 }
  0xd4   : > { %482 = vrot.lane.b32.xlu0 %v479_v32, %s2485_s30  ;;  %463 = vrot.lane.b32.xlu1 %v460_v35, %s2485_s30  ;;  %v638_v32 = vrot.slane %v632_v23, 5  ;;  %v660_v35 = vrot.slane %v654_v27, 6 }
  0xd6   : > { %v640_v34 = vsel %vm364_vm8, %v638_v32, %v639_v26  ;;  %v663_v58 = vsel %vm382_vm9, %v660_v35, %v662_v50  ;;  %v793_v26 = vmul.f32 %v792_v18, %v2564_v41 }
  0xd8   : > { %503 = vrot.lane.b32.xlu0 %v500_v43, %s2485_s30  ;;  %484 = vrot.lane.b32.xlu1 %v481_v46, %s2485_s30  ;;  %v688_v43 = vmul.f32 %v687_v36, %v2564_v41  ;;  %v661_v46 = vsel %vm382_vm9, %v659_v42, %v660_v35  ;;  %v848_v36 = vstv %s2316_s8  ;;  %v802_v42 = vrot.slane %v795_v33, 6  ;;  %s2823_s8 = sld [smem:[#allocation4 + $0x2a]] }
  0xd9   : > { %v850_v38 = vmul.f32 %v848_v36, %v2568_v44  ;;  %v849_v45 = vmul.f32 %v848_v36, %v2564_v41 }
  0xda   : > { %v694_v53 = vrot.slane %v688_v43, 1 }
  0xdc   : > { %524 = vrot.lane.b32.xlu0 %v521_v55, %s2485_s30  ;;  %505 = vrot.lane.b32.xlu1 %v502_v56, %s2485_s30  ;;  %v716_v55 = vrot.slane %v710_v47, 2  ;;  %v731_v56 = vmul.f32 %v729_v54, %v2568_v44  ;;  %v696_v57 = vsel %vm292_vm4, %v694_v53, %v695_v49  ;;  %v869_v47 = vstv %s2317_s14  ;;  %s2830_s14 = sld [smem:[#allocation4 + $0x14]] }
  0xdd   : > { %v871_v49 = vmul.f32 %v869_v47, %v2568_v44  ;;  %v851_v53 = vmul.f32 %v848_v36, %v2591_v59  ;;  %v855_v54 = vrot.slane %v849_v45, 2 }
  0xde   : > { %v717_v0 = vsel %vm310_vm5, %v715_v62, %v716_v55  ;;  %v719_v12 = vsel %vm310_vm5, %v716_v55, %v718_v4  ;;  %v870_v55 = vmul.f32 %v869_v47, %v2564_v41 }
  0xdf   : > { %v858_v61 = vrot.slane %v851_v53, 2 }
  0xe0   : > { %559 = vrot.lane.b32.xlu0 %v556_v1, %s2486_s4  ;;  %526 = vrot.lane.b32.xlu1 %v523_v2, %s2485_s30  ;;  %v737_v1 = vrot.slane %v731_v56, 3  ;;  %v750_v2 = vstv %s2311_s29  ;;  %s2802_s29 = sld [smem:[#allocation4 + $0x15]] }
  0xe1   : > { %v752_v5 = vmul.f32 %v750_v2, %v2568_v44  ;;  %v751_v8 = vmul.f32 %v750_v2, %v2564_v41  ;;  %v753_v15 = vmul.f32 %v750_v2, %v2591_v59  ;;  %v911_v2 = vstv %s2319_s18  ;;  %s2842_s18 = sld [smem:[#allocation4 + $0x22]] }
  0xe2   : > { %v740_v22 = vsel %vm328_vm6, %v737_v1, %v739_v14  ;;  %v913_v4 = vmul.f32 %v911_v2, %v2568_v44  ;;  %v912_v9 = vmul.f32 %v911_v2, %v2564_v41 }
  0xe3   : > { %v758_v13 = vrot.slane %v752_v5, 4  ;;  %v760_v23 = vrot.slane %v753_v15, 4 }
  0xe4   : > { %580 = vrot.lane.b32.xlu0 %v577_v7, %s2486_s4  ;;  %561 = vrot.lane.b32.xlu1 %v558_v10, %s2486_s4  ;;  %v736_v7 = vrot.slane %v730_v63, 3  ;;  %v872_v63 = vmul.f32 %v869_v47, %v2591_v59  ;;  %v918_v18 = vrot.slane %v912_v9, 5 }
  0xe5   : > { %v761_v30 = vsel %vm346_vm7, %v758_v13, %v760_v23 }
  0xe6   : > { %v738_v10 = vsel %vm328_vm6, %v736_v7, %v737_v1  ;;  %v879_v7 = vrot.slane %v872_v63, 3 }
  0xe8   : > { %601 = vrot.lane.b32.xlu0 %v598_v17, %s2486_s4  ;;  %582 = vrot.lane.b32.xlu1 %v579_v19, %s2486_s4  ;;  %v757_v17 = vrot.slane %v751_v8, 4  ;;  %v779_v19 = vrot.slane %v773_v11, 5  ;;  %v932_v11 = vstv %s2320_s19  ;;  %s2847_s19 = sld [smem:[#allocation4 + $0x29]] }
  0xea   : > { %v759_v21 = vsel %vm346_vm7, %v757_v17, %v758_v13  ;;  %v780_v27 = vsel %vm364_vm8, %v778_v25, %v779_v19  ;;  %v782_v39 = vsel %vm364_vm8, %v779_v19, %v781_v31  ;;  %v934_v13 = vmul.f32 %v932_v11, %v2568_v44 }
  0xeb   : > { %v914_v17 = vmul.f32 %v911_v2, %v2591_v59  ;;  %v933_v19 = vmul.f32 %v932_v11, %v2564_v41 }
  0xec   : > { %622 = vrot.lane.b32.xlu0 %v619_v28, %s2486_s4  ;;  %603 = vrot.lane.b32.xlu1 %v600_v29, %s2486_s4  ;;  %v800_v28 = vrot.slane %v794_v20, 6  ;;  %v827_v29 = vstv %s2315_s6  ;;  %s2821_s6 = sld [smem:[#allocation4 + $0xd]] }
  0xed   : > { %v829_v32 = vmul.f32 %v827_v29, %v2568_v44  ;;  %v828_v35 = vmul.f32 %v827_v29, %v2564_v41  ;;  %v830_v43 = vmul.f32 %v827_v29, %v2591_v59  ;;  %v921_v24 = vrot.slane %v914_v17, 5 }
  0xee   : > { %v803_v51 = vsel %vm382_vm9, %v800_v28, %v802_v42  ;;  %v988_v29 = vstv %s2323_s21  ;;  %s2998_s21 = sld [smem:[#allocation4 + $0x39]] }
  0xef   : > { %v835_v40 = vrot.slane %v829_v32, 1  ;;  %v837_v52 = vrot.slane %v830_v43, 1  ;;  %v990_v32 = vmul.f32 %v988_v29, %v2568_v44 }
  0xf0   : > { %643 = vrot.lane.b32.xlu0 %v640_v34, %s2486_s4  ;;  %624 = vrot.lane.b32.xlu1 %v621_v37, %s2486_s4  ;;  %v799_v34 = vrot.slane %v793_v26, 6  ;;  %v935_v26 = vmul.f32 %v932_v11, %v2591_v59  ;;  %v1072_v11 = vstv %s2792_s27  ;;  %s3114_s27 = sld [smem:[#allocation4 + $0x5c]] }
  0xf1   : > { %v838_v60 = vsel %vm292_vm4, %v835_v40, %v837_v52  ;;  %v996_v43 = vrot.slane %v990_v32, 2 }
  0xf2   : > { %v801_v37 = vsel %vm382_vm9, %v799_v34, %v800_v28 }
  0xf4   : > { %664 = vrot.lane.b32.xlu0 %v661_v46, %s2486_s4  ;;  %645 = vrot.lane.b32.xlu1 %v642_v48, %s2486_s4  ;;  %v834_v46 = vrot.slane %v828_v35, 1  ;;  %v856_v48 = vrot.slane %v850_v38, 2  ;;  %v942_v35 = vrot.slane %v935_v26, 6  ;;  %v2863_v26 = vstv %s2807_s3  ;;  %s2351_s3 = sld [smem:[#allocation4 + $0x41]] }
  0xf6   : > { %v836_v50 = vsel %vm292_vm4, %v834_v46, %v835_v40  ;;  %v857_v56 = vsel %vm310_vm5, %v855_v54, %v856_v48  ;;  %v859_v5 = vsel %vm310_vm5, %v856_v48, %v858_v61 }
  0xf8   : > { %699 = vrot.lane.b32.xlu0 %v696_v57, %s2487_s7  ;;  %666 = vrot.lane.b32.xlu1 %v663_v58, %s2486_s4  ;;  %v877_v57 = vrot.slane %v871_v49, 3  ;;  %v890_v58 = vstv %s2318_s16  ;;  %v991_v49 = vmul.f32 %v988_v29, %v2591_v59  ;;  %s2833_s16 = sld [smem:[#allocation4 + $0x1b]] }
  0xf9   : > { %v892_v62 = vmul.f32 %v890_v58, %v2568_v44  ;;  %v891_v1 = vmul.f32 %v890_v58, %v2564_v41  ;;  %v893_v8 = vmul.f32 %v890_v58, %v2591_v59 }
  0xfa   : > { %v880_v15 = vsel %vm328_vm6, %v877_v57, %v879_v7  ;;  %v998_v58 = vrot.slane %v991_v49, 2 }
  0xfb   : > { %v898_v6 = vrot.slane %v892_v62, 4  ;;  %v900_v16 = vrot.slane %v893_v8, 4 }
  0xfc   : > { %720 = vrot.lane.b32.xlu0 %v717_v0, %s2487_s7  ;;  %701 = vrot.lane.b32.xlu1 %v698_v3, %s2487_s7  ;;  %v876_v0 = vrot.slane %v870_v55, 3 }
  0xfd   : > { %v901_v23 = vsel %vm346_vm7, %v898_v6, %v900_v16 }
  0xfe   : > { %v878_v3 = vsel %vm328_vm6, %v876_v0, %v877_v57  ;;  %v1051_v0 = vstv %s2775_s24  ;;  %s3034_s24 = sld [smem:[#allocation4 + $0x47]] }
  0xff   : > { %v1052_v9 = vmul.f32 %v1051_v0, %v2564_v41 }
 0x100   : > { %741 = vrot.lane.b32.xlu0 %v738_v10, %s2487_s7  ;;  %722 = vrot.lane.b32.xlu1 %v719_v12, %s2487_s7  ;;  %v897_v10 = vrot.slane %v891_v1, 4  ;;  %v919_v12 = vrot.slane %v913_v4, 5  ;;  %v1053_v4 = vmul.f32 %v1051_v0, %v2568_v44 }
 0x102   : > { %v899_v14 = vsel %vm346_vm7, %v897_v10, %v898_v6  ;;  %v920_v20 = vsel %vm364_vm8, %v918_v18, %v919_v12  ;;  %v922_v33 = vsel %vm364_vm8, %v919_v12, %v921_v24  ;;  %v2857_v24 = vstv %s2794_s28  ;;  %s3144_s28 = sld [smem:[#allocation4 + $0x3a]] }
 0x103   : > { %v304_v49 = vmul.f32 %v2857_v24, %v2564_v41 }
 0x104   : > { %762 = vrot.lane.b32.xlu0 %v759_v21, %s2487_s7  ;;  %743 = vrot.lane.b32.xlu1 %v740_v22, %s2487_s7  ;;  %v940_v21 = vrot.slane %v934_v13, 6  ;;  %v967_v22 = vstv %s2322_s20  ;;  %s2853_s20 = sld [smem:[#allocation4 + $0x30]] }
 0x105   : > { %v969_v25 = vmul.f32 %v967_v22, %v2568_v44  ;;  %v968_v28 = vmul.f32 %v967_v22, %v2564_v41  ;;  %v970_v36 = vmul.f32 %v967_v22, %v2591_v59  ;;  %v1073_v22 = vmul.f32 %v1072_v11, %v2564_v41 }
 0x106   : > { %v943_v47 = vsel %vm382_vm9, %v940_v21, %v942_v35 }
 0x107   : > { %v975_v34 = vrot.slane %v969_v25, 1  ;;  %v974_v38 = vrot.slane %v968_v28, 1  ;;  %v977_v48 = vrot.slane %v970_v36, 1  ;;  %v2860_v25 = vstv %s2802_s29  ;;  %s3156_s29 = sld [smem:[#allocation4 + $0x33]] }
 0x108   : > { %783 = vrot.lane.b32.xlu0 %v780_v27, %s2487_s7  ;;  %764 = vrot.lane.b32.xlu1 %v761_v30, %s2487_s7  ;;  %v939_v27 = vrot.slane %v933_v19, 6  ;;  %v1054_v19 = vmul.f32 %v1051_v0, %v2591_v59  ;;  %v2912_v0 = vstv %s2847_s19  ;;  %s3278_s19 = sld [smem:[#allocation4 + $0x49]] }
 0x109   : > { %v976_v46 = vsel %vm292_vm4, %v974_v38, %v975_v34  ;;  %v978_v57 = vsel %vm292_vm4, %v975_v34, %v977_v48  ;;  %v2879_v38 = vstv %s2823_s8  ;;  %v1149_v48 = vstv %s2833_s16  ;;  %s3212_s8 = sld [smem:[#allocation4 + $0x56]] }
 0x10a   : > { %v941_v31 = vsel %vm382_vm9, %v939_v27, %v940_v21  ;;  %v1058_v21 = vrot.slane %v1052_v9, 5  ;;  %v2866_v27 = vstv %s2811_s5  ;;  %v1061_v35 = vrot.slane %v1054_v19, 5  ;;  %s2352_s5 = sld [smem:[#allocation4 + $0x48]] }
 0x10b   : > { %s3264_s16 = sld [smem:[#allocation4 + $0x34]] }
 0x10c   : > { %804 = vrot.lane.b32.xlu0 %v801_v37, %s2487_s7  ;;  %785 = vrot.lane.b32.xlu1 %v782_v39, %s2487_s7  ;;  %v989_v37 = vmul.f32 %v988_v29, %v2564_v41  ;;  %v1009_v39 = vstv %s2324_s22  ;;  %s3019_s22 = sld [smem:[#allocation4 + $0x32]] }
 0x10d   : > { %v1011_v45 = vmul.f32 %v1009_v39, %v2568_v44  ;;  %v1012_v61 = vmul.f32 %v1009_v39, %v2591_v59 }
 0x10f   : > { %v1017_v55 = vrot.slane %v1011_v45, 3  ;;  %v1019_v7 = vrot.slane %v1012_v61, 3 }
 0x110   : > { %839 = vrot.lane.b32.xlu0 %v836_v50, %s2488_s12  ;;  %806 = vrot.lane.b32.xlu1 %v803_v51, %s2487_s7  ;;  %v995_v50 = vrot.slane %v989_v37, 2  ;;  %v1010_v51 = vmul.f32 %v1009_v39, %v2564_v41  ;;  %v1075_v37 = vmul.f32 %v1072_v11, %v2591_v59  ;;  %v1079_v39 = vrot.slane %v1073_v22, 6 }
 0x111   : > { %v1020_v17 = vsel %vm328_vm6, %v1017_v55, %v1019_v7  ;;  %v2938_v22 = vmul.f32 %v2860_v25, %v2568_v44 }
 0x112   : > { %v997_v54 = vsel %vm310_vm5, %v995_v50, %v996_v43  ;;  %v1016_v62 = vrot.slane %v1010_v51, 3 }
 0x114   : > { %860 = vrot.lane.b32.xlu0 %v857_v56, %s2488_s12  ;;  %841 = vrot.lane.b32.xlu1 %v838_v60, %s2488_s12  ;;  %v1030_v56 = vstv %s2768_s23  ;;  %s3025_s23 = sld [smem:[#allocation4 + $0x40]] }
 0x115   : > { %v1032_v60 = vmul.f32 %v1030_v56, %v2568_v44  ;;  %v1031_v63 = vmul.f32 %v1030_v56, %v2564_v41  ;;  %v1033_v8 = vmul.f32 %v1030_v56, %v2591_v59  ;;  %v2901_v56 = vstv %s2842_s18  ;;  %s3268_s18 = sld [smem:[#allocation4 + $0x42]] }
 0x117   : > { %v1038_v6 = vrot.slane %v1032_v60, 4  ;;  %v1037_v10 = vrot.slane %v1031_v63, 4  ;;  %v1040_v18 = vrot.slane %v1033_v8, 4  ;;  %v1082_v60 = vrot.slane %v1075_v37, 6 }
 0x118   : > { %881 = vrot.lane.b32.xlu0 %v878_v3, %s2488_s12  ;;  %862 = vrot.lane.b32.xlu1 %v859_v5, %s2488_s12  ;;  %v1018_v3 = vsel %vm328_vm6, %v1016_v62, %v1017_v55  ;;  %v999_v5 = vsel %vm310_vm5, %v996_v43, %v998_v58  ;;  %v1128_v43 = vstv %s2830_s14  ;;  %v311_v8 = vrot.slane %v304_v49, 2  ;;  %s3252_s14 = sld [smem:[#allocation4 + $0x3b]] }
 0x119   : > { %v1039_v16 = vsel %vm346_vm7, %v1037_v10, %v1038_v6  ;;  %v1041_v34 = vsel %vm346_vm7, %v1038_v6, %v1040_v18  ;;  %v2898_v55 = vmul.f32 %v1128_v43, %v2568_v44  ;;  %v1129_v63 = vmul.f32 %v1128_v43, %v2564_v41 }
 0x11a   : > { %v2920_v6 = vmul.f32 %v2857_v24, %v2568_v44  ;;  %v1131_v19 = vmul.f32 %v1128_v43, %v2591_v59 }
 0x11c   : > { %902 = vrot.lane.b32.xlu0 %v899_v14, %s2488_s12  ;;  %883 = vrot.lane.b32.xlu1 %v880_v15, %s2488_s12  ;;  %v1059_v14 = vrot.slane %v1053_v4, 5  ;;  %v2840_v15 = vmul.f32 %v1072_v11, %v2568_v44  ;;  %v1138_v49 = vrot.slane %v1131_v19, 2  ;;  %v324_v19 = vmul.f32 %v2860_v25, %v2591_v59 }
 0x11e   : > { %v1080_v32 = vrot.slane %v2840_v15, 6  ;;  %v2929_v15 = vmul.f32 %v1149_v48, %v2568_v44 }
 0x120   : > { %923 = vrot.lane.b32.xlu0 %v920_v20, %s2488_s12  ;;  %904 = vrot.lane.b32.xlu1 %v901_v23, %s2488_s12  ;;  %v279_v20 = vstv %s2782_s25  ;;  %v285_v23 = vstv %s2787_s26  ;;  %s3073_s25 = sld [smem:[#allocation4 + $0x4e]] }
 0x121   : > { %v286_v45 = vmul.f32 %v285_v23, %v2564_v41  ;;  %v280_v62 = vmul.f32 %v279_v20, %v2564_v41  ;;  %v288_v9 = vmul.f32 %v285_v23, %v2591_v59  ;;  %s3098_s26 = sld [smem:[#allocation4 + $0x55]] }
 0x122   : > { %v2764_v30 = vpop.permute.xlu0 %398 }
 0x123   : > { %v293_v4 = vrot.slane %v286_v45, 1  ;;  %v296_v37 = vrot.slane %v288_v9, 1 }
 0x124   : > { %944 = vrot.lane.b32.xlu0 %v941_v31, %s2488_s12  ;;  %925 = vrot.lane.b32.xlu1 %v922_v33, %s2488_s12  ;;  %v1060_v31 = vsel %vm364_vm8, %v1058_v21, %v1059_v14  ;;  %v1107_v33 = vstv %s2821_s6  ;;  %v322_v21 = vmul.f32 %v2860_v25, %v2564_v41  ;;  %s3190_s6 = sld [smem:[#allocation4 + $0x4f]] }
 0x125   : > { %v1109_v36 = vmul.f32 %v1107_v33, %v2568_v44  ;;  %v1110_v61 = vmul.f32 %v1107_v33, %v2591_v59 }
 0x126   : > { %v2777_v40 = vpop.permute.xlu1 %400  ;;  %v2779_v42 = vpop.permute.xlu0 %538 }
 0x127   : > { %v1115_v58 = vrot.slane %v1109_v36, 1  ;;  %v1117_v18 = vrot.slane %v1110_v61, 1  ;;  %v306_v61 = vmul.f32 %v2857_v24, %v2591_v59 }
 0x128   : > { %979 = vrot.lane.b32.xlu0 %v976_v46, %s2489_s15  ;;  %946 = vrot.lane.b32.xlu1 %v943_v47, %s2488_s12  ;;  %v2886_v46 = vmul.f32 %v285_v23, %v2568_v44  ;;  %v1108_v47 = vmul.f32 %v1107_v33, %v2564_v41  ;;  %v1135_v23 = vrot.slane %v1129_v63, 2  ;;  %v312_v33 = vrot.slane %v2920_v6, 2 }
 0x129   : > { %v2977_v6 = vmul.f32 %v2866_v27, %v2568_v44 }
 0x12a   : > { %v2796_v52 = vpop.permute.xlu1 %540  ;;  %v2798_v53 = vpop.permute.xlu0 %678  ;;  %v1114_v7 = vrot.slane %v1108_v47, 1  ;;  %v1118_v47 = vsel %vm292_vm4, %v1115_v58, %v1117_v18  ;;  %v314_v18 = vrot.slane %v306_v61, 2 }
 0x12c   : > { %1000 = vrot.lane.b32.xlu0 %v997_v54, %s2489_s15  ;;  %981 = vrot.lane.b32.xlu1 %v978_v57, %s2489_s15  ;;  %v1081_v54 = vsel %vm382_vm9, %v1079_v39, %v1080_v32  ;;  %v1062_v57 = vsel %vm364_vm8, %v1059_v14, %v1061_v35  ;;  %v1136_v14 = vrot.slane %v2898_v55, 2  ;;  %v2954_v35 = vmul.f32 %v2866_v27, %v2564_v41 }
 0x12d   : > { %v1152_v55 = vmul.f32 %v1149_v48, %v2591_v59 }
 0x12e   : > { %v2815_v1 = vpop.permute.xlu1 %680  ;;  %v2817_v2 = vpop.permute.xlu0 %818  ;;  %v1137_v45 = vsel %vm310_vm5, %v1135_v23, %v1136_v14 }
 0x130   : > { %1021 = vrot.lane.b32.xlu0 %v1018_v3, %s2489_s15  ;;  %1002 = vrot.lane.b32.xlu1 %v999_v5, %s2489_s15  ;;  %v2915_v3 = vstv %s2853_s20  ;;  %v294_v5 = vrot.slane %v2886_v46, 1  ;;  %v1157_v46 = vrot.slane %v2929_v15, 3  ;;  %s3296_s20 = sld [smem:[#allocation4 + $0x50]] }
 0x132   : > { %v2835_v12 = vpop.permute.xlu1 %820  ;;  %v2837_v13 = vpop.permute.xlu0 %958  ;;  %v295_v36 = vsel %vm292_vm4, %v293_v4, %v294_v5  ;;  %v297_v24 = vsel %vm292_vm4, %v294_v5, %v296_v37 }
 0x133   : > { %v300_v4 = vadd.f32 %v295_v36, %v280_v62  ;;  %v365_v36 = vrot.slane %v2954_v35, 5  ;;  %v1194_v35 = vmul.f32 %v2912_v0, %v2591_v59 }
 0x134   : > { %1042 = vrot.lane.b32.xlu0 %v1039_v16, %s2489_s15  ;;  %1023 = vrot.lane.b32.xlu1 %v1020_v17, %s2489_s15  ;;  %v1116_v16 = vsel %vm292_vm4, %v1114_v7, %v1115_v58  ;;  %v1083_v17 = vsel %vm382_vm9, %v1080_v32, %v1082_v60  ;;  %v2946_v32 = vmul.f32 %v2863_v26, %v2564_v41  ;;  %v330_v60 = vrot.slane %v2938_v22, 3 }
 0x135   : > { %v313_v58 = vsel %vm310_vm5, %v311_v8, %v312_v33  ;;  %v281_v7 = vmul.f32 %v279_v20, %v2568_v44  ;;  %v2992_v8 = vmul.f32 %v2912_v0, %v2568_v44  ;;  %v1173_v20 = vmul.f32 %v2901_v56, %v2591_v59 }
 0x136   : > { %v2868_v28 = vpop.permute.xlu1 %960  ;;  %v2870_v29 = vpop.permute.xlu0 %1098  ;;  %v347_v5 = vrot.slane %v2946_v32, 4 }
 0x137   : > { %v1180_v61 = vrot.slane %v1173_v20, 4  ;;  %v1201_v20 = vrot.slane %v1194_v35, 5  ;;  %v1379_v35 = vstv %s3025_s23  ;;  %s3340_s23 = sld [smem:[#allocation4 + $0x35]] }
 0x138   : > { %1063 = vrot.lane.b32.xlu0 %v1060_v31, %s2489_s15  ;;  %1044 = vrot.lane.b32.xlu1 %v1041_v34, %s2489_s15  ;;  %v1150_v31 = vmul.f32 %v1149_v48, %v2564_v41  ;;  %v2950_v34 = vmul.f32 %v2863_v26, %v2568_v44  ;;  %v1171_v48 = vmul.f32 %v2901_v56, %v2564_v41  ;;  %v1159_v41 = vrot.slane %v1152_v55, 3 }
 0x13a   : > { %v2892_v50 = vpop.permute.xlu1 %1100  ;;  %v2894_v51 = vpop.permute.xlu0 %419  ;;  %v1156_v63 = vrot.slane %v1150_v31, 3  ;;  %v348_v23 = vrot.slane %v2950_v34, 4  ;;  %v301_v31 = vadd.f32 %v297_v24, %v281_v7  ;;  %v1160_v55 = vsel %vm328_vm6, %v1157_v46, %v1159_v41 }
 0x13c   : > { %1084 = vrot.lane.b32.xlu0 %v1081_v54, %s2489_s15  ;;  %1065 = vrot.lane.b32.xlu1 %v1062_v57, %s2489_s15  ;;  %v2966_v54 = vmul.f32 %v2901_v56, %v2568_v44  ;;  %v329_v57 = vrot.slane %v322_v21, 3  ;;  %v1158_v62 = vsel %vm328_vm6, %v1156_v63, %v1157_v46  ;;  %v2432_v44 = vld [vmem:[#allocation3] sm:$0xff]  ;;  %v318_v21 = vadd.f32 %v313_v58, %v300_v4 }
 0x13d   : > { %v1177_v56 = vrot.slane %v1171_v48, 4  ;;  %v342_v63 = vmul.f32 %v2863_v26, %v2591_v59  ;;  %v315_v4 = vsel %vm310_vm5, %v312_v33, %v314_v18  ;;  %v366_v46 = vrot.slane %v2977_v6, 5  ;;  %v3046_v6 = vld [vmem:[#allocation3 + $0x18] sm:$0xff]  ;;  %v2434_v18 = vld [vmem:[#allocation3 + $0x10] sm:$0x3f] }
 0x13e   : > { %v2923_v10 = vpop.permute.xlu1 %421  ;;  %v2925_v11 = vpop.permute.xlu0 %440  ;;  %v331_v32 = vsel %vm328_vm6, %v329_v57, %v330_v60  ;;  %v332_v57 = vrot.slane %v324_v19, 3  ;;  %v319_v7 = vadd.f32 %v315_v4, %v301_v31  ;;  %v376_v24 = vmul.f32 %v2432_v44, %v2879_v38 }
 0x13f   : > { %v336_v48 = vadd.f32 %v331_v32, %v318_v21  ;;  %v1215_v19 = vmul.f32 %v2434_v18, %v2915_v3  ;;  %v350_v21 = vrot.slane %v342_v63, 4  ;;  %v360_v31 = vmul.f32 %v2434_v18, %v2866_v27 }
 0x140   : > { %1119 = vrot.lane.b32.xlu0 %v1116_v16, %s2490_s17  ;;  %1086 = vrot.lane.b32.xlu1 %v1083_v17, %s2489_s15  ;;  %v1139_v16 = vsel %vm310_vm5, %v1136_v14, %v1138_v49  ;;  %v1178_v17 = vrot.slane %v2966_v54, 4  ;;  %v1192_v14 = vmul.f32 %v2432_v44, %v2912_v0  ;;  %v1213_v0 = vmul.f32 %v2432_v44, %v2915_v3 }
 0x141   : > { %v1358_v44 = vstv %s2998_s21  ;;  %v1344_v27 = vstv %s3019_s22  ;;  %v383_v63 = vrot.slane %v376_v24, 6  ;;  %v368_v4 = vrot.slane %v360_v31, 5  ;;  %s3304_s21 = sld [smem:[#allocation4 + $0x57]] }
 0x142   : > { %v2957_v39 = vpop.permute.xlu1 %442  ;;  %v2959_v43 = vpop.permute.xlu0 %461  ;;  %v1179_v54 = vsel %vm346_vm7, %v1177_v56, %v1178_v17  ;;  %v1198_v58 = vrot.slane %v1192_v14, 5  ;;  %v1181_v41 = vsel %vm346_vm7, %v1178_v17, %v1180_v61  ;;  %v349_v14 = vsel %vm346_vm7, %v347_v5, %v348_v23  ;;  %s3335_s22 = sld [smem:[#allocation4 + $0x3c]] }
 0x143   : > { %v333_v56 = vsel %vm328_vm6, %v330_v60, %v332_v57  ;;  %v354_v17 = vadd.f32 %v349_v14, %v336_v48  ;;  %v1359_v22 = vmul.f32 %v1358_v44, %v3046_v6  ;;  %v1222_v61 = vrot.slane %v1215_v19, 6  ;;  %v3078_v57 = vld [vmem:[#allocation3 + $0x28] sm:$0x3f] }
 0x144   : > { %1140 = vrot.lane.b32.xlu0 %v1137_v45, %s2490_s17  ;;  %1121 = vrot.lane.b32.xlu1 %v1118_v47, %s2490_s17  ;;  %v1199_v45 = vrot.slane %v2992_v8, 5  ;;  %v2433_v47 = vld [vmem:[#allocation3 + $0x8] sm:$0xff]  ;;  %v337_v32 = vadd.f32 %v333_v56, %v319_v7  ;;  %v351_v48 = vsel %vm346_vm7, %v348_v23, %v350_v21  ;;  %v1345_v24 = vmul.f32 %v1344_v27, %v3046_v6 }
 0x145   : > { %v3017_v49 = vmul.f32 %v2433_v47, %v2915_v3  ;;  %v3038_v59 = vmul.f32 %v2433_v47, %v2879_v38  ;;  %v367_v3 = vsel %vm364_vm8, %v365_v36, %v366_v46  ;;  %v1219_v47 = vrot.slane %v1213_v0, 6 }
 0x146   : > { %v2985_v9 = vpop.permute.xlu1 %463  ;;  %v2987_v15 = vpop.permute.xlu0 %482  ;;  %v1202_v36 = vsel %vm364_vm8, %v1199_v45, %v1201_v20  ;;  %v372_v7 = vadd.f32 %v367_v3, %v354_v17  ;;  %v355_v0 = vadd.f32 %v351_v48, %v337_v32  ;;  %v1365_v20 = vrot.slane %v1359_v22, 1 }
 0x147   : > { %v1220_v8 = vrot.slane %v3017_v49, 6  ;;  %v384_v49 = vrot.slane %v3038_v59, 6  ;;  %v1400_v59 = vstv %s3034_s24  ;;  %v1361_v19 = vmul.f32 %v1358_v44, %v3078_v57  ;;  %s3343_s24 = sld [smem:[#allocation4 + $0x43]] }
 0x148   : > { %1161 = vrot.lane.b32.xlu0 %v1158_v62, %s2490_s17  ;;  %1142 = vrot.lane.b32.xlu1 %v1139_v16, %s2490_s17  ;;  %v1200_v62 = vsel %vm364_vm8, %v1198_v58, %v1199_v45  ;;  %v3048_v16 = vld [vmem:[#allocation3 + $0x20] sm:$0xff]  ;;  %v378_v58 = vmul.f32 %v2434_v18, %v2879_v38  ;;  %v1380_v38 = vmul.f32 %v1379_v35, %v3046_v6 }
 0x149   : > { %v3071_v60 = vmul.f32 %v1358_v44, %v3048_v16  ;;  %v385_v45 = vsel %vm382_vm9, %v383_v63, %v384_v49  ;;  %v1381_v34 = vmul.f32 %v1379_v35, %v3048_v16  ;;  %v1223_v23 = vsel %vm382_vm9, %v1220_v8, %v1222_v61 }
 0x14a   : > { %v3011_v37 = vpop.permute.xlu1 %484  ;;  %v3013_v25 = vpop.permute.xlu0 %503  ;;  %v386_v14 = vrot.slane %v378_v58, 6  ;;  %v369_v21 = vsel %vm364_vm8, %v366_v46, %v368_v4  ;;  %v1401_v31 = vmul.f32 %v1400_v59, %v3046_v6  ;;  %v1402_v56 = vmul.f32 %v1400_v59, %v3048_v16 }
 0x14b   : > { %v1366_v18 = vrot.slane %v3071_v60, 1  ;;  %v373_v17 = vadd.f32 %v369_v21, %v355_v0  ;;  %v1346_v3 = vmul.f32 %v1344_v27, %v3048_v16  ;;  %v1387_v22 = vrot.slane %v1381_v34, 2 }
 0x14c   : > { %1182 = vrot.lane.b32.xlu0 %v1179_v54, %s2490_s17  ;;  %1163 = vrot.lane.b32.xlu1 %v1160_v55, %s2490_s17  ;;  %v1221_v55 = vsel %vm382_vm9, %v1219_v47, %v1220_v8  ;;  %v390_v8 = vadd.f32 %v385_v45, %v372_v7  ;;  %v1386_v47 = vrot.slane %v1380_v38, 2  ;;  %v1382_v46 = vmul.f32 %v1379_v35, %v3078_v57 }
 0x14d   : > { %v1421_v60 = vstv %s3073_s25  ;;  %v1368_v61 = vrot.slane %v1361_v19, 1  ;;  %v387_v63 = vsel %vm382_vm9, %v384_v49, %v386_v14  ;;  %v1407_v27 = vrot.slane %v1401_v31, 3  ;;  %s3352_s25 = sld [smem:[#allocation4 + $0x4a]] }
 0x14e   : > { %v3040_v26 = vpop.permute.xlu1 %505  ;;  %v3042_v33 = vpop.permute.xlu0 %524  ;;  %v1408_v4 = vrot.slane %v1402_v56, 3  ;;  %v391_v58 = vadd.f32 %v387_v63, %v373_v17  ;;  %v1422_v48 = vmul.f32 %v1421_v60, %v3046_v6  ;;  %v1388_v49 = vsel %vm310_vm5, %v1386_v47, %v1387_v22 }
 0x14f   : > { %v1389_v45 = vrot.slane %v1382_v46, 2 }
 0x150   : > { %1203 = vrot.lane.b32.xlu0 %v1200_v62, %s2490_s17  ;;  %1184 = vrot.lane.b32.xlu1 %v1181_v41, %s2490_s17  ;;  %v405_v38 = vadd.f32 %v2777_v40, %v391_v58  ;;  %v1428_v21 = vrot.slane %v1422_v48, 4 }
 0x152   : > { %v3064_v5 = vpop.permute.xlu1 %526  ;;  %v3066_v54 = vpop.permute.xlu0 %559  ;;  %v426_v19 = vadd.f32 %v2923_v10, %v405_v38 }
 0x154   : > { %1224 = vrot.lane.b32.xlu0 %v1221_v55, %s2490_s17  ;;  %1205 = vrot.lane.b32.xlu1 %v1202_v36, %s2490_s17  ;;  %v404_v55 = vadd.f32 %v2764_v30, %v390_v8  ;;  %v1367_v36 = vsel %vm292_vm4, %v1365_v20, %v1366_v18  ;;  %v1423_v30 = vmul.f32 %v1421_v60, %v3048_v16 }
 0x155   : > { %v1409_v20 = vsel %vm328_vm6, %v1407_v27, %v1408_v4  ;;  %v447_v17 = vadd.f32 %v2957_v39, %v426_v19 }
 0x156   : > { %v3088_v62 = vpop.permute.xlu1 %561  ;;  %v3090_v41 = vpop.permute.xlu0 %580  ;;  %v425_v35 = vadd.f32 %v2894_v51, %v404_v55  ;;  %v1442_v51 = vstv %s3098_s26  ;;  %s3355_s26 = sld [smem:[#allocation4 + $0x51]] }
 0x157   : > { %v1443_v56 = vmul.f32 %v1442_v51, %v3046_v6  ;;  %v1444_v8 = vmul.f32 %v1442_v51, %v3048_v16  ;;  %v468_v47 = vadd.f32 %v2985_v9, %v447_v17  ;;  %v1445_v55 = vmul.f32 %v1442_v51, %v3078_v57 }
 0x158   : > { %1349 = vrot.lane.b32.xlu0 %v1345_v24, %s2485_s30  ;;  %1226 = vrot.lane.b32.xlu1 %v1223_v23, %s2490_s17  ;;  %v1403_v24 = vmul.f32 %v1400_v59, %v3078_v57  ;;  %v446_v34 = vadd.f32 %v2925_v11, %v425_v35  ;;  %v1369_v23 = vsel %vm292_vm4, %v1366_v18, %v1368_v61  ;;  %v1429_v59 = vrot.slane %v1423_v30, 4 }
 0x159   : > { %v1390_v11 = vsel %vm310_vm5, %v1387_v22, %v1389_v45  ;;  %v1450_v61 = vrot.slane %v1444_v8, 5  ;;  %v489_v9 = vadd.f32 %v3011_v37, %v468_v47  ;;  %v1452_v35 = vrot.slane %v1445_v55, 5 }
 0x15a   : > { %v3106_v32 = vpop.permute.xlu1 %582  ;;  %v3108_v44 = vpop.permute.xlu0 %601  ;;  %v467_v14 = vadd.f32 %v2959_v43, %v446_v34  ;;  %v1410_v18 = vrot.slane %v1403_v24, 3  ;;  %v1424_v43 = vmul.f32 %v1421_v60, %v3078_v57  ;;  %v1430_v46 = vsel %vm346_vm7, %v1428_v21, %v1429_v59 }
 0x15b   : > { %v1498_v45 = vstv %s3144_s28  ;;  %v1453_v19 = vsel %vm364_vm8, %v1450_v61, %v1452_v35  ;;  %s3390_s28 = sld [smem:[#allocation4 + $0x5f]] }
 0x15c   : > { %1370 = vrot.lane.b32.xlu0 %v1367_v36, %s2485_s30  ;;  %1351 = vrot.lane.b32.xlu1 %v1346_v3, %s2485_s30  ;;  %v488_v10 = vadd.f32 %v2987_v15, %v467_v14  ;;  %v1463_v3 = vstv %s3114_s27  ;;  %v1411_v60 = vsel %vm328_vm6, %v1408_v4, %v1410_v18  ;;  %v1449_v36 = vrot.slane %v1443_v56, 5  ;;  %s3360_s27 = sld [smem:[#allocation4 + $0x58]] }
 0x15d   : > { %v1464_v63 = vmul.f32 %v1463_v3, %v3046_v6  ;;  %v1431_v27 = vrot.slane %v1424_v43, 4  ;;  %v1465_v58 = vmul.f32 %v1463_v3, %v3048_v16  ;;  %v510_v4 = vadd.f32 %v3040_v26, %v489_v9 }
 0x15e   : > { %v3122_v7 = vpop.permute.xlu1 %603  ;;  %v3124_v0 = vpop.permute.xlu0 %622  ;;  %v509_v22 = vadd.f32 %v3013_v25, %v488_v10  ;;  %v1451_v37 = vsel %vm364_vm8, %v1449_v36, %v1450_v61  ;;  %v1484_v26 = vstv %s3156_s29  ;;  %v1519_v18 = vstv %s2351_s3  ;;  %s3397_s29 = sld [smem:[#allocation4 + $0x38]] }
 0x15f   : > { %v531_v38 = vadd.f32 %v3064_v5, %v510_v4  ;;  %v1432_v34 = vsel %vm346_vm7, %v1429_v59, %v1431_v27  ;;  %v1500_v5 = vmul.f32 %v1498_v45, %v3048_v16  ;;  %v1485_v8 = vmul.f32 %v1484_v26, %v3046_v6  ;;  %s3401_s3 = sld [smem:[#allocation4 + $0x3f]] }
 0x160   : > { %1391 = vrot.lane.b32.xlu0 %v1388_v49, %s2485_s30  ;;  %1372 = vrot.lane.b32.xlu1 %v1369_v23, %s2485_s30  ;;  %v530_v25 = vadd.f32 %v3042_v33, %v509_v22  ;;  %v1470_v49 = vrot.slane %v1464_v63, 6  ;;  %v1466_v33 = vmul.f32 %v1463_v3, %v3078_v57  ;;  %v1471_v23 = vrot.slane %v1465_v58, 6 }
 0x161   : > { %v545_v21 = vadd.f32 %v2796_v52, %v531_v38  ;;  %v1501_v17 = vmul.f32 %v1498_v45, %v3078_v57  ;;  %v1506_v3 = vrot.slane %v1500_v5, 1  ;;  %v1521_v47 = vmul.f32 %v1519_v18, %v3048_v16 }
 0x162   : > { %v3137_v31 = vpop.permute.xlu1 %624  ;;  %v3139_v40 = vpop.permute.xlu0 %643  ;;  %v544_v24 = vadd.f32 %v2779_v42, %v530_v25  ;;  %v1473_v14 = vrot.slane %v1466_v33, 6  ;;  %v1499_v42 = vmul.f32 %v1498_v45, %v3046_v6  ;;  %v1486_v55 = vmul.f32 %v1484_v26, %v3048_v16 }
 0x163   : > { %v566_v22 = vadd.f32 %v3088_v62, %v545_v21  ;;  %v1508_v63 = vrot.slane %v1501_v17, 1  ;;  %v1522_v62 = vmul.f32 %v1519_v18, %v3078_v57  ;;  %v1527_v58 = vrot.slane %v1521_v47, 2 }
 0x164   : > { %1412 = vrot.lane.b32.xlu0 %v1409_v20, %s2485_s30  ;;  %1393 = vrot.lane.b32.xlu1 %v1390_v11, %s2485_s30  ;;  %v565_v59 = vadd.f32 %v3066_v54, %v544_v24  ;;  %v1472_v11 = vsel %vm382_vm9, %v1470_v49, %v1471_v23  ;;  %v1505_v52 = vrot.slane %v1499_v42, 1  ;;  %v1520_v54 = vmul.f32 %v1519_v18, %v3046_v6 }
 0x165   : > { %v587_v36 = vadd.f32 %v3106_v32, %v566_v22  ;;  %v1561_v4 = vstv %s3190_s6  ;;  %v1509_v24 = vsel %vm292_vm4, %v1506_v3, %v1508_v63  ;;  %v1529_v38 = vrot.slane %v1522_v62, 2  ;;  %s3413_s6 = sld [smem:[#allocation4 + $0x31]] }
 0x166   : > { %v3158_v39 = vpop.permute.xlu1 %645  ;;  %v3160_v15 = vpop.permute.xlu0 %664  ;;  %v586_v56 = vadd.f32 %v3090_v41, %v565_v59  ;;  %v1474_v41 = vsel %vm382_vm9, %v1471_v23, %v1473_v14  ;;  %v1507_v25 = vsel %vm292_vm4, %v1505_v52, %v1506_v3  ;;  %v1526_v27 = vrot.slane %v1520_v54, 2 }
 0x167   : > { %v608_v35 = vadd.f32 %v3122_v7, %v587_v36  ;;  %v1563_v23 = vmul.f32 %v1561_v4, %v3048_v16  ;;  %v1530_v18 = vsel %vm310_vm5, %v1527_v58, %v1529_v38 }
 0x168   : > { %1433 = vrot.lane.b32.xlu0 %v1430_v46, %s2485_s30  ;;  %1414 = vrot.lane.b32.xlu1 %v1411_v60, %s2485_s30  ;;  %v607_v46 = vadd.f32 %v3108_v44, %v586_v56  ;;  %v1540_v60 = vstv %s2352_s5  ;;  %s3408_s5 = sld [smem:[#allocation4 + $0x4d]] }
 0x169   : > { %v1541_v32 = vmul.f32 %v1540_v60, %v3046_v6  ;;  %v629_v49 = vadd.f32 %v3137_v31, %v608_v35  ;;  %v1543_v45 = vmul.f32 %v1540_v60, %v3078_v57  ;;  %v1569_v56 = vrot.slane %v1563_v23, 4 }
 0x16a   : > { %v3170_v48 = vpop.permute.xlu1 %666  ;;  %v3172_v30 = vpop.permute.xlu0 %699  ;;  %v628_v61 = vadd.f32 %v3124_v0, %v607_v46  ;;  %v1542_v0 = vmul.f32 %v1540_v60, %v3048_v16 }
 0x16b   : > { %v650_v26 = vadd.f32 %v3158_v39, %v629_v49  ;;  %v1547_v14 = vrot.slane %v1541_v32, 3  ;;  %v1550_v21 = vrot.slane %v1543_v45, 3 }
 0x16c   : > { %1454 = vrot.lane.b32.xlu0 %v1451_v37, %s2485_s30  ;;  %1435 = vrot.lane.b32.xlu1 %v1432_v34, %s2485_s30  ;;  %v649_v37 = vadd.f32 %v3139_v40, %v628_v61  ;;  %v1562_v34 = vmul.f32 %v1561_v4, %v3046_v6  ;;  %v1548_v31 = vrot.slane %v1542_v0, 3 }
 0x16d   : > { %v671_v5 = vadd.f32 %v3170_v48, %v650_v26  ;;  %v1624_v26 = vstv %s3264_s16  ;;  %s3484_s16 = sld [smem:[#allocation4 + $0x36]] }
 0x16e   : > { %v3183_v51 = vpop.permute.xlu1 %701  ;;  %v3185_v20 = vpop.permute.xlu0 %720  ;;  %v670_v33 = vadd.f32 %v3160_v15, %v649_v37  ;;  %v1582_v15 = vstv %s3212_s8  ;;  %v1568_v39 = vrot.slane %v1562_v34, 4  ;;  %v1549_v17 = vsel %vm328_vm6, %v1547_v14, %v1548_v31  ;;  %s3416_s8 = sld [smem:[#allocation4 + $0x54]] }
 0x16f   : > { %v1583_v52 = vmul.f32 %v1582_v15, %v3046_v6  ;;  %v1584_v3 = vmul.f32 %v1582_v15, %v3048_v16  ;;  %v1551_v47 = vsel %vm328_vm6, %v1548_v31, %v1550_v21 }
 0x170   : > { %1475 = vrot.lane.b32.xlu0 %v1472_v11, %s2485_s30  ;;  %1456 = vrot.lane.b32.xlu1 %v1453_v19, %s2485_s30  ;;  %v1528_v19 = vsel %vm310_vm5, %v1526_v27, %v1527_v58  ;;  %v684_v42 = vadd.f32 %v2798_v53, %v670_v33  ;;  %v685_v53 = vadd.f32 %v2815_v1, %v671_v5 }
 0x171   : > { %v1570_v1 = vsel %vm346_vm7, %v1568_v39, %v1569_v56  ;;  %v1589_v63 = vrot.slane %v1583_v52, 5  ;;  %v1680_v39 = vstv %s3278_s19  ;;  %v1626_v52 = vmul.f32 %v1624_v26, %v3048_v16  ;;  %s3513_s19 = sld [smem:[#allocation4 + $0x4b]] }
 0x172   : > { %v3200_v10 = vpop.permute.xlu1 %722  ;;  %v3202_v43 = vpop.permute.xlu0 %741  ;;  %v705_v48 = vadd.f32 %v3172_v30, %v684_v42  ;;  %v1590_v30 = vrot.slane %v1584_v3, 5  ;;  %v706_v62 = vadd.f32 %v3183_v51, %v685_v53 }
 0x174   : > { %1477 = vrot.lane.b32.xlu1 %v1474_v41, %s2485_s30  ;;  %1489 = vrot.lane.b32.xlu0 %v1485_v8, %s2486_s4  ;;  %s3227_s30 = sld [smem:[#allocation4 + $0x5d]]  ;;  %v1564_v8 = vmul.f32 %v1561_v4, %v3078_v57  ;;  %v726_v61 = vadd.f32 %v3185_v20, %v705_v48  ;;  %v727_v0 = vadd.f32 %v3200_v10, %v706_v62 }
 0x175   : > { %v1591_v51 = vsel %vm364_vm8, %v1589_v63, %v1590_v30  ;;  %v1683_v62 = vmul.f32 %v1680_v39, %v3078_v57 }
 0x176   : > { %v3217_v44 = vpop.permute.xlu1 %743  ;;  %v3219_v9 = vpop.permute.xlu0 %762  ;;  %v1571_v41 = vrot.slane %v1564_v8, 4 }
 0x177   : > { %v748_v33 = vadd.f32 %v3217_v44, %v727_v0 }
 0x178   : > { %1491 = vrot.lane.b32.xlu1 %v1486_v55, %s2486_s4  ;;  %1510 = vrot.lane.b32.xlu0 %v1507_v25, %s2486_s4  ;;  %v1585_v55 = vmul.f32 %v1582_v15, %v3078_v57  ;;  %v747_v25 = vadd.f32 %v3202_v43, %v726_v61  ;;  %v1572_v4 = vsel %vm346_vm7, %v1569_v56, %v1571_v41  ;;  %v1638_v43 = vstv %s3252_s14  ;;  %s3450_s14 = sld [smem:[#allocation4 + $0x3d]] }
 0x179   : > { %v1640_v31 = vmul.f32 %v1638_v43, %v3048_v16  ;;  %v1659_v15 = vstv %s3268_s18  ;;  %v1641_v42 = vmul.f32 %v1638_v43, %v3078_v57  ;;  %v1701_v61 = vstv %s3296_s20  ;;  %s3489_s18 = sld [smem:[#allocation4 + $0x44]] }
 0x17a   : > { %v3234_v7 = vpop.permute.xlu1 %764  ;;  %v784_v40 = vpop.permute.xlu0 %783  ;;  %v1603_v54 = vstv %s3227_s30  ;;  %v1592_v35 = vrot.slane %v1585_v55, 5  ;;  %v768_v49 = vadd.f32 %v3219_v9, %v747_v25  ;;  %v1639_v9 = vmul.f32 %v1638_v43, %v3046_v6  ;;  %s3422_s30 = sld [smem:[#allocation4 + $0x5b]] }
 0x17b   : > { %v1604_v60 = vmul.f32 %v1603_v54, %v3046_v6  ;;  %v1605_v36 = vmul.f32 %v1603_v54, %v3048_v16  ;;  %v1606_v27 = vmul.f32 %v1603_v54, %v3078_v57  ;;  %v1648_v3 = vrot.slane %v1641_v42, 1  ;;  %s3551_s20 = sld [smem:[#allocation4 + $0x52]] }
 0x17c   : > { %1512 = vrot.lane.b32.xlu1 %v1509_v24, %s2486_s4  ;;  %1531 = vrot.lane.b32.xlu0 %v1528_v19, %s2486_s4  ;;  %v789_v45 = vadd.f32 %v784_v40, %v768_v49  ;;  %v1593_v23 = vsel %vm364_vm8, %v1590_v30, %v1592_v35  ;;  %v769_v19 = vadd.f32 %v3234_v7, %v748_v33  ;;  %v1722_v35 = vstv %s3304_s21  ;;  %s3577_s21 = sld [smem:[#allocation4 + $0x59]] }
 0x17d   : > { %v1610_v37 = vrot.slane %v1604_v60, 6  ;;  %v1611_v32 = vrot.slane %v1605_v36, 6  ;;  %v1613_v24 = vrot.slane %v1606_v27, 6  ;;  %v1625_v40 = vmul.f32 %v1624_v26, %v3046_v6 }
 0x17e   : > { %v786_v59 = vpop.permute.xlu1 %785  ;;  %v805_v11 = vpop.permute.xlu0 %804  ;;  %v1660_v7 = vmul.f32 %v1659_v15, %v3046_v6  ;;  %v1662_v54 = vmul.f32 %v1659_v15, %v3078_v57  ;;  %v1681_v55 = vmul.f32 %v1680_v39, %v3046_v6  ;;  %v1702_v0 = vmul.f32 %v1701_v61, %v3046_v6 }
 0x17f   : > { %v1612_v10 = vsel %vm382_vm9, %v1610_v37, %v1611_v32  ;;  %v810_v14 = vadd.f32 %v805_v11, %v789_v45  ;;  %v790_v44 = vadd.f32 %v786_v59, %v769_v19  ;;  %v1661_v11 = vmul.f32 %v1659_v15, %v3048_v16 }
 0x180   : > { %1533 = vrot.lane.b32.xlu1 %v1530_v18, %s2486_s4  ;;  %1552 = vrot.lane.b32.xlu0 %v1549_v17, %s2486_s4  ;;  %v1614_v18 = vsel %vm382_vm9, %v1611_v32, %v1613_v24  ;;  %v1645_v17 = vrot.slane %v1639_v9, 1  ;;  %v1646_v59 = vrot.slane %v1640_v31, 1  ;;  %v1669_v30 = vrot.slane %v1662_v54, 2 }
 0x181   : > { %v824_v56 = vadd.f32 %v2817_v2, %v810_v14  ;;  %v1667_v41 = vrot.slane %v1661_v11, 2  ;;  %v1682_v2 = vmul.f32 %v1680_v39, %v3048_v16  ;;  %v1703_v49 = vmul.f32 %v1701_v61, %v3048_v16 }
 0x182   : > { %v807_v22 = vpop.permute.xlu1 %806  ;;  %v3259_v46 = vpop.permute.xlu0 %839  ;;  %v1647_v36 = vsel %vm292_vm4, %v1645_v17, %v1646_v59  ;;  %v1649_v63 = vsel %vm292_vm4, %v1646_v59, %v1648_v3  ;;  %v1690_v33 = vrot.slane %v1683_v62, 3  ;;  %v1708_v19 = vrot.slane %v1702_v0, 4 }
 0x183   : > { %v811_v8 = vadd.f32 %v807_v22, %v790_v44  ;;  %v845_v60 = vadd.f32 %v3259_v46, %v824_v56  ;;  %v1687_v46 = vrot.slane %v1681_v55, 3  ;;  %v1670_v43 = vsel %vm310_vm5, %v1667_v41, %v1669_v30 }
 0x184   : > { %1554 = vrot.lane.b32.xlu1 %v1551_v47, %s2486_s4  ;;  %1573 = vrot.lane.b32.xlu0 %v1570_v1, %s2486_s4  ;;  %v1666_v47 = vrot.slane %v1660_v7, 2  ;;  %v1709_v14 = vrot.slane %v1703_v49, 4  ;;  %v1725_v7 = vmul.f32 %v1722_v35, %v3078_v57 }
 0x185   : > { %v825_v22 = vadd.f32 %v2835_v12, %v811_v8 }
 0x186   : > { %v3275_v58 = vpop.permute.xlu1 %841  ;;  %v861_v20 = vpop.permute.xlu0 %860  ;;  %v1668_v27 = vsel %vm310_vm5, %v1666_v47, %v1667_v41  ;;  %v1710_v39 = vsel %vm346_vm7, %v1708_v19, %v1709_v14 }
 0x187   : > { %v866_v1 = vadd.f32 %v861_v20, %v845_v60  ;;  %v846_v37 = vadd.f32 %v3275_v58, %v825_v22  ;;  %v1704_v58 = vmul.f32 %v1701_v61, %v3078_v57  ;;  %v1764_v22 = vstv %s3340_s23  ;;  %s3652_s23 = sld [smem:[#allocation4 + $0x45]] }
 0x188   : > { %1575 = vrot.lane.b32.xlu1 %v1572_v4, %s2486_s4  ;;  %1594 = vrot.lane.b32.xlu0 %v1591_v51, %s2486_s4  ;;  %v1688_v4 = vrot.slane %v1682_v2, 3  ;;  %v1778_v2 = vstv %s3335_s22  ;;  %v1799_v61 = vstv %s3343_s24  ;;  %s3647_s22 = sld [smem:[#allocation4 + $0x37]] }
 0x189   : > { %v1779_v30 = vmul.f32 %v1778_v2, %v3046_v6  ;;  %v3369_v62 = vmul.f32 %v1778_v2, %v3048_v16  ;;  %s3662_s24 = sld [smem:[#allocation4 + $0x4c]] }
 0x18a   : > { %v863_v38 = vpop.permute.xlu1 %862  ;;  %v882_v34 = vpop.permute.xlu0 %881  ;;  %v1691_v44 = vsel %vm328_vm6, %v1688_v4, %v1690_v33 }
 0x18b   : > { %v887_v32 = vadd.f32 %v882_v34, %v866_v1  ;;  %v867_v20 = vadd.f32 %v863_v38, %v846_v37  ;;  %v1723_v34 = vmul.f32 %v1722_v35, %v3046_v6  ;;  %v1800_v37 = vmul.f32 %v1799_v61, %v3046_v6 }
 0x18c   : > { %1596 = vrot.lane.b32.xlu1 %v1593_v23, %s2486_s4  ;;  %1615 = vrot.lane.b32.xlu0 %v1612_v10, %s2486_s4  ;;  %v1689_v23 = vsel %vm328_vm6, %v1687_v46, %v1688_v4  ;;  %v1724_v10 = vmul.f32 %v1722_v35, %v3048_v16  ;;  %v1766_v35 = vmul.f32 %v1764_v22, %v3048_v16 }
 0x18d   : > { %v1806_v19 = vrot.slane %v1800_v37, 2 }
 0x18e   : > { %v884_v5 = vpop.permute.xlu1 %883  ;;  %v903_v21 = vpop.permute.xlu0 %902 }
 0x18f   : > { %v908_v51 = vadd.f32 %v903_v21, %v887_v32  ;;  %v888_v26 = vadd.f32 %v884_v5, %v867_v20  ;;  %v1711_v5 = vrot.slane %v1704_v58, 4  ;;  %v1729_v21 = vrot.slane %v1723_v34, 5 }
 0x190   : > { %1617 = vrot.lane.b32.xlu1 %v1614_v18, %s2486_s4  ;;  %1629 = vrot.lane.b32.xlu0 %v1625_v40, %s2487_s7  ;;  %s3319_s4 = sld [smem:[#allocation4 + $0x5e]]  ;;  %v1730_v18 = vrot.slane %v1724_v10, 5  ;;  %v1820_v32 = vstv %s3352_s25  ;;  %v1801_v20 = vmul.f32 %v1799_v61, %v3048_v16  ;;  %v1802_v58 = vmul.f32 %v1799_v61, %v3078_v57 }
 0x191   : > { %s3676_s25 = sld [smem:[#allocation4 + $0x53]] }
 0x192   : > { %v905_v53 = vpop.permute.xlu1 %904  ;;  %v924_v48 = vpop.permute.xlu0 %923  ;;  %v1731_v47 = vsel %vm364_vm8, %v1729_v21, %v1730_v18 }
 0x193   : > { %v929_v9 = vadd.f32 %v924_v48, %v908_v51  ;;  %v909_v31 = vadd.f32 %v905_v53, %v888_v26  ;;  %v1712_v53 = vsel %vm346_vm7, %v1709_v14, %v1711_v5  ;;  %v1732_v48 = vrot.slane %v1725_v7, 5 }
 0x194   : > { %1631 = vrot.lane.b32.xlu1 %v1626_v52, %s2487_s7  ;;  %1650 = vrot.lane.b32.xlu0 %v1647_v36, %s2487_s7  ;;  %v1841_v51 = vstv %s3355_s26  ;;  %v1821_v26 = vmul.f32 %v1820_v32, %v3046_v6  ;;  %v1822_v14 = vmul.f32 %v1820_v32, %v3048_v16  ;;  %v1809_v7 = vrot.slane %v1802_v58, 2  ;;  %s3688_s26 = sld [smem:[#allocation4 + $0x5a]] }
 0x196   : > { %v926_v25 = vpop.permute.xlu1 %925  ;;  %v945_v12 = vpop.permute.xlu0 %944  ;;  %v1743_v38 = vstv %s3319_s4  ;;  %s3644_s4 = sld [smem:[#allocation4 + $0x3e]] }
 0x197   : > { %v950_v15 = vadd.f32 %v945_v12, %v929_v9  ;;  %v930_v11 = vadd.f32 %v926_v25, %v909_v31  ;;  %v1744_v56 = vmul.f32 %v1743_v38, %v3046_v6  ;;  %v1745_v8 = vmul.f32 %v1743_v38, %v3048_v16 }
 0x198   : > { %1652 = vrot.lane.b32.xlu1 %v1649_v63, %s2487_s7  ;;  %1671 = vrot.lane.b32.xlu0 %v1668_v27, %s2487_s7  ;;  %v1746_v17 = vmul.f32 %v1743_v38, %v3078_v57  ;;  %v3372_v25 = vmul.f32 %v1778_v2, %v3078_v57  ;;  %v1733_v27 = vsel %vm364_vm8, %v1730_v18, %v1732_v48  ;;  %v1862_v9 = vstv %s3360_s27 }
 0x199   : > { %v964_v59 = vadd.f32 %v2837_v13, %v950_v15  ;;  %v1750_v41 = vrot.slane %v1744_v56, 6  ;;  %v1751_v55 = vrot.slane %v1745_v8, 6  ;;  %v1823_v38 = vmul.f32 %v1820_v32, %v3078_v57 }
 0x19a   : > { %v947_v45 = vpop.permute.xlu1 %946  ;;  %v980_v24 = vpop.permute.xlu0 %979  ;;  %v1753_v13 = vrot.slane %v1746_v17, 6  ;;  %v1842_v31 = vmul.f32 %v1841_v51, %v3046_v6  ;;  %v1807_v18 = vrot.slane %v1801_v20, 2 }
 0x19b   : > { %v951_v52 = vadd.f32 %v947_v45, %v930_v11  ;;  %v985_v36 = vadd.f32 %v980_v24, %v964_v59  ;;  %v1752_v46 = vsel %vm382_vm9, %v1750_v41, %v1751_v55  ;;  %v1785_v45 = vrot.slane %v1779_v30, 1 }
 0x19c   : > { %1673 = vrot.lane.b32.xlu1 %v1670_v43, %s2487_s7  ;;  %1692 = vrot.lane.b32.xlu0 %v1689_v23, %s2487_s7  ;;  %v1754_v4 = vsel %vm382_vm9, %v1751_v55, %v1753_v13  ;;  %v1786_v24 = vrot.slane %v3369_v62, 1  ;;  %v1788_v23 = vrot.slane %v3372_v25, 1  ;;  %v1863_v11 = vmul.f32 %v1862_v9, %v3046_v6 }
 0x19d   : > { %v965_v60 = vadd.f32 %v2868_v28, %v951_v52  ;;  %v1765_v28 = vmul.f32 %v1764_v22, %v3046_v6  ;;  %v1827_v59 = vrot.slane %v1821_v26, 3  ;;  %v1828_v52 = vrot.slane %v1822_v14, 3 }
 0x19e   : > { %v982_v40 = vpop.permute.xlu1 %981  ;;  %v1001_v42 = vpop.permute.xlu0 %1000  ;;  %v1787_v17 = vsel %vm292_vm4, %v1785_v45, %v1786_v24  ;;  %v1789_v22 = vsel %vm292_vm4, %v1786_v24, %v1788_v23  ;;  %v1810_v30 = vsel %vm310_vm5, %v1807_v18, %v1809_v7  ;;  %v1883_v62 = vstv %s3390_s28 }
 0x19f   : > { %v1006_v12 = vadd.f32 %v1001_v42, %v985_v36  ;;  %v986_v0 = vadd.f32 %v982_v40, %v965_v60  ;;  %v1843_v40 = vmul.f32 %v1841_v51, %v3048_v16  ;;  %v1844_v42 = vmul.f32 %v1841_v51, %v3078_v57 }
 0x1a0   : > { %1694 = vrot.lane.b32.xlu1 %v1691_v44, %s2487_s7  ;;  %1713 = vrot.lane.b32.xlu0 %v1710_v39, %s2487_s7  ;;  %v1864_v39 = vmul.f32 %v1862_v9, %v3048_v16  ;;  %v1808_v60 = vsel %vm310_vm5, %v1806_v19, %v1807_v18  ;;  %v1869_v36 = vrot.slane %v1863_v11, 5  ;;  %v3440_v20 = vmul.f32 %v1883_v62, %v3048_v16 }
 0x1a1   : > { %v1849_v41 = vrot.slane %v1843_v40, 4  ;;  %v1851_v55 = vrot.slane %v1844_v42, 4  ;;  %v3448_v45 = vstv %s3408_s5  ;;  %v1236_v23 = vstv %s3413_s6 }
 0x1a2   : > { %v1003_v3 = vpop.permute.xlu1 %1002  ;;  %v1022_v54 = vpop.permute.xlu0 %1021  ;;  %v1870_v61 = vrot.slane %v1864_v39, 5  ;;  %v3475_v19 = vstv %s3416_s8  ;;  %v3482_v40 = vmul.f32 %v3448_v45, %v3048_v16  ;;  %v3487_v18 = vstv %s3422_s30 }
 0x1a3   : > { %v1027_v49 = vadd.f32 %v1022_v54, %v1006_v12  ;;  %v1007_v34 = vadd.f32 %v1003_v3, %v986_v0  ;;  %v1830_v3 = vrot.slane %v1823_v38, 3  ;;  %v1848_v54 = vrot.slane %v1842_v31, 4 }
 0x1a4   : > { %1715 = vrot.lane.b32.xlu1 %v1712_v53, %s2487_s7  ;;  %1734 = vrot.lane.b32.xlu0 %v1731_v47, %s2487_s7  ;;  %v1865_v53 = vmul.f32 %v1862_v9, %v3078_v57  ;;  %v1871_v0 = vsel %vm364_vm8, %v1869_v36, %v1870_v61  ;;  %v1311_v11 = vmul.f32 %v3475_v19, %v3046_v6 }
 0x1a5   : > { %v1831_v25 = vsel %vm328_vm6, %v1828_v52, %v1830_v3  ;;  %v3498_v39 = vmul.f32 %v3475_v19, %v3048_v16 }
 0x1a6   : > { %v1024_v1 = vpop.permute.xlu1 %1023  ;;  %v1043_v63 = vpop.permute.xlu0 %1042  ;;  %v1872_v12 = vrot.slane %v1865_v53, 5  ;;  %v1237_v53 = vmul.f32 %v1236_v23, %v3046_v6 }
 0x1a7   : > { %v1048_v10 = vadd.f32 %v1043_v63, %v1027_v49  ;;  %v1028_v15 = vadd.f32 %v1024_v1, %v1007_v34  ;;  %v1884_v49 = vmul.f32 %v1883_v62, %v3046_v6 }
 0x1a8   : > { %1736 = vrot.lane.b32.xlu1 %v1733_v27, %s2487_s7  ;;  %1755 = vrot.lane.b32.xlu0 %v1752_v46, %s2487_s7  ;;  %v3429_v27 = vstv %s3397_s29  ;;  %v3455_v24 = vsel %vm364_vm8, %v1870_v61, %v1872_v12 }
 0x1a9   : > { %v3460_v58 = vmul.f32 %v3429_v27, %v3048_v16  ;;  %v1890_v31 = vrot.slane %v1884_v49, 6  ;;  %v1245_v36 = vmul.f32 %v3429_v27, %v3078_v57  ;;  %v1939_v49 = vstv %s3489_s18 }
 0x1aa   : > { %v1045_v43 = vpop.permute.xlu1 %1044  ;;  %v1064_v33 = vpop.permute.xlu0 %1063 }
 0x1ab   : > { %v1069_v44 = vadd.f32 %v1064_v33, %v1048_v10  ;;  %v1049_v56 = vadd.f32 %v1045_v43, %v1028_v15  ;;  %v1243_v33 = vmul.f32 %v3429_v27, %v3046_v6  ;;  %v1891_v15 = vrot.slane %v3440_v20, 6 }
 0x1ac   : > { %1757 = vrot.lane.b32.xlu1 %v1754_v4, %s2487_s7  ;;  %1769 = vrot.lane.b32.xlu0 %v1765_v28, %s2488_s12  ;;  %s3405_s7 = sld [smem:[#allocation4 + $0x46]]  ;;  %v1850_v28 = vsel %vm346_vm7, %v1848_v54, %v1849_v41  ;;  %v1852_v4 = vsel %vm346_vm7, %v1849_v41, %v1851_v55  ;;  %v1250_v7 = vrot.slane %v3460_v58, 1 }
 0x1ae   : > { %v1066_v5 = vpop.permute.xlu1 %1065  ;;  %v1085_v21 = vpop.permute.xlu0 %1084 }
 0x1af   : > { %v1090_v8 = vadd.f32 %v1085_v21, %v1069_v44  ;;  %v1070_v48 = vadd.f32 %v1066_v5, %v1049_v56  ;;  %v1294_v44 = vmul.f32 %v3448_v45, %v3046_v6  ;;  %v1249_v21 = vrot.slane %v1243_v33, 1 }
 0x1b0   : > { %1771 = vrot.lane.b32.xlu1 %v1766_v35, %s2488_s12  ;;  %1790 = vrot.lane.b32.xlu0 %v1787_v17, %s2488_s12  ;;  %v3435_v35 = vstv %s3401_s3  ;;  %v1886_v56 = vmul.f32 %v1883_v62, %v3078_v57 }
 0x1b1   : > { %v1104_v47 = vadd.f32 %v2870_v29, %v1090_v8  ;;  %v1829_v29 = vsel %vm328_vm6, %v1827_v59, %v1828_v52  ;;  %v1260_v34 = vmul.f32 %v3435_v35, %v3046_v6  ;;  %v3466_v10 = vmul.f32 %v3435_v35, %v3048_v16 }
 0x1b2   : > { %v1087_v2 = vpop.permute.xlu1 %1086  ;;  %v1120_v13 = vpop.permute.xlu0 %1119  ;;  %v3443_v51 = vstv %s3405_s7  ;;  %v1893_v62 = vrot.slane %v1886_v56, 6  ;;  %v1262_v33 = vmul.f32 %v3435_v35, %v3078_v57 }
 0x1b3   : > { %v1091_v1 = vadd.f32 %v1087_v2, %v1070_v48  ;;  %v1125_v63 = vadd.f32 %v1120_v13, %v1104_v47  ;;  %v1277_v26 = vmul.f32 %v3443_v51, %v3046_v6  ;;  %v3472_v9 = vmul.f32 %v3443_v51, %v3048_v16 }
 0x1b4   : > { %1792 = vrot.lane.b32.xlu1 %v1789_v22, %s2488_s12  ;;  %1811 = vrot.lane.b32.xlu0 %v1808_v60, %s2488_s12  ;;  %v1266_v8 = vrot.slane %v1260_v34, 2  ;;  %v1267_v17 = vrot.slane %v3466_v10, 2  ;;  %v1300_v48 = vrot.slane %v1294_v44, 4  ;;  %v1301_v47 = vrot.slane %v3482_v40, 4 }
 0x1b5   : > { %v1105_v46 = vadd.f32 %v2892_v50, %v1091_v1  ;;  %v1283_v59 = vrot.slane %v1277_v26, 3  ;;  %v1284_v52 = vrot.slane %v3472_v9, 3  ;;  %v3509_v16 = vmul.f32 %v3487_v18, %v3046_v6 }
 0x1b6   : > { %v1122_v37 = vpop.permute.xlu1 %1121  ;;  %v1141_v32 = vpop.permute.xlu0 %1140  ;;  %v1892_v2 = vsel %vm382_vm9, %v1890_v31, %v1891_v15  ;;  %v1918_v13 = vstv %s3450_s14  ;;  %v1251_v22 = vsel %vm292_vm4, %v1249_v21, %v1250_v7  ;;  %v1317_v60 = vrot.slane %v1311_v11, 5 }
 0x1b7   : > { %v1126_v50 = vadd.f32 %v1122_v37, %v1105_v46  ;;  %v1146_v43 = vadd.f32 %v1141_v32, %v1125_v63  ;;  %v1318_v6 = vrot.slane %v3498_v39, 5  ;;  %v3526_v61 = vsel %vm310_vm5, %v1266_v8, %v1267_v17  ;;  %v3533_v63 = vld [vmem:[#allocation3 + $0x20] sm:$0xff] }
 0x1b8   : > { %1813 = vrot.lane.b32.xlu1 %v1810_v30, %s2488_s12  ;;  %1832 = vrot.lane.b32.xlu0 %v1829_v29, %s2488_s12  ;;  %v3531_v1 = vsel %vm328_vm6, %v1283_v59, %v1284_v52  ;;  %v3537_v30 = vmul.f32 %v3533_v63, %v3487_v18  ;;  %v3542_v12 = vsel %vm346_vm7, %v1300_v48, %v1301_v47  ;;  %v1334_v27 = vrot.slane %v3509_v16, 6 }
 0x1b9   : > { %v1904_v46 = vstv %s3484_s16  ;;  %v3559_v20 = vsel %vm364_vm8, %v1317_v60, %v1318_v6  ;;  %v1894_v26 = vsel %vm382_vm9, %v1891_v15, %v1893_v62  ;;  %v1941_v57 = vmul.f32 %v3533_v63, %v1939_v49 }
 0x1ba   : > { %v1143_v14 = vpop.permute.xlu1 %1142  ;;  %v1162_v38 = vpop.permute.xlu0 %1161  ;;  %v1335_v34 = vrot.slane %v3537_v30, 6  ;;  %v1960_v15 = vstv %s3513_s19  ;;  %v1906_v48 = vmul.f32 %v3533_v63, %v1904_v46 }
 0x1bb   : > { %v1147_v42 = vadd.f32 %v1143_v14, %v1126_v50  ;;  %v1167_v5 = vadd.f32 %v1162_v38, %v1146_v43  ;;  %v1238_v50 = vmul.f32 %v3533_v63, %v1236_v23  ;;  %v1252_v43 = vrot.slane %v1245_v36, 1  ;;  %v3569_v14 = vld [vmem:[#allocation3 + $0x28] sm:$0x3f] }
 0x1bc   : > { %1834 = vrot.lane.b32.xlu1 %v1831_v25, %s2488_s12  ;;  %1853 = vrot.lane.b32.xlu0 %v1850_v28, %s2488_s12  ;;  %v3546_v28 = vld [vmem:[#allocation3 + $0x18] sm:$0xff]  ;;  %v1921_v38 = vmul.f32 %v3569_v14, %v1918_v13  ;;  %v1279_v23 = vmul.f32 %v3569_v14, %v3443_v51  ;;  %v1269_v51 = vrot.slane %v1262_v33, 2  ;;  %v1296_v8 = vmul.f32 %v3569_v14, %v3448_v45 }
 0x1bd   : > { %v1253_v56 = vsel %vm292_vm4, %v1250_v7, %v1252_v43  ;;  %v1942_v59 = vmul.f32 %v3569_v14, %v1939_v49  ;;  %v1961_v7 = vmul.f32 %v3546_v28, %v1960_v15  ;;  %v1962_v60 = vmul.f32 %v3533_v63, %v1960_v15 }
 0x1be   : > { %v1164_v3 = vpop.permute.xlu1 %1163  ;;  %v1183_v54 = vpop.permute.xlu0 %1182 }
 0x1bf   : > { %v1168_v41 = vadd.f32 %v1164_v3, %v1147_v42  ;;  %v1188_v55 = vadd.f32 %v1183_v54, %v1167_v5  ;;  %v1940_v5 = vmul.f32 %v3546_v28, %v1939_v49  ;;  %v1313_v54 = vmul.f32 %v3569_v14, %v3475_v19 }
 0x1c0   : > { %1855 = vrot.lane.b32.xlu1 %v1852_v4, %s2488_s12  ;;  %1874 = vrot.lane.b32.xlu0 %v1871_v0, %s2488_s12  ;;  %v1919_v4 = vmul.f32 %v3546_v28, %v1918_v13  ;;  %v1920_v0 = vmul.f32 %v3533_v63, %v1918_v13  ;;  %v1947_v13 = vrot.slane %v1941_v57, 2  ;;  %v1286_v19 = vrot.slane %v1279_v23, 3 }
 0x1c1   : > { %v1946_v58 = vrot.slane %v1940_v5, 2  ;;  %v1968_v33 = vrot.slane %v1962_v60, 3  ;;  %v1320_v23 = vrot.slane %v1313_v54, 5 }
 0x1c2   : > { %v1185_v29 = vpop.permute.xlu1 %1184  ;;  %v1204_v25 = vpop.permute.xlu0 %1203  ;;  %v1925_v42 = vrot.slane %v1919_v4, 1  ;;  %v1926_v11 = vrot.slane %v1920_v0, 1 }
 0x1c3   : > { %v1189_v37 = vadd.f32 %v1185_v29, %v1168_v41  ;;  %v1209_v32 = vadd.f32 %v1204_v25, %v1188_v55  ;;  %v1928_v41 = vrot.slane %v1921_v38, 1  ;;  %v1303_v29 = vrot.slane %v1296_v8, 4 }
 0x1c4   : > { %1876 = vrot.lane.b32.xlu1 %v3455_v24, %s2488_s12  ;;  %1895 = vrot.lane.b32.xlu0 %v1892_v2, %s2488_s12  ;;  %v1905_v24 = vmul.f32 %v3546_v28, %v1904_v46  ;;  %v1927_v62 = vsel %vm292_vm4, %v1925_v42, %v1926_v11  ;;  %v3600_v25 = vmul.f32 %v3569_v14, %v3487_v18  ;;  %v1949_v46 = vrot.slane %v1942_v59, 2 }
 0x1c5   : > { %v1948_v43 = vsel %vm310_vm5, %v1946_v58, %v1947_v13  ;;  %v1967_v18 = vrot.slane %v1961_v7, 3  ;;  %v1304_v59 = vsel %vm346_vm7, %v1301_v47, %v1303_v29 }
 0x1c6   : > { %v1206_v31 = vpop.permute.xlu1 %1205  ;;  %v1225_v44 = vpop.permute.xlu0 %1224  ;;  %v1337_v54 = vrot.slane %v3600_v25, 6 }
 0x1c7   : > { %v1210_v35 = vadd.f32 %v1206_v31, %v1189_v37  ;;  %v1230_v21 = vadd.f32 %v1225_v44, %v1209_v32  ;;  %v1929_v37 = vsel %vm292_vm4, %v1926_v11, %v1928_v41  ;;  %v1963_v32 = vmul.f32 %v3569_v14, %v1960_v15 }
 0x1c8   : > { %1897 = vrot.lane.b32.xlu1 %v1894_v26, %s2488_s12  ;;  %1909 = vrot.lane.b32.xlu0 %v1905_v24, %s2489_s15  ;;  %s3596_s12 = sld [smem:[#allocation4 + $0x60]]  ;;  %v1287_v44 = vsel %vm328_vm6, %v1284_v52, %v1286_v19  ;;  %v1969_v9 = vsel %vm328_vm6, %v1967_v18, %v1968_v33 }
 0x1c9   : > { %v1239_v3 = vadd.f32 %v1237_v53, %v1230_v21  ;;  %v1981_v53 = vstv %s3551_s20  ;;  %v1970_v57 = vrot.slane %v1963_v32, 3 }
 0x1ca   : > { %v1227_v55 = vpop.permute.xlu1 %1226  ;;  %v3590_v2 = vpop.permute.xlu0 %1349  ;;  %v1982_v26 = vmul.f32 %v3546_v28, %v1981_v53  ;;  %v1983_v31 = vmul.f32 %v3533_v63, %v1981_v53  ;;  %v1984_v10 = vmul.f32 %v3569_v14, %v1981_v53 }
 0x1cb   : > { %v1256_v36 = vadd.f32 %v1251_v22, %v1239_v3  ;;  %v1231_v45 = vadd.f32 %v1227_v55, %v1210_v35  ;;  %v1321_v3 = vsel %vm364_vm8, %v1318_v6, %v1320_v23 }
 0x1cc   : > { %1911 = vrot.lane.b32.xlu1 %v1906_v48, %s2489_s15  ;;  %1930 = vrot.lane.b32.xlu0 %v1927_v62, %s2489_s15  ;;  %v1988_v21 = vrot.slane %v1982_v26, 4  ;;  %v1991_v48 = vrot.slane %v1984_v10, 4 }
 0x1cd   : > { %v1273_v22 = vadd.f32 %v3526_v61, %v1256_v36  ;;  %v1240_v4 = vadd.f32 %v1238_v50, %v1231_v45  ;;  %v2002_v61 = vstv %s3577_s21  ;;  %v1270_v50 = vsel %vm310_vm5, %v1267_v17, %v1269_v51 }
 0x1ce   : > { %v3607_v0 = vpop.permute.xlu1 %1351  ;;  %v1371_v49 = vpop.permute.xlu0 %1370  ;;  %v2003_v52 = vmul.f32 %v3546_v28, %v2002_v61  ;;  %v2004_v11 = vmul.f32 %v3533_v63, %v2002_v61  ;;  %v1989_v51 = vrot.slane %v1983_v31, 4  ;;  %v2023_v8 = vstv %s3596_s12 }
 0x1cf   : > { %v1290_v24 = vadd.f32 %v3531_v1, %v1273_v22  ;;  %v1257_v38 = vadd.f32 %v1253_v56, %v1240_v4  ;;  %v1950_v1 = vsel %vm310_vm5, %v1947_v13, %v1949_v46  ;;  %v2005_v6 = vmul.f32 %v3569_v14, %v2002_v61 }
 0x1d0   : > { %1932 = vrot.lane.b32.xlu1 %v1929_v37, %s2489_s15  ;;  %1951 = vrot.lane.b32.xlu0 %v1948_v43, %s2489_s15  ;;  %v2009_v39 = vrot.slane %v2003_v52, 5  ;;  %v2024_v41 = vmul.f32 %v3546_v28, %v2023_v8  ;;  %v2025_v55 = vmul.f32 %v3533_v63, %v2023_v8  ;;  %v1990_v7 = vsel %vm346_vm7, %v1988_v21, %v1989_v51 }
 0x1d1   : > { %v1307_v42 = vadd.f32 %v3542_v12, %v1290_v24  ;;  %v1274_v5 = vadd.f32 %v1270_v50, %v1257_v38  ;;  %v1336_v12 = vsel %vm382_vm9, %v1334_v27, %v1335_v34  ;;  %v1971_v27 = vsel %vm328_vm6, %v1968_v33, %v1970_v57 }
 0x1d2   : > { %v1373_v35 = vpop.permute.xlu1 %1372  ;;  %v1392_v17 = vpop.permute.xlu0 %1391  ;;  %v2010_v60 = vrot.slane %v2004_v11, 5  ;;  %v1338_v36 = vsel %vm382_vm9, %v1335_v34, %v1337_v54  ;;  %v2012_v29 = vrot.slane %v2005_v6, 5  ;;  %v2030_v25 = vrot.slane %v2024_v41, 6 }
 0x1d3   : > { %v1324_v15 = vadd.f32 %v3559_v20, %v1307_v42  ;;  %v1291_v56 = vadd.f32 %v1287_v44, %v1274_v5  ;;  %v2026_v46 = vmul.f32 %v3569_v14, %v2023_v8  ;;  %v1992_v22 = vsel %vm346_vm7, %v1989_v51, %v1991_v48 }
 0x1d4   : > { %1953 = vrot.lane.b32.xlu1 %v1950_v1, %s2489_s15  ;;  %1972 = vrot.lane.b32.xlu0 %v1969_v9, %s2489_s15  ;;  %v2011_v4 = vsel %vm364_vm8, %v2009_v39, %v2010_v60  ;;  %v2058_v37 = vstv %s3644_s4  ;;  %v2044_v43 = vstv %s3647_s22  ;;  %v2013_v26 = vsel %vm364_vm8, %v2010_v60, %v2012_v29 }
 0x1d5   : > { %v1341_v20 = vadd.f32 %v1336_v12, %v1324_v15  ;;  %v1308_v16 = vadd.f32 %v1304_v59, %v1291_v56  ;;  %v2079_v38 = vstv %s3652_s23  ;;  %v2059_v50 = vmul.f32 %v3546_v28, %v2058_v37 }
 0x1d6   : > { %v1394_v40 = vpop.permute.xlu1 %1393  ;;  %v1413_v47 = vpop.permute.xlu0 %1412  ;;  %v2060_v44 = vmul.f32 %v3533_v63, %v2058_v37  ;;  %v2045_v42 = vmul.f32 %v3546_v28, %v2044_v43  ;;  %v2061_v5 = vmul.f32 %v3569_v14, %v2058_v37  ;;  %v2081_v9 = vmul.f32 %v3533_v63, %v2079_v38 }
 0x1d7   : > { %v1325_v58 = vadd.f32 %v1321_v3, %v1308_v16  ;;  %v1355_v13 = vadd.f32 %v3590_v2, %v1341_v20  ;;  %v2031_v2 = vrot.slane %v2025_v55, 6  ;;  %v2100_v21 = vstv %s3662_s24 }
 0x1d8   : > { %1974 = vrot.lane.b32.xlu1 %v1971_v27, %s2489_s15  ;;  %1993 = vrot.lane.b32.xlu0 %v1990_v7, %s2489_s15  ;;  %v2065_v15 = vrot.slane %v2059_v50, 1  ;;  %v2066_v56 = vrot.slane %v2060_v44, 1  ;;  %v2046_v8 = vmul.f32 %v3533_v63, %v2044_v43  ;;  %v2068_v12 = vrot.slane %v2061_v5, 1 }
 0x1d9   : > { %v1342_v45 = vadd.f32 %v1338_v36, %v1325_v58  ;;  %v1376_v62 = vadd.f32 %v1371_v49, %v1355_v13  ;;  %v2032_v24 = vsel %vm382_vm9, %v2030_v25, %v2031_v2  ;;  %v2082_v59 = vmul.f32 %v3569_v14, %v2079_v38 }
 0x1da   : > { %v1415_v53 = vpop.permute.xlu1 %1414  ;;  %v1434_v19 = vpop.permute.xlu0 %1433  ;;  %v2087_v16 = vrot.slane %v2081_v9, 2  ;;  %v2101_v27 = vmul.f32 %v3546_v28, %v2100_v21  ;;  %v2102_v48 = vmul.f32 %v3533_v63, %v2100_v21  ;;  %v2067_v39 = vsel %vm292_vm4, %v2065_v15, %v2066_v56 }
 0x1db   : > { %v1356_v30 = vadd.f32 %v3607_v0, %v1342_v45  ;;  %v1397_v34 = vadd.f32 %v1392_v17, %v1376_v62  ;;  %v2033_v0 = vrot.slane %v2026_v46, 6  ;;  %v2080_v17 = vmul.f32 %v3546_v28, %v2079_v38 }
 0x1dc   : > { %1995 = vrot.lane.b32.xlu1 %v1992_v22, %s2489_s15  ;;  %2014 = vrot.lane.b32.xlu0 %v2011_v4, %s2489_s15  ;;  %v2121_v6 = vstv %s3676_s25  ;;  %v2089_v41 = vrot.slane %v2082_v59, 2  ;;  %v2103_v55 = vmul.f32 %v3569_v14, %v2100_v21  ;;  %v2107_v7 = vrot.slane %v2101_v27, 3 }
 0x1dd   : > { %v1377_v32 = vadd.f32 %v1373_v35, %v1356_v30  ;;  %v1418_v49 = vadd.f32 %v1413_v47, %v1397_v34  ;;  %v2034_v35 = vsel %vm382_vm9, %v2031_v2, %v2033_v0  ;;  %v2086_v20 = vrot.slane %v2080_v17, 2 }
 0x1de   : > { %v1436_v18 = vpop.permute.xlu1 %1435  ;;  %v1455_v33 = vpop.permute.xlu0 %1454  ;;  %v2108_v60 = vrot.slane %v2102_v48, 3  ;;  %v2122_v36 = vmul.f32 %v3546_v28, %v2121_v6  ;;  %v2123_v45 = vmul.f32 %v3533_v63, %v2121_v6  ;;  %v2142_v25 = vstv %s3688_s26 }
 0x1df   : > { %v1398_v31 = vadd.f32 %v1394_v40, %v1377_v32  ;;  %v1439_v61 = vadd.f32 %v1434_v19, %v1418_v49  ;;  %v2069_v19 = vsel %vm292_vm4, %v2066_v56, %v2068_v12  ;;  %v2088_v29 = vsel %vm310_vm5, %v2086_v20, %v2087_v16 }
 0x1e0   : > { %2016 = vrot.lane.b32.xlu1 %v2013_v26, %s2489_s15  ;;  %2035 = vrot.lane.b32.xlu0 %v2032_v24, %s2489_s15  ;;  %v2090_v2 = vsel %vm310_vm5, %v2087_v16, %v2089_v41  ;;  %v2110_v46 = vrot.slane %v2103_v55, 3  ;;  %v2124_v30 = vmul.f32 %v3569_v14, %v2121_v6  ;;  %v2109_v4 = vsel %vm328_vm6, %v2107_v7, %v2108_v60 }
 0x1e1   : > { %v1419_v23 = vadd.f32 %v1415_v53, %v1398_v31  ;;  %v1460_v1 = vadd.f32 %v1455_v33, %v1439_v61  ;;  %v2128_v37 = vrot.slane %v2122_v36, 4  ;;  %v2129_v32 = vrot.slane %v2123_v45, 4 }
 0x1e2   : > { %v1457_v57 = vpop.permute.xlu1 %1456  ;;  %v1476_v10 = vpop.permute.xlu0 %1475  ;;  %v2143_v33 = vmul.f32 %v3546_v28, %v2142_v25  ;;  %v2144_v26 = vmul.f32 %v3533_v63, %v2142_v25  ;;  %v2111_v24 = vsel %vm328_vm6, %v2108_v60, %v2110_v46  ;;  %v2131_v61 = vrot.slane %v2124_v30, 4 }
 0x1e3   : > { %v1440_v52 = vadd.f32 %v1436_v18, %v1419_v23  ;;  %v1481_v11 = vadd.f32 %v1476_v10, %v1460_v1  ;;  %v2130_v31 = vsel %vm346_vm7, %v2128_v37, %v2129_v32  ;;  %v2145_v50 = vmul.f32 %v3569_v14, %v2142_v25 }
 0x1e4   : > { %2037 = vrot.lane.b32.xlu1 %v2034_v35, %s2489_s15  ;;  %2049 = vrot.lane.b32.xlu0 %v2045_v42, %s2490_s17  ;;  %s2383_s15 = sld [smem:[#allocation4 + $0x61]]  ;;  %v2149_v1 = vrot.slane %v2143_v33, 5  ;;  %v2150_v42 = vrot.slane %v2144_v26, 5  ;;  %v2132_v35 = vsel %vm346_vm7, %v2129_v32, %v2131_v61 }
 0x1e5   : > { %v1461_v51 = vadd.f32 %v1457_v57, %v1440_v52  ;;  %v2152_v21 = vrot.slane %v2145_v50, 5 }
 0x1e6   : > { %v1478_v3 = vpop.permute.xlu1 %1477  ;;  %v1490_v54 = vpop.permute.xlu0 %1489  ;;  %v2151_v9 = vsel %vm364_vm8, %v2149_v1, %v2150_v42 }
 0x1e7   : > { %v1482_v40 = vadd.f32 %v1478_v3, %v1461_v51  ;;  %v1495_v47 = vadd.f32 %v1490_v54, %v1481_v11  ;;  %v2153_v15 = vsel %vm364_vm8, %v2150_v42, %v2152_v21 }
 0x1e8   : > { %2051 = vrot.lane.b32.xlu1 %v2046_v8, %s2490_s17  ;;  %2070 = vrot.lane.b32.xlu0 %v2067_v39, %s2490_s17 }
 0x1ea   : > { %v1492_v58 = vpop.permute.xlu1 %1491  ;;  %v1511_v13 = vpop.permute.xlu0 %1510  ;;  %v2163_v49 = vstv %s2383_s15 }
 0x1eb   : > { %v1496_v62 = vadd.f32 %v1492_v58, %v1482_v40  ;;  %v1516_v53 = vadd.f32 %v1511_v13, %v1495_v47  ;;  %v2164_v44 = vmul.f32 %v3546_v28, %v2163_v49  ;;  %v2165_v5 = vmul.f32 %v3533_v63, %v2163_v49 }
 0x1ec   : > { %2072 = vrot.lane.b32.xlu1 %v2069_v19, %s2490_s17  ;;  %2091 = vrot.lane.b32.xlu0 %v2088_v29, %s2490_s17  ;;  %v2166_v17 = vmul.f32 %v3569_v14, %v2163_v49 }
 0x1ed   : > { %v2170_v52 = vrot.slane %v2164_v44, 6  ;;  %v2171_v28 = vrot.slane %v2165_v5, 6 }
 0x1ee   : > { %v1513_v34 = vpop.permute.xlu1 %1512  ;;  %v1532_v22 = vpop.permute.xlu0 %1531  ;;  %v2173_v51 = vrot.slane %v2166_v17, 6 }
 0x1ef   : > { %v1517_v43 = vadd.f32 %v1513_v34, %v1496_v62  ;;  %v3709_v18 = vadd.f32 %v1532_v22, %v1516_v53  ;;  %v2172_v56 = vsel %vm382_vm9, %v2170_v52, %v2171_v28 }
 0x1f0   : > { %2093 = vrot.lane.b32.xlu1 %v2090_v2, %s2490_s17  ;;  %2112 = vrot.lane.b32.xlu0 %v2109_v4, %s2490_s17  ;;  %v2174_v12 = vsel %vm382_vm9, %v2171_v28, %v2173_v51 }
 0x1f2   : > { %v1534_v0 = vpop.permute.xlu1 %1533  ;;  %v1553_v38 = vpop.permute.xlu0 %1552 }
 0x1f3   : > { %v1538_v23 = vadd.f32 %v1534_v0, %v1517_v43  ;;  %v1558_v2 = vadd.f32 %v1553_v38, %v3709_v18 }
 0x1f4   : > { %2114 = vrot.lane.b32.xlu1 %v2111_v24, %s2490_s17  ;;  %2133 = vrot.lane.b32.xlu0 %v2130_v31, %s2490_s17 }
 0x1f6   : > { %v1555_v57 = vpop.permute.xlu1 %1554  ;;  %v1574_v10 = vpop.permute.xlu0 %1573 }
 0x1f7   : > { %v1579_v34 = vadd.f32 %v1574_v10, %v1558_v2  ;;  %v1559_v22 = vadd.f32 %v1555_v57, %v1538_v23 }
 0x1f8   : > { %2135 = vrot.lane.b32.xlu1 %v2132_v35, %s2490_s17  ;;  %2154 = vrot.lane.b32.xlu0 %v2151_v9, %s2490_s17 }
 0x1fa   : > { %v1576_v63 = vpop.permute.xlu1 %1575  ;;  %v1595_v11 = vpop.permute.xlu0 %1594 }
 0x1fb   : > { %v1600_v4 = vadd.f32 %v1595_v11, %v1579_v34  ;;  %v1580_v49 = vadd.f32 %v1576_v63, %v1559_v22 }
 0x1fc   : > { %2156 = vrot.lane.b32.xlu1 %v2153_v15, %s2490_s17  ;;  %2175 = vrot.lane.b32.xlu0 %v2172_v56, %s2490_s17 }
 0x1fe   : > { %v1597_v14 = vpop.permute.xlu1 %1596  ;;  %v1616_v8 = vpop.permute.xlu0 %1615 }
 0x1ff   : > { %v1621_v43 = vadd.f32 %v1616_v8, %v1600_v4  ;;  %v1601_v33 = vadd.f32 %v1597_v14, %v1580_v49 }
 0x200   : > { %2177 = vrot.lane.b32.xlu1 %v2174_v12, %s2490_s17  ;;  %s2387_s17 = sshll.u32 %s3759_s9, 4 }
 0x201   : > { %s188_s29 = scalar_lea.vmem %s3751_s2, %s2387_s17 }
 0x202   : > { %v1618_v59 = vpop.permute.xlu1 %1617  ;;  %v1630_v3 = vpop.permute.xlu0 %1629 }
 0x203   : > { %v1635_v26 = vadd.f32 %v1630_v3, %v1621_v43  ;;  %v1622_v31 = vadd.f32 %v1618_v59, %v1601_v33 }
 0x206   : > { %v1632_v54 = vpop.permute.xlu1 %1631  ;;  %v1651_v20 = vpop.permute.xlu0 %1650 }
 0x207   : > { %v1656_v61 = vadd.f32 %v1651_v20, %v1635_v26  ;;  %v1636_v50 = vadd.f32 %v1632_v54, %v1622_v31 }
 0x20a   : > { %v1653_v16 = vpop.permute.xlu1 %1652  ;;  %v1672_v27 = vpop.permute.xlu0 %1671 }
 0x20b   : > { %v1677_v44 = vadd.f32 %v1672_v27, %v1656_v61  ;;  %v1657_v18 = vadd.f32 %v1653_v16, %v1636_v50 }
 0x20e   : > { %v1674_v48 = vpop.permute.xlu1 %1673  ;;  %v1693_v40 = vpop.permute.xlu0 %1692 }
 0x20f   : > { %v1698_v38 = vadd.f32 %v1693_v40, %v1677_v44  ;;  %v1678_v5 = vadd.f32 %v1674_v48, %v1657_v18 }
 0x212   : > { %v1695_v47 = vpop.permute.xlu1 %1694  ;;  %v1714_v39 = vpop.permute.xlu0 %1713 }
 0x213   : > { %v1719_v10 = vadd.f32 %v1714_v39, %v1698_v38  ;;  %v1699_v35 = vadd.f32 %v1695_v47, %v1678_v5 }
 0x216   : > { %v1716_v6 = vpop.permute.xlu1 %1715  ;;  %v1735_v41 = vpop.permute.xlu0 %1734 }
 0x217   : > { %v1740_v17 = vadd.f32 %v1735_v41, %v1719_v10  ;;  %v1720_v9 = vadd.f32 %v1716_v6, %v1699_v35 }
 0x21a   : > { %v1737_v55 = vpop.permute.xlu1 %1736  ;;  %v1756_v58 = vpop.permute.xlu0 %1755 }
 0x21b   : > { %v1761_v21 = vadd.f32 %v1756_v58, %v1740_v17  ;;  %v1741_v63 = vadd.f32 %v1737_v55, %v1720_v9 }
 0x21e   : > { %v1758_v13 = vpop.permute.xlu1 %1757  ;;  %v1770_v7 = vpop.permute.xlu0 %1769 }
 0x21f   : > { %v1775_v11 = vadd.f32 %v1770_v7, %v1761_v21  ;;  %v1762_v15 = vadd.f32 %v1758_v13, %v1741_v63 }
 0x222   : > { %v1772_v60 = vpop.permute.xlu1 %1771  ;;  %v1791_v36 = vpop.permute.xlu0 %1790 }
 0x223   : > { %v1796_v56 = vadd.f32 %v1791_v36, %v1775_v11  ;;  %v1776_v8 = vadd.f32 %v1772_v60, %v1762_v15 }
 0x226   : > { %v1793_v45 = vpop.permute.xlu1 %1792  ;;  %v1812_v62 = vpop.permute.xlu0 %1811 }
 0x227   : > { %v1817_v12 = vadd.f32 %v1812_v62, %v1796_v56  ;;  %v1797_v59 = vadd.f32 %v1793_v45, %v1776_v8 }
 0x22a   : > { %v1814_v53 = vpop.permute.xlu1 %1813  ;;  %v1833_v19 = vpop.permute.xlu0 %1832 }
 0x22b   : > { %v1838_v3 = vadd.f32 %v1833_v19, %v1817_v12  ;;  %v1818_v16 = vadd.f32 %v1814_v53, %v1797_v59 }
 0x22e   : > { %v1835_v29 = vpop.permute.xlu1 %1834  ;;  %v1854_v25 = vpop.permute.xlu0 %1853 }
 0x22f   : > { %v1859_v27 = vadd.f32 %v1854_v25, %v1838_v3  ;;  %v1839_v48 = vadd.f32 %v1835_v29, %v1818_v16 }
 0x232   : > { %v1856_v46 = vpop.permute.xlu1 %1855  ;;  %v1875_v30 = vpop.permute.xlu0 %1874 }
 0x233   : > { %v1880_v40 = vadd.f32 %v1875_v30, %v1859_v27  ;;  %v1860_v6 = vadd.f32 %v1856_v46, %v1839_v48 }
 0x236   : > { %v1877_v37 = vpop.permute.xlu1 %1876  ;;  %v1896_v32 = vpop.permute.xlu0 %1895 }
 0x237   : > { %v1901_v41 = vadd.f32 %v1896_v32, %v1880_v40  ;;  %v1881_v55 = vadd.f32 %v1877_v37, %v1860_v6 }
 0x23a   : > { %v1898_v24 = vpop.permute.xlu1 %1897  ;;  %v1910_v0 = vpop.permute.xlu0 %1909 }
 0x23b   : > { %v1915_v58 = vadd.f32 %v1910_v0, %v1901_v41  ;;  %v1902_v36 = vadd.f32 %v1898_v24, %v1881_v55 }
 0x23e   : > { %v1912_v1 = vpop.permute.xlu1 %1911  ;;  %v1931_v42 = vpop.permute.xlu0 %1930 }
 0x23f   : > { %v1936_v2 = vadd.f32 %v1931_v42, %v1915_v58  ;;  %v1916_v60 = vadd.f32 %v1912_v1, %v1902_v36 }
 0x242   : > { %v1933_v23 = vpop.permute.xlu1 %1932  ;;  %v1952_v57 = vpop.permute.xlu0 %1951 }
 0x243   : > { %v1957_v62 = vadd.f32 %v1952_v57, %v1936_v2  ;;  %v1937_v34 = vadd.f32 %v1933_v23, %v1916_v60 }
 0x246   : > { %v1954_v52 = vpop.permute.xlu1 %1953  ;;  %v1973_v28 = vpop.permute.xlu0 %1972 }
 0x247   : > { %v1978_v22 = vadd.f32 %v1973_v28, %v1957_v62  ;;  %v1958_v53 = vadd.f32 %v1954_v52, %v1937_v34 }
 0x24a   : > { %v1975_v51 = vpop.permute.xlu1 %1974  ;;  %v1994_v14 = vpop.permute.xlu0 %1993 }
 0x24b   : > { %v1999_v25 = vadd.f32 %v1994_v14, %v1978_v22  ;;  %v1979_v4 = vadd.f32 %v1975_v51, %v1958_v53 }
 0x24e   : > { %v1996_v54 = vpop.permute.xlu1 %1995  ;;  %v2015_v20 = vpop.permute.xlu0 %2014 }
 0x24f   : > { %v2020_v49 = vadd.f32 %v2015_v20, %v1999_v25  ;;  %v2000_v46 = vadd.f32 %v1996_v54, %v1979_v4 }
 0x252   : > { %v2017_v47 = vpop.permute.xlu1 %2016  ;;  %v2036_v39 = vpop.permute.xlu0 %2035 }
 0x253   : > { %v2041_v32 = vadd.f32 %v2036_v39, %v2020_v49  ;;  %v2021_v33 = vadd.f32 %v2017_v47, %v2000_v46 }
 0x256   : > { %v2038_v13 = vpop.permute.xlu1 %2037  ;;  %v2050_v7 = vpop.permute.xlu0 %2049 }
 0x257   : > { %v2055_v26 = vadd.f32 %v2050_v7, %v2041_v32  ;;  %v2042_v24 = vadd.f32 %v2038_v13, %v2021_v33 }
 0x25a   : > { %v2052_v45 = vpop.permute.xlu1 %2051  ;;  %v2071_v19 = vpop.permute.xlu0 %2070 }
 0x25b   : > { %v2076_v0 = vadd.f32 %v2071_v19, %v2055_v26  ;;  %v2056_v50 = vadd.f32 %v2052_v45, %v2042_v24 }
 0x25e   : > { %v2073_v29 = vpop.permute.xlu1 %2072  ;;  %v2092_v30 = vpop.permute.xlu0 %2091 }
 0x25f   : > { %v2097_v44 = vadd.f32 %v2092_v30, %v2076_v0  ;;  %v2077_v1 = vadd.f32 %v2073_v29, %v2056_v50 }
 0x262   : > { %v2094_v37 = vpop.permute.xlu1 %2093  ;;  %v2113_v43 = vpop.permute.xlu0 %2112 }
 0x263   : > { %v2118_v42 = vadd.f32 %v2113_v43, %v2097_v44  ;;  %v2098_v5 = vadd.f32 %v2094_v37, %v2077_v1 }
 0x266   : > { %v2115_v31 = vpop.permute.xlu1 %2114  ;;  %v2134_v61 = vpop.permute.xlu0 %2133 }
 0x267   : > { %v2139_v10 = vadd.f32 %v2134_v61, %v2118_v42  ;;  %v2119_v23 = vadd.f32 %v2115_v31, %v2098_v5 }
 0x26a   : > { %v2136_v18 = vpop.permute.xlu1 %2135  ;;  %v2155_v38 = vpop.permute.xlu0 %2154 }
 0x26b   : > { %v2160_v57 = vadd.f32 %v2155_v38, %v2139_v10  ;;  %v2140_v9 = vadd.f32 %v2136_v18, %v2119_v23 }
 0x26e   : > { %v2157_v35 = vpop.permute.xlu1 %2156  ;;  %v2176_v17 = vpop.permute.xlu0 %2175 }
 0x26f   : > { %v2181_v21 = vadd.f32 %v2176_v17, %v2160_v57  ;;  %v2161_v52 = vadd.f32 %v2157_v35, %v2140_v9 }
 0x271   : > { %2183 = vst.msk [vmem:[%s188_s29] sm:$0xff] %vm216_vm0, %v2181_v21 }
 0x272   : > { %v2178_v28 = vpop.permute.xlu1 %2177 }
 0x273   : > { %v2182_v63 = vadd.f32 %v2178_v28, %v2161_v52 }
 0x275   : > { %2184 = vst.msk [vmem:[%s188_s29 + $0x8] sm:$0xff] %vm216_vm0, %v2182_v63 }
 0x276 PF: > { %s13_s11 = sadd.s32 1, %s2479_s11   ;;  %s3754_s9 = smov %s2475_s10 }
 0x277   : > { %p10_p2 = scmp.ge.s32.totalorder %s13_s11, 4   ;;  %s3755_s10 = smov %s3757_s13 }
 0x279   :  { %12 = sbr.rel (!%p10_p2) target bundleno = 2 (0x2), region = 77 }
 0x27e   :  { %2206 = vsyncpa [#allocation5], 1 }
 0x27f   :  { %2208 = vsyncpa [#allocation5 + $0x1], 1 }

</bundles_post_ra>
